<compile_context>
chip_gen: v5e
topology: v5e:2x2
jax: 0.10.0
libtpu: 0.0.40
codegen_flags: <defaults>
</compile_context>

<pallas_src>
import functools

import jax
import jax.numpy as jnp
from jax.experimental import pallas as pl
from jax.experimental.pallas import tpu as pltpu

_LN_EPS = 1e-5  # torch.nn.LayerNorm default


# ----------------------------------------------------------------------------
# Fused (split-W1 MLP + SiLU + LayerNorm + residual) Pallas kernel
# ----------------------------------------------------------------------------
def make_fused_mlp_kernel(num_inputs, res_index):
    """Kernel over one row tile.

    refs = (x_0..x_{k-1}, w1_0..w1_{k-1}, b1, w2, b2, gamma, beta, out)
      x_i   : [TM, D_i]   f32 row tiles (concat inputs, never materialized)
      w1_i  : [D_i, H]    bf16 slabs of the first linear layer
      b1    : [1, H]      f32
      w2    : [H, Dout]   bf16
      b2, gamma, beta : [1, Dout] f32
      out   : [TM, Dout]  f32
    """

    def kernel(*refs):
        xs = refs[:num_inputs]
        w1s = refs[num_inputs:2 * num_inputs]
        b1_ref, w2_ref, b2_ref, g_ref, beta_ref, out_ref = refs[2 * num_inputs:]

        # ---- Linear 1: split-W1 multi-matmul (bf16 operands, f32 accumulate) ----
        h = jnp.dot(xs[0][...].astype(jnp.bfloat16), w1s[0][...],
                    preferred_element_type=jnp.float32)
        for x_ref, w_ref in zip(xs[1:], w1s[1:]):
            h = h + jnp.dot(x_ref[...].astype(jnp.bfloat16), w_ref[...],
                            preferred_element_type=jnp.float32)
        h = h + b1_ref[...]                       # [1,H] broadcast, f32

        # ---- SiLU (f32 on VPU/EUP) ----
        h = h * jax.nn.sigmoid(h)

        # ---- Linear 2 ----
        y = jnp.dot(h.astype(jnp.bfloat16), w2_ref[...],
                    preferred_element_type=jnp.float32) + b2_ref[...]

        # ---- LayerNorm (biased variance, eps=1e-5, last dim) ----
        mean = jnp.mean(y, axis=-1, keepdims=True)
        var = jnp.mean(jnp.square(y - mean), axis=-1, keepdims=True)
        yn = (y - mean) * jax.lax.rsqrt(var + _LN_EPS)

        # ---- affine + residual ----
        out_ref[...] = yn * g_ref[...] + beta_ref[...] + xs[res_index][...]

    return kernel


def fused_mlp_block(xs, res_index, w1_slabs, b1, w2, b2, gamma, beta,
                    *, block_rows=128):
    """Row-tiled fused MLP block.  xs: tuple of [rows, D_i] f32 arrays."""
    rows = xs[0].shape[0]
    hidden = w2.shape[0]
    out_dim = w2.shape[1]
    tm = min(block_rows, rows)
    grid = (pl.cdiv(rows, tm),)

    def row_spec(d):
        return pl.BlockSpec((tm, d), lambda i: (i, 0))

    def full_spec(a):
        # Constant block index: params stay resident in VMEM across grid steps.
        return pl.BlockSpec(a.shape, lambda i: (0, 0))

    in_specs = ([row_spec(x.shape[1]) for x in xs]
                + [full_spec(w) for w in w1_slabs]
                + [full_spec(b1), full_spec(w2), full_spec(b2),
                   full_spec(gamma), full_spec(beta)])
    out_spec = row_spec(out_dim)

    in_total = sum(x.shape[1] for x in xs)
    flops = 2 * rows * (in_total * hidden + hidden * out_dim)
    bytes_accessed = sum(int(a.size) * a.dtype.itemsize
                         for a in (*xs, *w1_slabs, b1, w2, b2, gamma, beta))
    bytes_accessed += rows * out_dim * 4

    kernel = make_fused_mlp_kernel(len(xs), res_index)

    return pl.pallas_call(
        kernel,
        out_shape=jax.ShapeDtypeStruct((rows, out_dim), jnp.float32),
        grid=grid,
        in_specs=in_specs,
        out_specs=out_spec,
        compiler_params=pltpu.CompilerParams(
            dimension_semantics=("parallel",),          # v7x: shard tiles over 2 TCs
            vmem_limit_bytes=32 * 1024 * 1024),         # safe on v5e/v6e/v7x
        cost_estimate=pl.CostEstimate(flops=flops,
                                      transcendentals=rows * hidden,
                                      bytes_accessed=bytes_accessed),
    )(*xs, *w1_slabs, b1, w2, b2, gamma, beta)


# ----------------------------------------------------------------------------
# GraphCastProcessor forward
# ----------------------------------------------------------------------------
def graphcast_processor_forward(efeat, nfeat, src, dst, params, *,
                                block_rows=128):
    """params: list of (edge_block_params, node_block_params) per layer.

    Each block's params = (w1_slabs, b1, w2, b2, gamma, beta) with w1 split
    along its input dimension to match the concat order of the torch module.
    """
    num_nodes = nfeat.shape[0]
    for edge_p, node_p in params:
        # ---- MeshEdgeBlock: cat(e, n[src], n[dst]) fused via split-W1 ----
        n_src = jnp.take(nfeat, src, axis=0)
        n_dst = jnp.take(nfeat, dst, axis=0)
        efeat = fused_mlp_block((efeat, n_src, n_dst), 0, *edge_p,
                                block_rows=block_rows)

        # ---- MeshNodeBlock: sum-aggregation over destination nodes ----
        # True segment-sum (O(E*D)), not a dense [N,E] one-hot matmul.
        # TODO(synk): Pallas CSR segment-sum (sorted edges + scalar-prefetched
        # row offsets) fused into the node kernel at GraphCast scale.
        agg = jnp.zeros((num_nodes, efeat.shape[1]), efeat.dtype).at[dst].add(efeat)
        nfeat = fused_mlp_block((agg, nfeat), 1, *node_p,
                                block_rows=block_rows)
    return efeat, nfeat


# ----------------------------------------------------------------------------
# Parameter construction (hidden_layers = 1 per MeshGraphMLP)
# ----------------------------------------------------------------------------
def make_mlp_params(key, in_dims, hidden_dim, out_dim):
    """in_dims: per-concat-stream input widths, in concat order."""
    k1, k2 = jax.random.split(key)
    in_total = sum(in_dims)
    w1 = jax.random.normal(k1, (in_total, hidden_dim), jnp.float32) * 0.1
    w2 = jax.random.normal(k2, (hidden_dim, out_dim), jnp.float32) * 0.1
    b1 = jnp.zeros((1, hidden_dim), jnp.float32)
    b2 = jnp.zeros((1, out_dim), jnp.float32)
    gamma = jnp.ones((1, out_dim), jnp.float32)
    beta = jnp.zeros((1, out_dim), jnp.float32)
    # Split W1 into per-stream slabs; store matmul operands in bf16.
    offs, slabs = 0, []
    for d in in_dims:
        slabs.append(w1[offs:offs + d].astype(jnp.bfloat16))
        offs += d
    return (tuple(slabs), b1, w2.astype(jnp.bfloat16), b2, gamma, beta)


# ----------------------------------------------------------------------------
# Pure-JAX reference (same bf16-operand / f32-accumulate math) for validation
# ----------------------------------------------------------------------------
def _ref_mlp(x_cat, w1_slabs, b1, w2, b2, gamma, beta, res):
    w1 = jnp.concatenate(w1_slabs, axis=0)
    h = jnp.dot(x_cat.astype(jnp.bfloat16), w1,
                preferred_element_type=jnp.float32) + b1
    h = h * jax.nn.sigmoid(h)
    y = jnp.dot(h.astype(jnp.bfloat16), w2,
                preferred_element_type=jnp.float32) + b2
    mean = jnp.mean(y, axis=-1, keepdims=True)
    var = jnp.mean(jnp.square(y - mean), axis=-1, keepdims=True)
    return (y - mean) * jax.lax.rsqrt(var + _LN_EPS) * gamma + beta + res


def reference_forward(efeat, nfeat, src, dst, params):
    num_nodes = nfeat.shape[0]
    for edge_p, node_p in params:
        x_e = jnp.concatenate([efeat, nfeat[src], nfeat[dst]], axis=-1)
        efeat = _ref_mlp(x_e, *edge_p, efeat)
        agg = jnp.zeros((num_nodes, efeat.shape[1]), efeat.dtype).at[dst].add(efeat)
        x_n = jnp.concatenate([agg, nfeat], axis=-1)
        nfeat = _ref_mlp(x_n, *node_p, nfeat)
    return efeat, nfeat


if __name__ == "__main__":
    # Small but lane-aligned shapes (module default is 512; 128 keeps vregs full).
    processor_layers = 2
    d_nodes = d_edges = hidden_dim = 128
    num_nodes = 256
    num_edges = 512

    key = jax.random.PRNGKey(0)
    k_e, k_n, k_src, k_dst, k_p = jax.random.split(key, 5)

    efeat = jax.random.normal(k_e, (num_edges, d_edges), jnp.float32)
    nfeat = jax.random.normal(k_n, (num_nodes, d_nodes), jnp.float32)
    src = jax.random.randint(k_src, (num_edges,), 0, num_nodes, jnp.int32)
    dst = jax.random.randint(k_dst, (num_edges,), 0, num_nodes, jnp.int32)

    params = []
    for _ in range(processor_layers):
        k_p, ke, kn = jax.random.split(k_p, 3)
        edge_p = make_mlp_params(ke, (d_edges, d_nodes, d_nodes),
                                 hidden_dim, d_edges)
        node_p = make_mlp_params(kn, (d_edges, d_nodes), hidden_dim, d_nodes)
        params.append((edge_p, node_p))

    fwd = jax.jit(functools.partial(graphcast_processor_forward,
                                    params=params, block_rows=128))
    efeat_out, nfeat_out = fwd(efeat, nfeat, src, dst)
    jax.block_until_ready((efeat_out, nfeat_out))

    e_ref, n_ref = reference_forward(efeat, nfeat, src, dst, params)

    assert efeat_out.shape == (num_edges, d_edges)
    assert nfeat_out.shape == (num_nodes, d_nodes)
    assert jnp.all(jnp.isfinite(efeat_out)) and jnp.all(jnp.isfinite(nfeat_out))
    assert jnp.allclose(efeat_out, e_ref, atol=1e-2, rtol=1e-2)
    assert jnp.allclose(nfeat_out, n_ref, atol=1e-2, rtol=1e-2)
    print("KERNEL_OK")
</pallas_src>

<mosaic_0001>
module attributes {stable_mosaic.version = 11 : i64} {
  func.func @kernel(%arg0: i32, %arg1: memref<128x128xf32, #tpu.memory_space<vmem>>, %arg2: memref<128x128xf32, #tpu.memory_space<vmem>>, %arg3: memref<128x128xf32, #tpu.memory_space<vmem>>, %arg4: memref<128x128xbf16, #tpu.memory_space<vmem>>, %arg5: memref<128x128xbf16, #tpu.memory_space<vmem>>, %arg6: memref<128x128xbf16, #tpu.memory_space<vmem>>, %arg7: memref<1x128xf32, #tpu.memory_space<vmem>>, %arg8: memref<128x128xbf16, #tpu.memory_space<vmem>>, %arg9: memref<1x128xf32, #tpu.memory_space<vmem>>, %arg10: memref<1x128xf32, #tpu.memory_space<vmem>>, %arg11: memref<1x128xf32, #tpu.memory_space<vmem>>, %arg12: memref<128x128xf32, #tpu.memory_space<vmem>>) attributes {dimension_semantics = [#tpu.dimension_semantics<parallel>], iteration_bounds = array<i64: 4>, scalar_prefetch = 0 : i64, scratch_operands = 0 : i64, tpu.core_type = #tpu.core_type<tc>, window_params = [{transform_indices = @transform_0, window_bounds = array<i64: 128, 128>}, {transform_indices = @transform_1, window_bounds = array<i64: 128, 128>}, {transform_indices = @transform_2, window_bounds = array<i64: 128, 128>}, {pipeline_mode = #tpu.pipeline_mode<synchronous>, transform_indices = @transform_3, window_bounds = array<i64: 128, 128>}, {pipeline_mode = #tpu.pipeline_mode<synchronous>, transform_indices = @transform_4, window_bounds = array<i64: 128, 128>}, {pipeline_mode = #tpu.pipeline_mode<synchronous>, transform_indices = @transform_5, window_bounds = array<i64: 128, 128>}, {pipeline_mode = #tpu.pipeline_mode<synchronous>, transform_indices = @transform_6, window_bounds = array<i64: 1, 128>}, {pipeline_mode = #tpu.pipeline_mode<synchronous>, transform_indices = @transform_7, window_bounds = array<i64: 128, 128>}, {pipeline_mode = #tpu.pipeline_mode<synchronous>, transform_indices = @transform_8, window_bounds = array<i64: 1, 128>}, {pipeline_mode = #tpu.pipeline_mode<synchronous>, transform_indices = @transform_9, window_bounds = array<i64: 1, 128>}, {pipeline_mode = #tpu.pipeline_mode<synchronous>, transform_indices = @transform_10, window_bounds = array<i64: 1, 128>}, {transform_indices = @transform_11, window_bounds = array<i64: 128, 128>}]} {
    %c0 = arith.constant 0 : index
    %c0_0 = arith.constant 0 : index
    %0 = vector.load %arg1[%c0, %c0_0] : memref<128x128xf32, #tpu.memory_space<vmem>>, vector<128x128xf32>
    %1 = arith.truncf %0 : vector<128x128xf32> to vector<128x128xbf16>
    %c0_1 = arith.constant 0 : index
    %c0_2 = arith.constant 0 : index
    %2 = vector.load %arg4[%c0_1, %c0_2] : memref<128x128xbf16, #tpu.memory_space<vmem>>, vector<128x128xbf16>
    %cst = arith.constant dense<0.000000e+00> : vector<128x128xf32>
    %3 = tpu.matmul %1, %2, %cst {dimension_numbers = #tpu.dot_dimension_numbers<[1], [0], [0], [1], [0, 0, 1, 1], [], []>} : vector<128x128xbf16>, vector<128x128xbf16>, vector<128x128xf32> -> vector<128x128xf32>
    %c0_3 = arith.constant 0 : index
    %c0_4 = arith.constant 0 : index
    %4 = vector.load %arg2[%c0_3, %c0_4] : memref<128x128xf32, #tpu.memory_space<vmem>>, vector<128x128xf32>
    %5 = arith.truncf %4 : vector<128x128xf32> to vector<128x128xbf16>
    %c0_5 = arith.constant 0 : index
    %c0_6 = arith.constant 0 : index
    %6 = vector.load %arg5[%c0_5, %c0_6] : memref<128x128xbf16, #tpu.memory_space<vmem>>, vector<128x128xbf16>
    %cst_7 = arith.constant dense<0.000000e+00> : vector<128x128xf32>
    %7 = tpu.matmul %5, %6, %cst_7 {dimension_numbers = #tpu.dot_dimension_numbers<[1], [0], [0], [1], [0, 0, 1, 1], [], []>} : vector<128x128xbf16>, vector<128x128xbf16>, vector<128x128xf32> -> vector<128x128xf32>
    %8 = arith.addf %3, %7 : vector<128x128xf32>
    %c0_8 = arith.constant 0 : index
    %c0_9 = arith.constant 0 : index
    %9 = vector.load %arg3[%c0_8, %c0_9] : memref<128x128xf32, #tpu.memory_space<vmem>>, vector<128x128xf32>
    %10 = arith.truncf %9 : vector<128x128xf32> to vector<128x128xbf16>
    %c0_10 = arith.constant 0 : index
    %c0_11 = arith.constant 0 : index
    %11 = vector.load %arg6[%c0_10, %c0_11] : memref<128x128xbf16, #tpu.memory_space<vmem>>, vector<128x128xbf16>
    %cst_12 = arith.constant dense<0.000000e+00> : vector<128x128xf32>
    %12 = tpu.matmul %10, %11, %cst_12 {dimension_numbers = #tpu.dot_dimension_numbers<[1], [0], [0], [1], [0, 0, 1, 1], [], []>} : vector<128x128xbf16>, vector<128x128xbf16>, vector<128x128xf32> -> vector<128x128xf32>
    %13 = arith.addf %8, %12 : vector<128x128xf32>
    %c0_13 = arith.constant 0 : index
    %c0_14 = arith.constant 0 : index
    %14 = vector.load %arg7[%c0_13, %c0_14] : memref<1x128xf32, #tpu.memory_space<vmem>>, vector<1x128xf32>
    %15 = vector.broadcast %14 : vector<1x128xf32> to vector<128x128xf32>
    %16 = arith.addf %13, %15 : vector<128x128xf32>
    %17 = arith.negf %16 : vector<128x128xf32>
    %18 = math.exp %17 : vector<128x128xf32>
    %cst_15 = arith.constant 1.000000e+00 : f32
    %19 = vector.broadcast %cst_15 : f32 to vector<128x128xf32>
    %20 = arith.addf %19, %18 : vector<128x128xf32>
    %21 = arith.divf %19, %20 : vector<128x128xf32>
    %22 = arith.mulf %16, %21 : vector<128x128xf32>
    %23 = arith.truncf %22 : vector<128x128xf32> to vector<128x128xbf16>
    %c0_16 = arith.constant 0 : index
    %c0_17 = arith.constant 0 : index
    %24 = vector.load %arg8[%c0_16, %c0_17] : memref<128x128xbf16, #tpu.memory_space<vmem>>, vector<128x128xbf16>
    %cst_18 = arith.constant dense<0.000000e+00> : vector<128x128xf32>
    %25 = tpu.matmul %23, %24, %cst_18 {dimension_numbers = #tpu.dot_dimension_numbers<[1], [0], [0], [1], [0, 0, 1, 1], [], []>} : vector<128x128xbf16>, vector<128x128xbf16>, vector<128x128xf32> -> vector<128x128xf32>
    %c0_19 = arith.constant 0 : index
    %c0_20 = arith.constant 0 : index
    %26 = vector.load %arg9[%c0_19, %c0_20] : memref<1x128xf32, #tpu.memory_space<vmem>>, vector<1x128xf32>
    %27 = vector.broadcast %26 : vector<1x128xf32> to vector<128x128xf32>
    %28 = arith.addf %25, %27 : vector<128x128xf32>
    %cst_21 = arith.constant dense<0.000000e+00> : vector<128xf32>
    %29 = vector.multi_reduction <add>, %28, %cst_21 [1] : vector<128x128xf32> to vector<128xf32>
    %30 = vector.shape_cast %29 : vector<128xf32> to vector<128x1xf32>
    %cst_22 = arith.constant 1.280000e+02 : f32
    %31 = vector.broadcast %cst_22 : f32 to vector<128x1xf32>
    %32 = arith.divf %30, %31 : vector<128x1xf32>
    %33 = vector.broadcast %32 : vector<128x1xf32> to vector<128x128xf32>
    %34 = arith.subf %28, %33 : vector<128x128xf32>
    %35 = arith.mulf %34, %34 : vector<128x128xf32>
    %cst_23 = arith.constant dense<0.000000e+00> : vector<128xf32>
    %36 = vector.multi_reduction <add>, %35, %cst_23 [1] : vector<128x128xf32> to vector<128xf32>
    %37 = vector.shape_cast %36 : vector<128xf32> to vector<128x1xf32>
    %cst_24 = arith.constant 1.280000e+02 : f32
    %38 = vector.broadcast %cst_24 : f32 to vector<128x1xf32>
    %39 = arith.divf %37, %38 : vector<128x1xf32>
    %40 = vector.broadcast %32 : vector<128x1xf32> to vector<128x128xf32>
    %41 = arith.subf %28, %40 : vector<128x128xf32>
    %cst_25 = arith.constant 9.99999974E-6 : f32
    %42 = vector.broadcast %cst_25 : f32 to vector<128x1xf32>
    %43 = arith.addf %39, %42 : vector<128x1xf32>
    %44 = math.rsqrt %43 : vector<128x1xf32>
    %45 = vector.broadcast %44 : vector<128x1xf32> to vector<128x128xf32>
    %46 = arith.mulf %41, %45 : vector<128x128xf32>
    %c0_26 = arith.constant 0 : index
    %c0_27 = arith.constant 0 : index
    %47 = vector.load %arg10[%c0_26, %c0_27] : memref<1x128xf32, #tpu.memory_space<vmem>>, vector<1x128xf32>
    %48 = vector.broadcast %47 : vector<1x128xf32> to vector<128x128xf32>
    %49 = arith.mulf %46, %48 : vector<128x128xf32>
    %c0_28 = arith.constant 0 : index
    %c0_29 = arith.constant 0 : index
    %50 = vector.load %arg11[%c0_28, %c0_29] : memref<1x128xf32, #tpu.memory_space<vmem>>, vector<1x128xf32>
    %51 = vector.broadcast %50 : vector<1x128xf32> to vector<128x128xf32>
    %52 = arith.addf %49, %51 : vector<128x128xf32>
    %c0_30 = arith.constant 0 : index
    %c0_31 = arith.constant 0 : index
    %53 = vector.load %arg1[%c0_30, %c0_31] : memref<128x128xf32, #tpu.memory_space<vmem>>, vector<128x128xf32>
    %54 = arith.addf %52, %53 : vector<128x128xf32>
    %c0_32 = arith.constant 0 : index
    %c0_33 = arith.constant 0 : index
    %55 = vector.load %arg12[%c0_32, %c0_33] : memref<128x128xf32, #tpu.memory_space<vmem>>, vector<128x128xf32>
    tpu.vector_store %arg12[%c0_32, %c0_33], %54 {strides = array<i32>} : memref<128x128xf32, #tpu.memory_space<vmem>>, vector<128x128xf32>,
    return
  }
  func.func @transform_0(%arg0: i32) -> (i32, i32) {
    %c0_i32 = arith.constant 0 : i32
    %c0_i32_0 = arith.constant 0 : i32
    return %arg0, %c0_i32 : i32, i32
  }
  func.func @transform_1(%arg0: i32) -> (i32, i32) {
    %c0_i32 = arith.constant 0 : i32
    %c0_i32_0 = arith.constant 0 : i32
    return %arg0, %c0_i32 : i32, i32
  }
  func.func @transform_2(%arg0: i32) -> (i32, i32) {
    %c0_i32 = arith.constant 0 : i32
    %c0_i32_0 = arith.constant 0 : i32
    return %arg0, %c0_i32 : i32, i32
  }
  func.func @transform_3(%arg0: i32) -> (i32, i32) {
    %c0_i32 = arith.constant 0 : i32
    %c0_i32_0 = arith.constant 0 : i32
    %c0_i32_1 = arith.constant 0 : i32
    return %c0_i32, %c0_i32_0 : i32, i32
  }
  func.func @transform_4(%arg0: i32) -> (i32, i32) {
    %c0_i32 = arith.constant 0 : i32
    %c0_i32_0 = arith.constant 0 : i32
    %c0_i32_1 = arith.constant 0 : i32
    return %c0_i32, %c0_i32_0 : i32, i32
  }
  func.func @transform_5(%arg0: i32) -> (i32, i32) {
    %c0_i32 = arith.constant 0 : i32
    %c0_i32_0 = arith.constant 0 : i32
    %c0_i32_1 = arith.constant 0 : i32
    return %c0_i32, %c0_i32_0 : i32, i32
  }
  func.func @transform_6(%arg0: i32) -> (i32, i32) {
    %c0_i32 = arith.constant 0 : i32
    %c0_i32_0 = arith.constant 0 : i32
    %c0_i32_1 = arith.constant 0 : i32
    return %c0_i32, %c0_i32_0 : i32, i32
  }
  func.func @transform_7(%arg0: i32) -> (i32, i32) {
    %c0_i32 = arith.constant 0 : i32
    %c0_i32_0 = arith.constant 0 : i32
    %c0_i32_1 = arith.constant 0 : i32
    return %c0_i32, %c0_i32_0 : i32, i32
  }
  func.func @transform_8(%arg0: i32) -> (i32, i32) {
    %c0_i32 = arith.constant 0 : i32
    %c0_i32_0 = arith.constant 0 : i32
    %c0_i32_1 = arith.constant 0 : i32
    return %c0_i32, %c0_i32_0 : i32, i32
  }
  func.func @transform_9(%arg0: i32) -> (i32, i32) {
    %c0_i32 = arith.constant 0 : i32
    %c0_i32_0 = arith.constant 0 : i32
    %c0_i32_1 = arith.constant 0 : i32
    return %c0_i32, %c0_i32_0 : i32, i32
  }
  func.func @transform_10(%arg0: i32) -> (i32, i32) {
    %c0_i32 = arith.constant 0 : i32
    %c0_i32_0 = arith.constant 0 : i32
    %c0_i32_1 = arith.constant 0 : i32
    return %c0_i32, %c0_i32_0 : i32, i32
  }
  func.func @transform_11(%arg0: i32) -> (i32, i32) {
    %c0_i32 = arith.constant 0 : i32
    %c0_i32_0 = arith.constant 0 : i32
    return %arg0, %c0_i32 : i32, i32
  }
}

module attributes {stable_mosaic.version = 11 : i64} {
  func.func @kernel(%arg0: i32, %arg1: memref<128x128xf32, #tpu.memory_space<vmem>>, %arg2: memref<128x128xf32, #tpu.memory_space<vmem>>, %arg3: memref<128x128xbf16, #tpu.memory_space<vmem>>, %arg4: memref<128x128xbf16, #tpu.memory_space<vmem>>, %arg5: memref<1x128xf32, #tpu.memory_space<vmem>>, %arg6: memref<128x128xbf16, #tpu.memory_space<vmem>>, %arg7: memref<1x128xf32, #tpu.memory_space<vmem>>, %arg8: memref<1x128xf32, #tpu.memory_space<vmem>>, %arg9: memref<1x128xf32, #tpu.memory_space<vmem>>, %arg10: memref<128x128xf32, #tpu.memory_space<vmem>>) attributes {dimension_semantics = [#tpu.dimension_semantics<parallel>], iteration_bounds = array<i64: 2>, scalar_prefetch = 0 : i64, scratch_operands = 0 : i64, tpu.core_type = #tpu.core_type<tc>, window_params = [{transform_indices = @transform_0, window_bounds = array<i64: 128, 128>}, {transform_indices = @transform_1, window_bounds = array<i64: 128, 128>}, {pipeline_mode = #tpu.pipeline_mode<synchronous>, transform_indices = @transform_2, window_bounds = array<i64: 128, 128>}, {pipeline_mode = #tpu.pipeline_mode<synchronous>, transform_indices = @transform_3, window_bounds = array<i64: 128, 128>}, {pipeline_mode = #tpu.pipeline_mode<synchronous>, transform_indices = @transform_4, window_bounds = array<i64: 1, 128>}, {pipeline_mode = #tpu.pipeline_mode<synchronous>, transform_indices = @transform_5, window_bounds = array<i64: 128, 128>}, {pipeline_mode = #tpu.pipeline_mode<synchronous>, transform_indices = @transform_6, window_bounds = array<i64: 1, 128>}, {pipeline_mode = #tpu.pipeline_mode<synchronous>, transform_indices = @transform_7, window_bounds = array<i64: 1, 128>}, {pipeline_mode = #tpu.pipeline_mode<synchronous>, transform_indices = @transform_8, window_bounds = array<i64: 1, 128>}, {transform_indices = @transform_9, window_bounds = array<i64: 128, 128>}]} {
    %c0 = arith.constant 0 : index
    %c0_0 = arith.constant 0 : index
    %0 = vector.load %arg1[%c0, %c0_0] : memref<128x128xf32, #tpu.memory_space<vmem>>, vector<128x128xf32>
    %1 = arith.truncf %0 : vector<128x128xf32> to vector<128x128xbf16>
    %c0_1 = arith.constant 0 : index
    %c0_2 = arith.constant 0 : index
    %2 = vector.load %arg3[%c0_1, %c0_2] : memref<128x128xbf16, #tpu.memory_space<vmem>>, vector<128x128xbf16>
    %cst = arith.constant dense<0.000000e+00> : vector<128x128xf32>
    %3 = tpu.matmul %1, %2, %cst {dimension_numbers = #tpu.dot_dimension_numbers<[1], [0], [0], [1], [0, 0, 1, 1], [], []>} : vector<128x128xbf16>, vector<128x128xbf16>, vector<128x128xf32> -> vector<128x128xf32>
    %c0_3 = arith.constant 0 : index
    %c0_4 = arith.constant 0 : index
    %4 = vector.load %arg2[%c0_3, %c0_4] : memref<128x128xf32, #tpu.memory_space<vmem>>, vector<128x128xf32>
    %5 = arith.truncf %4 : vector<128x128xf32> to vector<128x128xbf16>
    %c0_5 = arith.constant 0 : index
    %c0_6 = arith.constant 0 : index
    %6 = vector.load %arg4[%c0_5, %c0_6] : memref<128x128xbf16, #tpu.memory_space<vmem>>, vector<128x128xbf16>
    %cst_7 = arith.constant dense<0.000000e+00> : vector<128x128xf32>
    %7 = tpu.matmul %5, %6, %cst_7 {dimension_numbers = #tpu.dot_dimension_numbers<[1], [0], [0], [1], [0, 0, 1, 1], [], []>} : vector<128x128xbf16>, vector<128x128xbf16>, vector<128x128xf32> -> vector<128x128xf32>
    %8 = arith.addf %3, %7 : vector<128x128xf32>
    %c0_8 = arith.constant 0 : index
    %c0_9 = arith.constant 0 : index
    %9 = vector.load %arg5[%c0_8, %c0_9] : memref<1x128xf32, #tpu.memory_space<vmem>>, vector<1x128xf32>
    %10 = vector.broadcast %9 : vector<1x128xf32> to vector<128x128xf32>
    %11 = arith.addf %8, %10 : vector<128x128xf32>
    %12 = arith.negf %11 : vector<128x128xf32>
    %13 = math.exp %12 : vector<128x128xf32>
    %cst_10 = arith.constant 1.000000e+00 : f32
    %14 = vector.broadcast %cst_10 : f32 to vector<128x128xf32>
    %15 = arith.addf %14, %13 : vector<128x128xf32>
    %16 = arith.divf %14, %15 : vector<128x128xf32>
    %17 = arith.mulf %11, %16 : vector<128x128xf32>
    %18 = arith.truncf %17 : vector<128x128xf32> to vector<128x128xbf16>
    %c0_11 = arith.constant 0 : index
    %c0_12 = arith.constant 0 : index
    %19 = vector.load %arg6[%c0_11, %c0_12] : memref<128x128xbf16, #tpu.memory_space<vmem>>, vector<128x128xbf16>
    %cst_13 = arith.constant dense<0.000000e+00> : vector<128x128xf32>
    %20 = tpu.matmul %18, %19, %cst_13 {dimension_numbers = #tpu.dot_dimension_numbers<[1], [0], [0], [1], [0, 0, 1, 1], [], []>} : vector<128x128xbf16>, vector<128x128xbf16>, vector<128x128xf32> -> vector<128x128xf32>
    %c0_14 = arith.constant 0 : index
    %c0_15 = arith.constant 0 : index
    %21 = vector.load %arg7[%c0_14, %c0_15] : memref<1x128xf32, #tpu.memory_space<vmem>>, vector<1x128xf32>
    %22 = vector.broadcast %21 : vector<1x128xf32> to vector<128x128xf32>
    %23 = arith.addf %20, %22 : vector<128x128xf32>
    %cst_16 = arith.constant dense<0.000000e+00> : vector<128xf32>
    %24 = vector.multi_reduction <add>, %23, %cst_16 [1] : vector<128x128xf32> to vector<128xf32>
    %25 = vector.shape_cast %24 : vector<128xf32> to vector<128x1xf32>
    %cst_17 = arith.constant 1.280000e+02 : f32
    %26 = vector.broadcast %cst_17 : f32 to vector<128x1xf32>
    %27 = arith.divf %25, %26 : vector<128x1xf32>
    %28 = vector.broadcast %27 : vector<128x1xf32> to vector<128x128xf32>
    %29 = arith.subf %23, %28 : vector<128x128xf32>
    %30 = arith.mulf %29, %29 : vector<128x128xf32>
    %cst_18 = arith.constant dense<0.000000e+00> : vector<128xf32>
    %31 = vector.multi_reduction <add>, %30, %cst_18 [1] : vector<128x128xf32> to vector<128xf32>
    %32 = vector.shape_cast %31 : vector<128xf32> to vector<128x1xf32>
    %cst_19 = arith.constant 1.280000e+02 : f32
    %33 = vector.broadcast %cst_19 : f32 to vector<128x1xf32>
    %34 = arith.divf %32, %33 : vector<128x1xf32>
    %35 = vector.broadcast %27 : vector<128x1xf32> to vector<128x128xf32>
    %36 = arith.subf %23, %35 : vector<128x128xf32>
    %cst_20 = arith.constant 9.99999974E-6 : f32
    %37 = vector.broadcast %cst_20 : f32 to vector<128x1xf32>
    %38 = arith.addf %34, %37 : vector<128x1xf32>
    %39 = math.rsqrt %38 : vector<128x1xf32>
    %40 = vector.broadcast %39 : vector<128x1xf32> to vector<128x128xf32>
    %41 = arith.mulf %36, %40 : vector<128x128xf32>
    %c0_21 = arith.constant 0 : index
    %c0_22 = arith.constant 0 : index
    %42 = vector.load %arg8[%c0_21, %c0_22] : memref<1x128xf32, #tpu.memory_space<vmem>>, vector<1x128xf32>
    %43 = vector.broadcast %42 : vector<1x128xf32> to vector<128x128xf32>
    %44 = arith.mulf %41, %43 : vector<128x128xf32>
    %c0_23 = arith.constant 0 : index
    %c0_24 = arith.constant 0 : index
    %45 = vector.load %arg9[%c0_23, %c0_24] : memref<1x128xf32, #tpu.memory_space<vmem>>, vector<1x128xf32>
    %46 = vector.broadcast %45 : vector<1x128xf32> to vector<128x128xf32>
    %47 = arith.addf %44, %46 : vector<128x128xf32>
    %c0_25 = arith.constant 0 : index
    %c0_26 = arith.constant 0 : index
    %48 = vector.load %arg2[%c0_25, %c0_26] : memref<128x128xf32, #tpu.memory_space<vmem>>, vector<128x128xf32>
    %49 = arith.addf %47, %48 : vector<128x128xf32>
    %c0_27 = arith.constant 0 : index
    %c0_28 = arith.constant 0 : index
    %50 = vector.load %arg10[%c0_27, %c0_28] : memref<128x128xf32, #tpu.memory_space<vmem>>, vector<128x128xf32>
    tpu.vector_store %arg10[%c0_27, %c0_28], %49 {strides = array<i32>} : memref<128x128xf32, #tpu.memory_space<vmem>>, vector<128x128xf32>,
    return
  }
  func.func @transform_0(%arg0: i32) -> (i32, i32) {
    %c0_i32 = arith.constant 0 : i32
    %c0_i32_0 = arith.constant 0 : i32
    return %arg0, %c0_i32 : i32, i32
  }
  func.func @transform_1(%arg0: i32) -> (i32, i32) {
    %c0_i32 = arith.constant 0 : i32
    %c0_i32_0 = arith.constant 0 : i32
    return %arg0, %c0_i32 : i32, i32
  }
  func.func @transform_2(%arg0: i32) -> (i32, i32) {
    %c0_i32 = arith.constant 0 : i32
    %c0_i32_0 = arith.constant 0 : i32
    %c0_i32_1 = arith.constant 0 : i32
    return %c0_i32, %c0_i32_0 : i32, i32
  }
  func.func @transform_3(%arg0: i32) -> (i32, i32) {
    %c0_i32 = arith.constant 0 : i32
    %c0_i32_0 = arith.constant 0 : i32
    %c0_i32_1 = arith.constant 0 : i32
    return %c0_i32, %c0_i32_0 : i32, i32
  }
  func.func @transform_4(%arg0: i32) -> (i32, i32) {
    %c0_i32 = arith.constant 0 : i32
    %c0_i32_0 = arith.constant 0 : i32
    %c0_i32_1 = arith.constant 0 : i32
    return %c0_i32, %c0_i32_0 : i32, i32
  }
  func.func @transform_5(%arg0: i32) -> (i32, i32) {
    %c0_i32 = arith.constant 0 : i32
    %c0_i32_0 = arith.constant 0 : i32
    %c0_i32_1 = arith.constant 0 : i32
    return %c0_i32, %c0_i32_0 : i32, i32
  }
  func.func @transform_6(%arg0: i32) -> (i32, i32) {
    %c0_i32 = arith.constant 0 : i32
    %c0_i32_0 = arith.constant 0 : i32
    %c0_i32_1 = arith.constant 0 : i32
    return %c0_i32, %c0_i32_0 : i32, i32
  }
  func.func @transform_7(%arg0: i32) -> (i32, i32) {
    %c0_i32 = arith.constant 0 : i32
    %c0_i32_0 = arith.constant 0 : i32
    %c0_i32_1 = arith.constant 0 : i32
    return %c0_i32, %c0_i32_0 : i32, i32
  }
  func.func @transform_8(%arg0: i32) -> (i32, i32) {
    %c0_i32 = arith.constant 0 : i32
    %c0_i32_0 = arith.constant 0 : i32
    %c0_i32_1 = arith.constant 0 : i32
    return %c0_i32, %c0_i32_0 : i32, i32
  }
  func.func @transform_9(%arg0: i32) -> (i32, i32) {
    %c0_i32 = arith.constant 0 : i32
    %c0_i32_0 = arith.constant 0 : i32
    return %arg0, %c0_i32 : i32, i32
  }
}

module attributes {stable_mosaic.version = 11 : i64} {
  func.func @kernel(%arg0: i32, %arg1: memref<128x128xf32, #tpu.memory_space<vmem>>, %arg2: memref<128x128xf32, #tpu.memory_space<vmem>>, %arg3: memref<128x128xbf16, #tpu.memory_space<vmem>>, %arg4: memref<128x128xbf16, #tpu.memory_space<vmem>>, %arg5: memref<1x128xf32, #tpu.memory_space<vmem>>, %arg6: memref<128x128xbf16, #tpu.memory_space<vmem>>, %arg7: memref<1x128xf32, #tpu.memory_space<vmem>>, %arg8: memref<1x128xf32, #tpu.memory_space<vmem>>, %arg9: memref<1x128xf32, #tpu.memory_space<vmem>>, %arg10: memref<128x128xf32, #tpu.memory_space<vmem>>) attributes {dimension_semantics = [#tpu.dimension_semantics<parallel>], iteration_bounds = array<i64: 2>, scalar_prefetch = 0 : i64, scratch_operands = 0 : i64, tpu.core_type = #tpu.core_type<tc>, window_params = [{transform_indices = @transform_0, window_bounds = array<i64: 128, 128>}, {transform_indices = @transform_1, window_bounds = array<i64: 128, 128>}, {pipeline_mode = #tpu.pipeline_mode<synchronous>, transform_indices = @transform_2, window_bounds = array<i64: 128, 128>}, {pipeline_mode = #tpu.pipeline_mode<synchronous>, transform_indices = @transform_3, window_bounds = array<i64: 128, 128>}, {pipeline_mode = #tpu.pipeline_mode<synchronous>, transform_indices = @transform_4, window_bounds = array<i64: 1, 128>}, {pipeline_mode = #tpu.pipeline_mode<synchronous>, transform_indices = @transform_5, window_bounds = array<i64: 128, 128>}, {pipeline_mode = #tpu.pipeline_mode<synchronous>, transform_indices = @transform_6, window_bounds = array<i64: 1, 128>}, {pipeline_mode = #tpu.pipeline_mode<synchronous>, transform_indices = @transform_7, window_bounds = array<i64: 1, 128>}, {pipeline_mode = #tpu.pipeline_mode<synchronous>, transform_indices = @transform_8, window_bounds = array<i64: 1, 128>}, {transform_indices = @transform_9, window_bounds = array<i64: 128, 128>}]} {
    %c0 = arith.constant 0 : index
    %c0_0 = arith.constant 0 : index
    %0 = vector.load %arg1[%c0, %c0_0] : memref<128x128xf32, #tpu.memory_space<vmem>>, vector<128x128xf32>
    %1 = arith.truncf %0 : vector<128x128xf32> to vector<128x128xbf16>
    %c0_1 = arith.constant 0 : index
    %c0_2 = arith.constant 0 : index
    %2 = vector.load %arg3[%c0_1, %c0_2] : memref<128x128xbf16, #tpu.memory_space<vmem>>, vector<128x128xbf16>
    %cst = arith.constant dense<0.000000e+00> : vector<128x128xf32>
    %3 = tpu.matmul %1, %2, %cst {dimension_numbers = #tpu.dot_dimension_numbers<[1], [0], [0], [1], [0, 0, 1, 1], [], []>} : vector<128x128xbf16>, vector<128x128xbf16>, vector<128x128xf32> -> vector<128x128xf32>
    %c0_3 = arith.constant 0 : index
    %c0_4 = arith.constant 0 : index
    %4 = vector.load %arg2[%c0_3, %c0_4] : memref<128x128xf32, #tpu.memory_space<vmem>>, vector<128x128xf32>
    %5 = arith.truncf %4 : vector<128x128xf32> to vector<128x128xbf16>
    %c0_5 = arith.constant 0 : index
    %c0_6 = arith.constant 0 : index
    %6 = vector.load %arg4[%c0_5, %c0_6] : memref<128x128xbf16, #tpu.memory_space<vmem>>, vector<128x128xbf16>
    %cst_7 = arith.constant dense<0.000000e+00> : vector<128x128xf32>
    %7 = tpu.matmul %5, %6, %cst_7 {dimension_numbers = #tpu.dot_dimension_numbers<[1], [0], [0], [1], [0, 0, 1, 1], [], []>} : vector<128x128xbf16>, vector<128x128xbf16>, vector<128x128xf32> -> vector<128x128xf32>
    %8 = arith.addf %3, %7 : vector<128x128xf32>
    %c0_8 = arith.constant 0 : index
    %c0_9 = arith.constant 0 : index
    %9 = vector.load %arg5[%c0_8, %c0_9] : memref<1x128xf32, #tpu.memory_space<vmem>>, vector<1x128xf32>
    %10 = vector.broadcast %9 : vector<1x128xf32> to vector<128x128xf32>
    %11 = arith.addf %8, %10 : vector<128x128xf32>
    %12 = arith.negf %11 : vector<128x128xf32>
    %13 = math.exp %12 : vector<128x128xf32>
    %cst_10 = arith.constant 1.000000e+00 : f32
    %14 = vector.broadcast %cst_10 : f32 to vector<128x128xf32>
    %15 = arith.addf %14, %13 : vector<128x128xf32>
    %16 = arith.divf %14, %15 : vector<128x128xf32>
    %17 = arith.mulf %11, %16 : vector<128x128xf32>
    %18 = arith.truncf %17 : vector<128x128xf32> to vector<128x128xbf16>
    %c0_11 = arith.constant 0 : index
    %c0_12 = arith.constant 0 : index
    %19 = vector.load %arg6[%c0_11, %c0_12] : memref<128x128xbf16, #tpu.memory_space<vmem>>, vector<128x128xbf16>
    %cst_13 = arith.constant dense<0.000000e+00> : vector<128x128xf32>
    %20 = tpu.matmul %18, %19, %cst_13 {dimension_numbers = #tpu.dot_dimension_numbers<[1], [0], [0], [1], [0, 0, 1, 1], [], []>} : vector<128x128xbf16>, vector<128x128xbf16>, vector<128x128xf32> -> vector<128x128xf32>
    %c0_14 = arith.constant 0 : index
    %c0_15 = arith.constant 0 : index
    %21 = vector.load %arg7[%c0_14, %c0_15] : memref<1x128xf32, #tpu.memory_space<vmem>>, vector<1x128xf32>
    %22 = vector.broadcast %21 : vector<1x128xf32> to vector<128x128xf32>
    %23 = arith.addf %20, %22 : vector<128x128xf32>
    %cst_16 = arith.constant dense<0.000000e+00> : vector<128xf32>
    %24 = vector.multi_reduction <add>, %23, %cst_16 [1] : vector<128x128xf32> to vector<128xf32>
    %25 = vector.shape_cast %24 : vector<128xf32> to vector<128x1xf32>
    %cst_17 = arith.constant 1.280000e+02 : f32
    %26 = vector.broadcast %cst_17 : f32 to vector<128x1xf32>
    %27 = arith.divf %25, %26 : vector<128x1xf32>
    %28 = vector.broadcast %27 : vector<128x1xf32> to vector<128x128xf32>
    %29 = arith.subf %23, %28 : vector<128x128xf32>
    %30 = arith.mulf %29, %29 : vector<128x128xf32>
    %cst_18 = arith.constant dense<0.000000e+00> : vector<128xf32>
    %31 = vector.multi_reduction <add>, %30, %cst_18 [1] : vector<128x128xf32> to vector<128xf32>
    %32 = vector.shape_cast %31 : vector<128xf32> to vector<128x1xf32>
    %cst_19 = arith.constant 1.280000e+02 : f32
    %33 = vector.broadcast %cst_19 : f32 to vector<128x1xf32>
    %34 = arith.divf %32, %33 : vector<128x1xf32>
    %35 = vector.broadcast %27 : vector<128x1xf32> to vector<128x128xf32>
    %36 = arith.subf %23, %35 : vector<128x128xf32>
    %cst_20 = arith.constant 9.99999974E-6 : f32
    %37 = vector.broadcast %cst_20 : f32 to vector<128x1xf32>
    %38 = arith.addf %34, %37 : vector<128x1xf32>
    %39 = math.rsqrt %38 : vector<128x1xf32>
    %40 = vector.broadcast %39 : vector<128x1xf32> to vector<128x128xf32>
    %41 = arith.mulf %36, %40 : vector<128x128xf32>
    %c0_21 = arith.constant 0 : index
    %c0_22 = arith.constant 0 : index
    %42 = vector.load %arg8[%c0_21, %c0_22] : memref<1x128xf32, #tpu.memory_space<vmem>>, vector<1x128xf32>
    %43 = vector.broadcast %42 : vector<1x128xf32> to vector<128x128xf32>
    %44 = arith.mulf %41, %43 : vector<128x128xf32>
    %c0_23 = arith.constant 0 : index
    %c0_24 = arith.constant 0 : index
    %45 = vector.load %arg9[%c0_23, %c0_24] : memref<1x128xf32, #tpu.memory_space<vmem>>, vector<1x128xf32>
    %46 = vector.broadcast %45 : vector<1x128xf32> to vector<128x128xf32>
    %47 = arith.addf %44, %46 : vector<128x128xf32>
    %c0_25 = arith.constant 0 : index
    %c0_26 = arith.constant 0 : index
    %48 = vector.load %arg2[%c0_25, %c0_26] : memref<128x128xf32, #tpu.memory_space<vmem>>, vector<128x128xf32>
    %49 = arith.addf %47, %48 : vector<128x128xf32>
    %c0_27 = arith.constant 0 : index
    %c0_28 = arith.constant 0 : index
    %50 = vector.load %arg10[%c0_27, %c0_28] : memref<128x128xf32, #tpu.memory_space<vmem>>, vector<128x128xf32>
    tpu.vector_store %arg10[%c0_27, %c0_28], %49 {strides = array<i32>} : memref<128x128xf32, #tpu.memory_space<vmem>>, vector<128x128xf32>,
    return
  }
  func.func @transform_0(%arg0: i32) -> (i32, i32) {
    %c0_i32 = arith.constant 0 : i32
    %c0_i32_0 = arith.constant 0 : i32
    return %arg0, %c0_i32 : i32, i32
  }
  func.func @transform_1(%arg0: i32) -> (i32, i32) {
    %c0_i32 = arith.constant 0 : i32
    %c0_i32_0 = arith.constant 0 : i32
    return %arg0, %c0_i32 : i32, i32
  }
  func.func @transform_2(%arg0: i32) -> (i32, i32) {
    %c0_i32 = arith.constant 0 : i32
    %c0_i32_0 = arith.constant 0 : i32
    %c0_i32_1 = arith.constant 0 : i32
    return %c0_i32, %c0_i32_0 : i32, i32
  }
  func.func @transform_3(%arg0: i32) -> (i32, i32) {
    %c0_i32 = arith.constant 0 : i32
    %c0_i32_0 = arith.constant 0 : i32
    %c0_i32_1 = arith.constant 0 : i32
    return %c0_i32, %c0_i32_0 : i32, i32
  }
  func.func @transform_4(%arg0: i32) -> (i32, i32) {
    %c0_i32 = arith.constant 0 : i32
    %c0_i32_0 = arith.constant 0 : i32
    %c0_i32_1 = arith.constant 0 : i32
    return %c0_i32, %c0_i32_0 : i32, i32
  }
  func.func @transform_5(%arg0: i32) -> (i32, i32) {
    %c0_i32 = arith.constant 0 : i32
    %c0_i32_0 = arith.constant 0 : i32
    %c0_i32_1 = arith.constant 0 : i32
    return %c0_i32, %c0_i32_0 : i32, i32
  }
  func.func @transform_6(%arg0: i32) -> (i32, i32) {
    %c0_i32 = arith.constant 0 : i32
    %c0_i32_0 = arith.constant 0 : i32
    %c0_i32_1 = arith.constant 0 : i32
    return %c0_i32, %c0_i32_0 : i32, i32
  }
  func.func @transform_7(%arg0: i32) -> (i32, i32) {
    %c0_i32 = arith.constant 0 : i32
    %c0_i32_0 = arith.constant 0 : i32
    %c0_i32_1 = arith.constant 0 : i32
    return %c0_i32, %c0_i32_0 : i32, i32
  }
  func.func @transform_8(%arg0: i32) -> (i32, i32) {
    %c0_i32 = arith.constant 0 : i32
    %c0_i32_0 = arith.constant 0 : i32
    %c0_i32_1 = arith.constant 0 : i32
    return %c0_i32, %c0_i32_0 : i32, i32
  }
  func.func @transform_9(%arg0: i32) -> (i32, i32) {
    %c0_i32 = arith.constant 0 : i32
    %c0_i32_0 = arith.constant 0 : i32
    return %arg0, %c0_i32 : i32, i32
  }
}

</mosaic_0001>

<bundles_post_ra>
// kernel: graphcast_processor_forward.4
= control target key start
LH: loop header
LB: loop body
LE: loop exit
PB: predicated region body
PF: predicated region fallthrough
CT: control target
= control target key end

     0   :  { %s2192_s17 = smov 0   ;;  %s2779_s0 = inlined_call_operand.vmem [shape: f32[512,128], index: 0, kind: input, shape index: {}]   ;;  %s2780_s1 = inlined_call_operand.vmem [shape: f32[512,128], index: 1, kind: input, shape index: {}]   ;;  %s2781_s2 = inlined_call_operand.vmem [shape: f32[512,128], index: 2, kind: input, shape index: {}]   ;;  %s2782_s3 = inlined_call_operand.vmem [shape: bf16[128,128], index: 3, kind: input, shape index: {}]   ;;  %s2783_s4 = inlined_call_operand.vmem [shape: bf16[128,128], index: 4, kind: input, shape index: {}]   ;;  %s2784_s5 = inlined_call_operand.vmem [shape: bf16[128,128], index: 5, kind: input, shape index: {}]   ;;  %s2785_s6 = inlined_call_operand.vmem [shape: f32[1,128], index: 6, kind: input, shape index: {}, may-alias: {6,8,10}]   ;;  %s2786_s7 = inlined_call_operand.vmem [shape: bf16[128,128], index: 7, kind: input, shape index: {}]   ;;  %s2787_s8 = inlined_call_operand.vmem [shape: f32[1,128], index: 8, kind: input, shape index: {}, may-alias: {6,8,10}]   ;;  %s2788_s9 = inlined_call_operand.vmem [shape: f32[1,128], index: 9, kind: input, shape index: {}]   ;;  %s2789_s10 = inlined_call_operand.vmem [shape: f32[1,128], index: 10, kind: input, shape index: {}, may-alias: {6,8,10}]   ;;  %s2790_s11 = inlined_call_operand.vmem [shape: f32[512,128], index: 11, kind: output, shape index: {}]  }
   0x1 LB: > { %s1805_s18 = sadd.s32 4294967295, %s2129_s17   ;;  %p1809_p0 = scmp.ge.s32.totalorder %s2129_s17, 1  ;;  %s2129_s17 = sphi %s2192_s17, %s21_s17  }
   0x2   : > { %p360_p1 = scmp.lt.s32.totalorder %s2129_s17, 5 }
   0x4   : > { %p361_p2 = pnand %p1809_p0, %p360_p1 }
   0x5   : > { %s1810_s20 = sshll.u32 (!%p361_p2), %s1805_s18, 4 }
   0x6   : > { %364 = sbr.rel (%p361_p2) target bundleno = 744 (0x2e8), region = 64  ;;  %p411_p3 = scmp.lt.s32.totalorder (!%p361_p2), %s1810_s20, 63 }
   0xb   : > { %v1979_v0 = vld [vmem:[%s2783_s4 + $0x38] sm:$0xff]  ;;  %v1978_v3 = vld [vmem:[%s2783_s4 + $0x30] sm:$0xff]  ;;  %v1977_v6 = vld [vmem:[%s2783_s4 + $0x28] sm:$0xff]  ;;  %s2804_s20 = smov (!%p411_p3, %s1810_s20), 63 }
   0xc   : > { %v1971_v1 = vld [vmem:[%s2782_s3 + $0x38] sm:$0xff]  ;;  %562 = vmatpush.bf16.msra.mxu0 %v1979_v0  ;;  %v1970_v4 = vld [vmem:[%s2782_s3 + $0x30] sm:$0xff]  ;;  %v1969_v7 = vld [vmem:[%s2782_s3 + $0x28] sm:$0xff]  ;;  %s2254_s22 = sshll.u32 %s2804_s20, 3 }
   0xd   : > { %v1987_v2 = vld [vmem:[%s2784_s5 + $0x38] sm:$0xff]  ;;  %659 = vmatpush.bf16.msra.mxu1 %v1971_v1  ;;  %v1986_v5 = vld [vmem:[%s2784_s5 + $0x30] sm:$0xff]  ;;  %v1985_v8 = vld [vmem:[%s2784_s5 + $0x28] sm:$0xff]  ;;  %s2266_s28 = scalar_lea.vmem %s2780_s1, %s2254_s22  ;;  %s2275_s13 = scalar_lea.vmem %s2779_s0, %s2254_s22 }
   0xe   : > { %796 = vmatpush.bf16.msra.mxu2 %v1987_v2  ;;  %v1976_v9 = vld [vmem:[%s2783_s4 + $0x20] sm:$0xff]  ;;  %v1975_v12 = vld [vmem:[%s2783_s4 + $0x18] sm:$0xff]  ;;  %v1974_v15 = vld [vmem:[%s2783_s4 + $0x10] sm:$0xff]  ;;  %s2281_s16 = scalar_lea.vmem %s2781_s2, %s2254_s22  ;;  %s2685_s19 = scalar_lea.vmem %s2790_s11, %s2254_s22 }
   0xf   : > { %v1968_v10 = vld [vmem:[%s2782_s3 + $0x20] sm:$0xff]  ;;  %v1967_v13 = vld [vmem:[%s2782_s3 + $0x18] sm:$0xff]  ;;  %v1966_v16 = vld [vmem:[%s2782_s3 + $0x10] sm:$0xff] }
  0x10   : > { %563 = vmatpush.bf16.msra.mxu0 %v1978_v3  ;;  %v1984_v11 = vld [vmem:[%s2784_s5 + $0x20] sm:$0xff]  ;;  %v1983_v14 = vld [vmem:[%s2784_s5 + $0x18] sm:$0xff]  ;;  %v1982_v17 = vld [vmem:[%s2784_s5 + $0x10] sm:$0xff] }
  0x11   : > { %660 = vmatpush.bf16.msra.mxu1 %v1970_v4  ;;  %v1973_v18 = vld [vmem:[%s2783_s4 + $0x8] sm:$0xff]  ;;  %v1972_v21 = vld [vmem:[%s2783_s4] sm:$0xff]  ;;  %v476_v33 = vld [vmem:[%s2266_s28 + $0x10] sm:$0xff] }
  0x12   : > { %797 = vmatpush.bf16.msra.mxu2 %v1986_v5  ;;  %v1965_v19 = vld [vmem:[%s2782_s3 + $0x8] sm:$0xff]  ;;  %v1964_v22 = vld [vmem:[%s2782_s3] sm:$0xff]  ;;  %v477_v34 = vld [vmem:[%s2266_s28 + $0x18] sm:$0xff] }
  0x13   : > { %v1981_v20 = vld [vmem:[%s2784_s5 + $0x8] sm:$0xff]  ;;  %v474_v23 = vld [vmem:[%s2266_s28] sm:$0xff]  ;;  %v436_v35 = vld [vmem:[%s2275_s13 + $0x10] sm:$0xff]  ;;  %v491_v39 = vpack.c.bf16 %v477_v34, %v476_v33 }
  0x14   : > { %564 = vmatpush.bf16.msra.mxu0 %v1977_v6  ;;  %v475_v24 = vld [vmem:[%s2266_s28 + $0x8] sm:$0xff]  ;;  %v434_v25 = vld [vmem:[%s2275_s13] sm:$0xff]  ;;  %v437_v36 = vld [vmem:[%s2275_s13 + $0x18] sm:$0xff] }
  0x15   : > { %661 = vmatpush.bf16.msra.mxu1 %v1969_v7  ;;  %v435_v26 = vld [vmem:[%s2275_s13 + $0x8] sm:$0xff]  ;;  %v1980_v27 = vld [vmem:[%s2784_s5] sm:$0xff]  ;;  %v490_v30 = vpack.c.bf16 %v475_v24, %v474_v23  ;;  %v710_v37 = vld [vmem:[%s2281_s16 + $0x10] sm:$0xff]  ;;  %v451_v40 = vpack.c.bf16 %v437_v36, %v436_v35 }
  0x16   : > { %798 = vmatpush.bf16.msra.mxu2 %v1985_v8  ;;  %v708_v28 = vld [vmem:[%s2281_s16] sm:$0xff]  ;;  %v709_v29 = vld [vmem:[%s2281_s16 + $0x8] sm:$0xff]  ;;  %v450_v31 = vpack.c.bf16 %v435_v26, %v434_v25  ;;  %v711_v38 = vld [vmem:[%s2281_s16 + $0x18] sm:$0xff] }
  0x17   : > { %v724_v32 = vpack.c.bf16 %v709_v29, %v708_v28  ;;  %v725_v41 = vpack.c.bf16 %v711_v38, %v710_v37  ;;  %v478_v42 = vld [vmem:[%s2266_s28 + $0x20] sm:$0xff]  ;;  %v479_v43 = vld [vmem:[%s2266_s28 + $0x28] sm:$0xff]  ;;  %v480_v51 = vld [vmem:[%s2266_s28 + $0x30] sm:$0xff] }
  0x18   : > { %565 = vmatpush.bf16.msra.mxu0 %v1976_v9  ;;  %v438_v44 = vld [vmem:[%s2275_s13 + $0x20] sm:$0xff]  ;;  %v439_v45 = vld [vmem:[%s2275_s13 + $0x28] sm:$0xff]  ;;  %v492_v48 = vpack.c.bf16 %v479_v43, %v478_v42  ;;  %v481_v52 = vld [vmem:[%s2266_s28 + $0x38] sm:$0xff] }
  0x19   : > { %662 = vmatpush.bf16.msra.mxu1 %v1968_v10  ;;  %v712_v46 = vld [vmem:[%s2281_s16 + $0x20] sm:$0xff]  ;;  %v713_v47 = vld [vmem:[%s2281_s16 + $0x28] sm:$0xff]  ;;  %v452_v49 = vpack.c.bf16 %v439_v45, %v438_v44  ;;  %v440_v53 = vld [vmem:[%s2275_s13 + $0x30] sm:$0xff]  ;;  %v493_v57 = vpack.c.bf16 %v481_v52, %v480_v51 }
  0x1a   : > { %799 = vmatpush.bf16.msra.mxu2 %v1984_v11  ;;  %v726_v50 = vpack.c.bf16 %v713_v47, %v712_v46  ;;  %v441_v54 = vld [vmem:[%s2275_s13 + $0x38] sm:$0xff]  ;;  %v714_v55 = vld [vmem:[%s2281_s16 + $0x30] sm:$0xff]  ;;  %v482_v60 = vld [vmem:[%s2266_s28 + $0x40] sm:$0xff] }
  0x1b   : > { %v715_v56 = vld [vmem:[%s2281_s16 + $0x38] sm:$0xff]  ;;  %v453_v58 = vpack.c.bf16 %v441_v54, %v440_v53  ;;  %v483_v61 = vld [vmem:[%s2266_s28 + $0x48] sm:$0xff]  ;;  %v442_v62 = vld [vmem:[%s2275_s13 + $0x40] sm:$0xff] }
  0x1c   : > { %566 = vmatpush.bf16.msra.mxu0 %v1975_v12  ;;  %v727_v59 = vpack.c.bf16 %v715_v56, %v714_v55  ;;  %v443_v63 = vld [vmem:[%s2275_s13 + $0x48] sm:$0xff]  ;;  %v716_v0 = vld [vmem:[%s2281_s16 + $0x40] sm:$0xff]  ;;  %v494_v2 = vpack.c.bf16 %v483_v61, %v482_v60  ;;  %v484_v5 = vld [vmem:[%s2266_s28 + $0x50] sm:$0xff] }
  0x1d   : > { %663 = vmatpush.bf16.msra.mxu1 %v1967_v13  ;;  %v717_v1 = vld [vmem:[%s2281_s16 + $0x48] sm:$0xff]  ;;  %v454_v3 = vpack.c.bf16 %v443_v63, %v442_v62  ;;  %v485_v6 = vld [vmem:[%s2266_s28 + $0x58] sm:$0xff]  ;;  %v444_v7 = vld [vmem:[%s2275_s13 + $0x50] sm:$0xff] }
  0x1e   : > { %800 = vmatpush.bf16.msra.mxu2 %v1983_v14  ;;  %v728_v4 = vpack.c.bf16 %v717_v1, %v716_v0  ;;  %v445_v8 = vld [vmem:[%s2275_s13 + $0x58] sm:$0xff]  ;;  %v718_v9 = vld [vmem:[%s2281_s16 + $0x50] sm:$0xff]  ;;  %v495_v11 = vpack.c.bf16 %v485_v6, %v484_v5  ;;  %v486_v14 = vld [vmem:[%s2266_s28 + $0x60] sm:$0xff] }
  0x1f   : > { %v719_v10 = vld [vmem:[%s2281_s16 + $0x58] sm:$0xff]  ;;  %v455_v12 = vpack.c.bf16 %v445_v8, %v444_v7  ;;  %v488_v23 = vld [vmem:[%s2266_s28 + $0x70] sm:$0xff]  ;;  %v1993_v34 = vld [vmem:[%s2786_s7 + $0x28] sm:$0xff] }
  0x20   : > { %567 = vmatpush.bf16.msra.mxu0 %v1974_v15  ;;  %v729_v13 = vpack.c.bf16 %v719_v10, %v718_v9  ;;  %v487_v15 = vld [vmem:[%s2266_s28 + $0x68] sm:$0xff]  ;;  %v489_v24 = vld [vmem:[%s2266_s28 + $0x78] sm:$0xff]  ;;  %v448_v25 = vld [vmem:[%s2275_s13 + $0x70] sm:$0xff] }
  0x21   : > { %664 = vmatpush.bf16.msra.mxu1 %v1966_v16  ;;  %v446_v16 = vld [vmem:[%s2275_s13 + $0x60] sm:$0xff]  ;;  %v449_v26 = vld [vmem:[%s2275_s13 + $0x78] sm:$0xff]  ;;  %v497_v29 = vpack.c.bf16 %v489_v24, %v488_v23  ;;  %v1994_v33 = vld [vmem:[%s2786_s7 + $0x30] sm:$0xff] }
  0x22   : > { %801 = vmatpush.bf16.msra.mxu2 %v1982_v17  ;;  %v447_v17 = vld [vmem:[%s2275_s13 + $0x68] sm:$0xff]  ;;  %v723_v28 = vld [vmem:[%s2281_s16 + $0x78] sm:$0xff]  ;;  %v1992_v35 = vld [vmem:[%s2786_s7 + $0x20] sm:$0xff] }
  0x23   : > { %v1991_v38 = vld [vmem:[%s2786_s7 + $0x18] sm:$0xff]  ;;  %v1990_v42 = vld [vmem:[%s2786_s7 + $0x10] sm:$0xff]  ;;  %v1989_v47 = vld [vmem:[%s2786_s7 + $0x8] sm:$0xff] }
  0x24   : > { %568 = vmatpush.bf16.msra.mxu0 %v1973_v18  ;;  %v720_v18 = vld [vmem:[%s2281_s16 + $0x60] sm:$0xff] }
  0x25   : > { %665 = vmatpush.bf16.msra.mxu1 %v1965_v19  ;;  %v721_v19 = vld [vmem:[%s2281_s16 + $0x68] sm:$0xff]  ;;  %v1988_v51 = vld [vmem:[%s2786_s7] sm:$0xff] }
  0x26   : > { %802 = vmatpush.bf16.msra.mxu2 %v1981_v20  ;;  %v496_v20 = vpack.c.bf16 %v487_v15, %v486_v14 }
  0x28   : > { %569 = vmatpush.bf16.msra.mxu0 %v1972_v21  ;;  %v456_v21 = vpack.c.bf16 %v447_v17, %v446_v16 }
  0x29   : > { %666 = vmatpush.bf16.msra.mxu1 %v1964_v22  ;;  %v730_v22 = vpack.c.bf16 %v721_v19, %v720_v18 }
  0x2a   : > { %803 = vmatpush.bf16.msra.mxu2 %v1980_v27  ;;  %v722_v27 = vld [vmem:[%s2281_s16 + $0x70] sm:$0xff] }
  0x2b   : > { %570 = vmatmul.bf16.vlgmr.msra.gmra.mxu0 %v490_v30  ;;  %v457_v30 = vpack.c.bf16 %v449_v26, %v448_v25 }
  0x2c   : > { %667 = vmatmul.bf16.vlgmr.msra.gmra.mxu1 %v450_v31  ;;  %v731_v31 = vpack.c.bf16 %v723_v28, %v722_v27 }
  0x2d   : > { %804 = vmatmul.bf16.vlgmr.msra.gmra.mxu2 %v724_v32  ;;  %v1995_v32 = vld [vmem:[%s2786_s7 + $0x38] sm:$0xff] }
  0x2e   : > { %1277 = vmatpush.bf16.msra.mxu3 %v1995_v32 }
  0x32   : > { %1278 = vmatpush.bf16.msra.mxu3 %v1994_v33 }
  0x36   : > { %1279 = vmatpush.bf16.msra.mxu3 %v1993_v34 }
  0x3a   : > { %1280 = vmatpush.bf16.msra.mxu3 %v1992_v35 }
  0x3b   : > { %575 = vmatmul.bf16.gmra.mxu0 %v491_v39 }
  0x3c   : > { %672 = vmatmul.bf16.gmra.mxu1 %v451_v40  ;;  %v2358_v40 = vld [vmem:[%s2785_s6] ss:$0 sm:$0xff] }
  0x3d   : > { %809 = vmatmul.bf16.gmra.mxu2 %v725_v41 }
  0x3e   : > { %1281 = vmatpush.bf16.msra.mxu3 %v1991_v38 }
  0x42   : > { %1282 = vmatpush.bf16.msra.mxu3 %v1990_v42 }
  0x46   : > { %1283 = vmatpush.bf16.msra.mxu3 %v1989_v47 }
  0x4a   : > { %1284 = vmatpush.bf16.msra.mxu3 %v1988_v51 }
  0x4b   : > { %580 = vmatmul.bf16.gmra.mxu0 %v492_v48 }
  0x4c   : > { %677 = vmatmul.bf16.gmra.mxu1 %v452_v49 }
  0x4d   : > { %814 = vmatmul.bf16.gmra.mxu2 %v726_v50 }
  0x5b   : > { %585 = vmatmul.bf16.gmra.mxu0 %v493_v57 }
  0x5c   : > { %682 = vmatmul.bf16.gmra.mxu1 %v453_v58 }
  0x5d   : > { %819 = vmatmul.bf16.gmra.mxu2 %v727_v59 }
  0x6b   : > { %590 = vmatmul.bf16.gmra.mxu0 %v494_v2 }
  0x6c   : > { %687 = vmatmul.bf16.gmra.mxu1 %v454_v3 }
  0x6d   : > { %824 = vmatmul.bf16.gmra.mxu2 %v728_v4 }
  0x7b   : > { %595 = vmatmul.bf16.gmra.mxu0 %v495_v11 }
  0x7c   : > { %692 = vmatmul.bf16.gmra.mxu1 %v455_v12 }
  0x7d   : > { %829 = vmatmul.bf16.gmra.mxu2 %v729_v13 }
  0x8b   : > { %600 = vmatmul.bf16.gmra.mxu0 %v496_v20 }
  0x8c   : > { %697 = vmatmul.bf16.gmra.mxu1 %v456_v21 }
  0x8d   : > { %834 = vmatmul.bf16.gmra.mxu2 %v730_v22 }
  0x9b   : > { %605 = vmatmul.bf16.gmra.mxu0 %v497_v29 }
  0x9c   : > { %702 = vmatmul.bf16.gmra.mxu1 %v457_v30 }
  0x9d   : > { %839 = vmatmul.bf16.gmra.mxu2 %v731_v31 }
  0xa8   : > { %v571_v36 = vpop.f32.mrf.mxu0 }
  0xa9   : > { %v668_v37 = vpop.f32.mrf.mxu1 }
  0xaa   : > { %v669_v39 = vadd.f32 %v668_v37, %v571_v36 }
  0xb0   : > { %v805_v41 = vpop.f32.mrf.mxu2  ;;  %v573_v44 = vpop.f32.mrf.mxu0 }
  0xb1   : > { %v845_v43 = vadd.f32 %v805_v41, %v669_v39  ;;  %v670_v45 = vpop.f32.mrf.mxu1 }
  0xb2   : > { %v671_v49 = vadd.f32 %v670_v45, %v573_v44 }
  0xb3   : > { %v2364_v46 = vadd.f32 %v2358_v40, %v845_v43 }
  0xb5   : > { %v1914_v48 = vmul.f32 -1.442695, %v2364_v46 }
  0xb7   : > { %2009 = vpow2.f32 %v1914_v48 }
  0xb8   : > { %v807_v50 = vpop.f32.mrf.mxu2  ;;  %v576_v53 = vpop.f32.mrf.mxu0 }
  0xb9   : > { %v846_v52 = vadd.f32 %v807_v50, %v671_v49  ;;  %v673_v54 = vpop.f32.mrf.mxu1 }
  0xba   : > { %v674_v58 = vadd.f32 %v673_v54, %v576_v53 }
  0xbb   : > { %v2374_v55 = vadd.f32 %v2358_v40, %v846_v52 }
  0xbd   : > { %v2010_v56 = vpop.eup %2009  ;;  %v1915_v57 = vmul.f32 -1.442695, %v2374_v55 }
  0xbe   : > { %v929_v59 = vadd.f32 1.0, %v2010_v56 }
  0xbf   : > { %2011 = vpow2.f32 %v1915_v57 }
  0xc0   : > { %2013 = vrcp.f32 %v929_v59  ;;  %v810_v60 = vpop.f32.mrf.mxu2  ;;  %v578_v62 = vpop.f32.mrf.mxu0  ;;  %v956_v22 = vand.u32 2147483648, %v929_v59  ;;  %vm950_vm1 = vweird.f32 %v929_v59  ;;  %v954_v26 = vand.u32 2147483647, %v929_v59 }
  0xc1   : > { %v847_v61 = vadd.f32 %v810_v60, %v674_v58  ;;  %v675_v63 = vpop.f32.mrf.mxu1 }
  0xc2   : > { %v676_v5 = vadd.f32 %v675_v63, %v578_v62  ;;  %v957_v34 = vor.u32 1.1754944e-38, %v956_v22  ;;  %vm955_vm4 = vcmp.eq.f32.partialorder %v954_v26, 8.507059e+37 }
  0xc3   : > { %v2378_v0 = vadd.f32 %v2358_v40, %v847_v61 }
  0xc5   : > { %v2012_v1 = vpop.eup %2011  ;;  %v1916_v2 = vmul.f32 -1.442695, %v2378_v0 }
  0xc6   : > { %v2014_v3 = vpop.eup %2013  ;;  %v930_v4 = vadd.f32 1.0, %v2012_v1 }
  0xc7   : > { %2015 = vpow2.f32 %v1916_v2  ;;  %v946_v6 = vmul.f32 %v2014_v3, %v929_v59  ;;  %vm951_vm0 = vweird.f32 %v2014_v3 }
  0xc8   : > { %2017 = vrcp.f32 %v930_v4  ;;  %v812_v7 = vpop.f32.mrf.mxu2  ;;  %v581_v9 = vpop.f32.mrf.mxu0  ;;  %vm2388_vm2 = vmor %vm950_vm1, %vm951_vm0  ;;  %v969_v29 = vand.u32 2147483647, %v930_v4  ;;  %v971_v30 = vand.u32 2147483648, %v930_v4  ;;  %vm965_vm5 = vweird.f32 %v930_v4 }
  0xc9   : > { %v848_v8 = vadd.f32 %v812_v7, %v676_v5  ;;  %v678_v10 = vpop.f32.mrf.mxu1  ;;  %v947_v11 = vsub.f32 1.0, %v946_v6 }
  0xca   : > { %v679_v16 = vadd.f32 %v678_v10, %v581_v9  ;;  %vm970_vm7 = vcmp.eq.f32.partialorder %v969_v29, 8.507059e+37  ;;  %v972_v42 = vor.u32 1.1754944e-38, %v971_v30 }
  0xcb   : > { %v2382_v12 = vadd.f32 %v2358_v40, %v848_v8  ;;  %v948_v13 = vmul.f32 %v2014_v3, %v947_v11 }
  0xcd   : > { %v2016_v14 = vpop.eup %2015  ;;  %v1917_v15 = vmul.f32 -1.442695, %v2382_v12  ;;  %v949_v19 = vadd.f32 %v2014_v3, %v948_v13 }
  0xce   : > { %v2018_v17 = vpop.eup %2017  ;;  %v2385_v18 = vadd.f32 1.0, %v2016_v14 }
  0xcf   : > { %2019 = vpow2.f32 %v1917_v15  ;;  %v961_v20 = vmul.f32 %v2018_v17, %v930_v4  ;;  %v953_v32 = vsel %vm2388_vm2, %v2014_v3, %v949_v19  ;;  %vm966_vm3 = vweird.f32 %v2018_v17 }
  0xd0   : > { %2021 = vrcp.f32 %v2385_v18  ;;  %v815_v21 = vpop.f32.mrf.mxu2  ;;  %v583_v24 = vpop.f32.mrf.mxu0  ;;  %v958_v41 = vsel %vm955_vm4, %v957_v34, %v953_v32  ;;  %vm967_vm6 = vmor %vm965_vm5, %vm966_vm3  ;;  %v986_v2 = vand.u32 2147483648, %v2385_v18  ;;  %vm980_vm9 = vweird.f32 %v2385_v18 }
  0xd1   : > { %v849_v23 = vadd.f32 %v815_v21, %v679_v16  ;;  %v680_v25 = vpop.f32.mrf.mxu1  ;;  %v962_v27 = vsub.f32 1.0, %v961_v20  ;;  %v1185_v52 = vmul.f32 %v958_v41, %v2364_v46  ;;  %v984_v6 = vand.u32 2147483647, %v2385_v18 }
  0xd2   : > { %v681_v43 = vadd.f32 %v680_v25, %v583_v24  ;;  %v987_v15 = vor.u32 1.1754944e-38, %v986_v2 }
  0xd3   : > { %v2393_v31 = vadd.f32 %v2358_v40, %v849_v23  ;;  %v963_v33 = vmul.f32 %v2018_v17, %v962_v27  ;;  %vm985_vm12 = vcmp.eq.f32.partialorder %v984_v6, 8.507059e+37 }
  0xd5   : > { %v2020_v35 = vpop.eup %2019  ;;  %v1918_v36 = vmul.f32 -1.442695, %v2393_v31  ;;  %v964_v37 = vadd.f32 %v2018_v17, %v963_v33 }
  0xd6   : > { %v2022_v38 = vpop.eup %2021  ;;  %v932_v39 = vadd.f32 1.0, %v2020_v35 }
  0xd7   : > { %2023 = vpow2.f32 %v1918_v36  ;;  %v968_v44 = vsel %vm967_vm6, %v2018_v17, %v964_v37  ;;  %v976_v45 = vmul.f32 %v2022_v38, %v2385_v18  ;;  %vm981_vm8 = vweird.f32 %v2022_v38 }
  0xd8   : > { %2025 = vrcp.f32 %v932_v39  ;;  %v817_v47 = vpop.f32.mrf.mxu2  ;;  %v973_v48 = vsel %vm970_vm7, %v972_v42, %v968_v44  ;;  %v586_v50 = vpop.f32.mrf.mxu0  ;;  %vm2411_vm10 = vmor %vm980_vm9, %vm981_vm8  ;;  %v999_v9 = vand.u32 2147483647, %v932_v39  ;;  %v1001_v10 = vand.u32 2147483648, %v932_v39 }
  0xd9   : > { %v850_v49 = vadd.f32 %v817_v47, %v681_v43  ;;  %v683_v51 = vpop.f32.mrf.mxu1  ;;  %v1186_v53 = vmul.f32 %v973_v48, %v2374_v55  ;;  %v977_v54 = vsub.f32 1.0, %v976_v45  ;;  %vm995_vm13 = vweird.f32 %v932_v39 }
  0xda   : > { %v684_v61 = vadd.f32 %v683_v51, %v586_v50  ;;  %vm1000_vm15 = vcmp.eq.f32.partialorder %v999_v9, 8.507059e+37  ;;  %v1002_v22 = vor.u32 1.1754944e-38, %v1001_v10 }
  0xdb   : > { %v2402_v56 = vadd.f32 %v2358_v40, %v850_v49  ;;  %v1201_v57 = vpack.c.bf16 %v1186_v53, %v1185_v52  ;;  %v978_v58 = vmul.f32 %v2022_v38, %v977_v54 }
  0xdd   : > { %v2024_v59 = vpop.eup %2023  ;;  %v1919_v60 = vmul.f32 -1.442695, %v2402_v56  ;;  %1285 = vmatmul.bf16.vlgmr.msra.gmra.mxu3 %v1201_v57  ;;  %v979_v1 = vadd.f32 %v2022_v38, %v978_v58 }
  0xde   : > { %v2026_v62 = vpop.eup %2025  ;;  %v2405_v63 = vadd.f32 1.0, %v2024_v59 }
  0xdf   : > { %2027 = vpow2.f32 %v1919_v60  ;;  %v991_v46 = vmul.f32 %v2026_v62, %v932_v39  ;;  %v983_v13 = vsel %vm2411_vm10, %v2022_v38, %v979_v1  ;;  %vm996_vm11 = vweird.f32 %v2026_v62 }
  0xe0   : > { %2029 = vrcp.f32 %v2405_v63  ;;  %v820_v55 = vpop.f32.mrf.mxu2  ;;  %v588_v4 = vpop.f32.mrf.mxu0  ;;  %v988_v21 = vsel %vm985_vm12, %v987_v15, %v983_v13  ;;  %vm997_vm14 = vmor %vm995_vm13, %vm996_vm11  ;;  %v1016_v45 = vand.u32 2147483648, %v2405_v63  ;;  %vm1010_vm1 = vweird.f32 %v2405_v63 }
  0xe1   : > { %v851_v3 = vadd.f32 %v820_v55, %v684_v61  ;;  %v685_v5 = vpop.f32.mrf.mxu1  ;;  %v992_v7 = vsub.f32 1.0, %v991_v46  ;;  %v1187_v32 = vmul.f32 %v988_v21, %v2378_v0  ;;  %v1014_v50 = vand.u32 2147483647, %v2405_v63 }
  0xe2   : > { %v686_v23 = vadd.f32 %v685_v5, %v588_v4  ;;  %v1017_v60 = vor.u32 1.1754944e-38, %v1016_v45 }
  0xe3   : > { %v2416_v11 = vadd.f32 %v2358_v40, %v851_v3  ;;  %v993_v14 = vmul.f32 %v2026_v62, %v992_v7  ;;  %vm1015_vm4 = vcmp.eq.f32.partialorder %v1014_v50, 8.507059e+37 }
  0xe5   : > { %v2028_v16 = vpop.eup %2027  ;;  %v1920_v17 = vmul.f32 -1.442695, %v2416_v11  ;;  %v994_v18 = vadd.f32 %v2026_v62, %v993_v14 }
  0xe6   : > { %v2030_v19 = vpop.eup %2029  ;;  %v934_v20 = vadd.f32 1.0, %v2028_v16 }
  0xe7   : > { %2031 = vpow2.f32 %v1920_v17  ;;  %v998_v24 = vsel %vm997_vm14, %v2026_v62, %v994_v18  ;;  %v1006_v25 = vmul.f32 %v2030_v19, %v2405_v63  ;;  %vm1011_vm0 = vweird.f32 %v2030_v19 }
  0xe8   : > { %2033 = vrcp.f32 %v934_v20  ;;  %v822_v26 = vpop.f32.mrf.mxu2  ;;  %v1003_v27 = vsel %vm1000_vm15, %v1002_v22, %v998_v24  ;;  %v591_v29 = vpop.f32.mrf.mxu0  ;;  %vm2434_vm2 = vmor %vm1010_vm1, %vm1011_vm0  ;;  %v1029_v53 = vand.u32 2147483647, %v934_v20  ;;  %v1031_v54 = vand.u32 2147483648, %v934_v20 }
  0xe9   : > { %v852_v28 = vadd.f32 %v822_v26, %v686_v23  ;;  %v688_v30 = vpop.f32.mrf.mxu1  ;;  %v1188_v33 = vmul.f32 %v1003_v27, %v2382_v12  ;;  %v1007_v34 = vsub.f32 1.0, %v1006_v25  ;;  %vm1025_vm5 = vweird.f32 %v934_v20 }
  0xea   : > { %v689_v41 = vadd.f32 %v688_v30, %v591_v29  ;;  %vm1030_vm7 = vcmp.eq.f32.partialorder %v1029_v53, 8.507059e+37  ;;  %v1032_v2 = vor.u32 1.1754944e-38, %v1031_v54 }
  0xeb   : > { %v2425_v35 = vadd.f32 %v2358_v40, %v852_v28  ;;  %v1202_v36 = vpack.c.bf16 %v1188_v33, %v1187_v32  ;;  %v1008_v37 = vmul.f32 %v2030_v19, %v1007_v34 }
  0xed   : > { %v2032_v38 = vpop.eup %2031  ;;  %v1921_v39 = vmul.f32 -1.442695, %v2425_v35  ;;  %1290 = vmatmul.bf16.gmra.mxu3 %v1202_v36  ;;  %v1009_v44 = vadd.f32 %v2030_v19, %v1008_v37 }
  0xee   : > { %v2034_v42 = vpop.eup %2033  ;;  %v2428_v43 = vadd.f32 1.0, %v2032_v38 }
  0xef   : > { %2035 = vpow2.f32 %v1921_v39  ;;  %v1021_v0 = vmul.f32 %v2034_v42, %v934_v20  ;;  %v1013_v58 = vsel %vm2434_vm2, %v2030_v19, %v1009_v44  ;;  %vm1026_vm3 = vweird.f32 %v2034_v42 }
  0xf0   : > { %2037 = vrcp.f32 %v2428_v43  ;;  %v825_v12 = vpop.f32.mrf.mxu2  ;;  %v593_v48 = vpop.f32.mrf.mxu0  ;;  %v1018_v55 = vsel %vm1015_vm4, %v1017_v60, %v1013_v58  ;;  %vm1027_vm6 = vmor %vm1025_vm5, %vm1026_vm3  ;;  %v1046_v25 = vand.u32 2147483648, %v2428_v43  ;;  %vm1040_vm9 = vweird.f32 %v2428_v43 }
  0xf1   : > { %v853_v47 = vadd.f32 %v825_v12, %v689_v41  ;;  %v690_v49 = vpop.f32.mrf.mxu1  ;;  %v1022_v51 = vsub.f32 1.0, %v1021_v0  ;;  %v1189_v13 = vmul.f32 %v1018_v55, %v2393_v31  ;;  %v1044_v29 = vand.u32 2147483647, %v2428_v43 }
  0xf2   : > { %v691_v3 = vadd.f32 %v690_v49, %v593_v48  ;;  %v1047_v39 = vor.u32 1.1754944e-38, %v1046_v25 }
  0xf3   : > { %v2439_v57 = vadd.f32 %v2358_v40, %v853_v47  ;;  %v1023_v59 = vmul.f32 %v2034_v42, %v1022_v51  ;;  %vm1045_vm12 = vcmp.eq.f32.partialorder %v1044_v29, 8.507059e+37 }
  0xf5   : > { %v2036_v61 = vpop.eup %2035  ;;  %v1922_v62 = vmul.f32 -1.442695, %v2439_v57  ;;  %v1024_v63 = vadd.f32 %v2034_v42, %v1023_v59 }
  0xf6   : > { %v2038_v1 = vpop.eup %2037  ;;  %v936_v46 = vadd.f32 1.0, %v2036_v61 }
  0xf7   : > { %2039 = vpow2.f32 %v1922_v62  ;;  %v1028_v4 = vsel %vm1027_vm6, %v2034_v42, %v1024_v63  ;;  %v1036_v5 = vmul.f32 %v2038_v1, %v2428_v43  ;;  %vm1041_vm8 = vweird.f32 %v2038_v1 }
  0xf8   : > { %2041 = vrcp.f32 %v936_v46  ;;  %v827_v6 = vpop.f32.mrf.mxu2  ;;  %v1033_v7 = vsel %vm1030_vm7, %v1032_v2, %v1028_v4  ;;  %v596_v9 = vpop.f32.mrf.mxu0  ;;  %vm2457_vm10 = vmor %vm1040_vm9, %vm1041_vm8  ;;  %v1059_v33 = vand.u32 2147483647, %v936_v46  ;;  %v1061_v34 = vand.u32 2147483648, %v936_v46 }
  0xf9   : > { %v854_v8 = vadd.f32 %v827_v6, %v691_v3  ;;  %v693_v10 = vpop.f32.mrf.mxu1  ;;  %v1190_v14 = vmul.f32 %v1033_v7, %v2402_v56  ;;  %v1037_v15 = vsub.f32 1.0, %v1036_v5  ;;  %vm1055_vm13 = vweird.f32 %v936_v46 }
  0xfa   : > { %v694_v21 = vadd.f32 %v693_v10, %v596_v9  ;;  %vm1060_vm15 = vcmp.eq.f32.partialorder %v1059_v33, 8.507059e+37  ;;  %v1062_v45 = vor.u32 1.1754944e-38, %v1061_v34 }
  0xfb   : > { %v2448_v16 = vadd.f32 %v2358_v40, %v854_v8  ;;  %v1203_v17 = vpack.c.bf16 %v1190_v14, %v1189_v13  ;;  %v1038_v18 = vmul.f32 %v2038_v1, %v1037_v15 }
  0xfd   : > { %v2040_v19 = vpop.eup %2039  ;;  %v1923_v20 = vmul.f32 -1.442695, %v2448_v16  ;;  %1295 = vmatmul.bf16.gmra.mxu3 %v1203_v17  ;;  %v1039_v24 = vadd.f32 %v2038_v1, %v1038_v18 }
  0xfe   : > { %v2042_v22 = vpop.eup %2041  ;;  %v2451_v23 = vadd.f32 1.0, %v2040_v19 }
  0xff   : > { %2043 = vpow2.f32 %v1923_v20  ;;  %v1051_v31 = vmul.f32 %v2042_v22, %v936_v46  ;;  %v1043_v37 = vsel %vm2457_vm10, %v2038_v1, %v1039_v24  ;;  %vm1056_vm11 = vweird.f32 %v2042_v22 }
 0x100   : > { %2045 = vrcp.f32 %v2451_v23  ;;  %v830_v56 = vpop.f32.mrf.mxu2  ;;  %v598_v27 = vpop.f32.mrf.mxu0  ;;  %v1048_v12 = vsel %vm1045_vm12, %v1047_v39, %v1043_v37  ;;  %vm1057_vm14 = vmor %vm1055_vm13, %vm1056_vm11  ;;  %v1076_v5 = vand.u32 2147483648, %v2451_v23  ;;  %vm1070_vm1 = vweird.f32 %v2451_v23 }
 0x101   : > { %v855_v26 = vadd.f32 %v830_v56, %v694_v21  ;;  %v695_v28 = vpop.f32.mrf.mxu1  ;;  %v1052_v30 = vsub.f32 1.0, %v1051_v31  ;;  %v1191_v58 = vmul.f32 %v1048_v12, %v2416_v11  ;;  %v1074_v9 = vand.u32 2147483647, %v2451_v23 }
 0x102   : > { %v696_v47 = vadd.f32 %v695_v28, %v598_v27  ;;  %v1077_v20 = vor.u32 1.1754944e-38, %v1076_v5 }
 0x103   : > { %v2462_v36 = vadd.f32 %v2358_v40, %v855_v26  ;;  %v1053_v38 = vmul.f32 %v2042_v22, %v1052_v30  ;;  %vm1075_vm4 = vcmp.eq.f32.partialorder %v1074_v9, 8.507059e+37 }
 0x105   : > { %v2044_v41 = vpop.eup %2043  ;;  %v1924_v42 = vmul.f32 -1.442695, %v2462_v36  ;;  %v1054_v43 = vadd.f32 %v2042_v22, %v1053_v38 }
 0x106   : > { %v2046_v44 = vpop.eup %2045  ;;  %v938_v0 = vadd.f32 1.0, %v2044_v41 }
 0x107   : > { %2047 = vpow2.f32 %v1924_v42  ;;  %v1058_v48 = vsel %vm1057_vm14, %v2042_v22, %v1054_v43  ;;  %v1066_v49 = vmul.f32 %v2046_v44, %v2451_v23  ;;  %vm1071_vm0 = vweird.f32 %v2046_v44 }
 0x108   : > { %2049 = vrcp.f32 %v938_v0  ;;  %v832_v50 = vpop.f32.mrf.mxu2  ;;  %v1063_v51 = vsel %vm1060_vm15, %v1062_v45, %v1058_v48  ;;  %v601_v53 = vpop.f32.mrf.mxu0  ;;  %vm2480_vm2 = vmor %vm1070_vm1, %vm1071_vm0  ;;  %v1089_v14 = vand.u32 2147483647, %v938_v0  ;;  %v1091_v15 = vand.u32 2147483648, %v938_v0 }
 0x109   : > { %v856_v52 = vadd.f32 %v832_v50, %v696_v47  ;;  %v698_v54 = vpop.f32.mrf.mxu1  ;;  %v1192_v59 = vmul.f32 %v1063_v51, %v2425_v35  ;;  %v1067_v60 = vsub.f32 1.0, %v1066_v49  ;;  %vm1085_vm5 = vweird.f32 %v938_v0 }
 0x10a   : > { %v699_v55 = vadd.f32 %v698_v54, %v601_v53  ;;  %vm1090_vm7 = vcmp.eq.f32.partialorder %v1089_v14, 8.507059e+37  ;;  %v1092_v25 = vor.u32 1.1754944e-38, %v1091_v15 }
 0x10b   : > { %v2471_v61 = vadd.f32 %v2358_v40, %v856_v52  ;;  %v1204_v62 = vpack.c.bf16 %v1192_v59, %v1191_v58  ;;  %v1068_v63 = vmul.f32 %v2046_v44, %v1067_v60 }
 0x10d   : > { %v2048_v1 = vpop.eup %2047  ;;  %v1925_v46 = vmul.f32 -1.442695, %v2471_v61  ;;  %1300 = vmatmul.bf16.gmra.mxu3 %v1204_v62  ;;  %v1069_v4 = vadd.f32 %v2046_v44, %v1068_v63 }
 0x10e   : > { %v2050_v2 = vpop.eup %2049  ;;  %v2474_v3 = vadd.f32 1.0, %v2048_v1 }
 0x10f   : > { %2051 = vpow2.f32 %v1925_v46  ;;  %v1081_v11 = vmul.f32 %v2050_v2, %v938_v0  ;;  %v1073_v18 = vsel %vm2480_vm2, %v2046_v44, %v1069_v4  ;;  %vm1086_vm3 = vweird.f32 %v2050_v2 }
 0x110   : > { %2053 = vrcp.f32 %v2474_v3  ;;  %v835_v35 = vpop.f32.mrf.mxu2  ;;  %v603_v7 = vpop.f32.mrf.mxu0  ;;  %v1078_v56 = vsel %vm1075_vm4, %v1077_v20, %v1073_v18  ;;  %vm1087_vm6 = vmor %vm1085_vm5, %vm1086_vm3  ;;  %v1106_v49 = vand.u32 2147483648, %v2474_v3  ;;  %vm1100_vm9 = vweird.f32 %v2474_v3 }
 0x111   : > { %v857_v6 = vadd.f32 %v835_v35, %v699_v55  ;;  %v700_v8 = vpop.f32.mrf.mxu1  ;;  %v1082_v10 = vsub.f32 1.0, %v1081_v11  ;;  %v1193_v33 = vmul.f32 %v1078_v56, %v2439_v57  ;;  %v1104_v51 = vand.u32 2147483647, %v2474_v3 }
 0x112   : > { %v701_v26 = vadd.f32 %v700_v8, %v603_v7  ;;  %v1107_v46 = vor.u32 1.1754944e-38, %v1106_v49 }
 0x113   : > { %v2485_v17 = vadd.f32 %v2358_v40, %v857_v6  ;;  %v1083_v19 = vmul.f32 %v2050_v2, %v1082_v10  ;;  %vm1105_vm12 = vcmp.eq.f32.partialorder %v1104_v51, 8.507059e+37 }
 0x115   : > { %v2052_v21 = vpop.eup %2051  ;;  %v1926_v22 = vmul.f32 -1.442695, %v2485_v17  ;;  %v1084_v23 = vadd.f32 %v2050_v2, %v1083_v19 }
 0x116   : > { %v2054_v24 = vpop.eup %2053  ;;  %v940_v31 = vadd.f32 1.0, %v2052_v21 }
 0x117   : > { %2055 = vpow2.f32 %v1926_v22  ;;  %v1088_v27 = vsel %vm1087_vm6, %v2050_v2, %v1084_v23  ;;  %v1096_v28 = vmul.f32 %v2054_v24, %v2474_v3  ;;  %vm1101_vm8 = vweird.f32 %v2054_v24 }
 0x118   : > { %2057 = vrcp.f32 %v940_v31  ;;  %v837_v29 = vpop.f32.mrf.mxu2  ;;  %v1093_v30 = vsel %vm1090_vm7, %v1092_v25, %v1088_v27  ;;  %v606_v38 = vpop.f32.mrf.mxu0  ;;  %vm2503_vm10 = vmor %vm1100_vm9, %vm1101_vm8  ;;  %v1119_v54 = vand.u32 2147483647, %v940_v31  ;;  %v1121_v58 = vand.u32 2147483648, %v940_v31 }
 0x119   : > { %v858_v32 = vadd.f32 %v837_v29, %v701_v26  ;;  %v1194_v34 = vmul.f32 %v1093_v30, %v2448_v16  ;;  %v1097_v37 = vsub.f32 1.0, %v1096_v28  ;;  %v703_v39 = vpop.f32.mrf.mxu1  ;;  %vm1115_vm13 = vweird.f32 %v940_v31 }
 0x11a   : > { %v704_v12 = vadd.f32 %v703_v39, %v606_v38  ;;  %vm1120_vm15 = vcmp.eq.f32.partialorder %v1119_v54, 8.507059e+37  ;;  %v1122_v5 = vor.u32 1.1754944e-38, %v1121_v58 }
 0x11b   : > { %v2494_v41 = vadd.f32 %v2358_v40, %v858_v32  ;;  %v1205_v42 = vpack.c.bf16 %v1194_v34, %v1193_v33  ;;  %v1098_v43 = vmul.f32 %v2054_v24, %v1097_v37 }
 0x11d   : > { %v2056_v44 = vpop.eup %2055  ;;  %v1927_v0 = vmul.f32 -1.442695, %v2494_v41  ;;  %1305 = vmatmul.bf16.gmra.mxu3 %v1205_v42  ;;  %v1099_v57 = vadd.f32 %v2054_v24, %v1098_v43 }
 0x11e   : > { %v2058_v45 = vpop.eup %2057  ;;  %v2497_v47 = vadd.f32 1.0, %v2056_v44 }
 0x11f   : > { %2059 = vpow2.f32 %v1927_v0  ;;  %v1111_v16 = vmul.f32 %v2058_v45, %v940_v31  ;;  %v1103_v60 = vsel %vm2503_vm10, %v2054_v24, %v1099_v57  ;;  %vm1116_vm11 = vweird.f32 %v2058_v45 }
 0x120   : > { %2061 = vrcp.f32 %v2497_v47  ;;  %v840_v48 = vpop.f32.mrf.mxu2  ;;  %v608_v63 = vpop.f32.mrf.mxu0  ;;  %v1108_v35 = vsel %vm1105_vm12, %v1107_v46, %v1103_v60  ;;  %vm1117_vm14 = vmor %vm1115_vm13, %vm1116_vm11  ;;  %vm1130_vm1 = vweird.f32 %v2497_v47 }
 0x121   : > { %v859_v50 = vadd.f32 %v840_v48, %v704_v12  ;;  %v1112_v52 = vsub.f32 1.0, %v1111_v16  ;;  %v705_v1 = vpop.f32.mrf.mxu1  ;;  %v1195_v14 = vmul.f32 %v1108_v35, %v2462_v36  ;;  %v1136_v36 = vand.u32 2147483648, %v2497_v47 }
 0x122   : > { %v706_v6 = vadd.f32 %v705_v1, %v608_v63 }
 0x123   : > { %v2508_v59 = vadd.f32 %v2358_v40, %v859_v50  ;;  %v1113_v62 = vmul.f32 %v2058_v45, %v1112_v52  ;;  %v1137_v30 = vor.u32 1.1754944e-38, %v1136_v36 }
 0x125   : > { %v2060_v55 = vpop.eup %2059  ;;  %v1928_v2 = vmul.f32 -1.442695, %v2508_v59  ;;  %v1114_v3 = vadd.f32 %v2058_v45, %v1113_v62 }
 0x126   : > { %v2062_v4 = vpop.eup %2061  ;;  %v942_v11 = vadd.f32 1.0, %v2060_v55 }
 0x127   : > { %2063 = vpow2.f32 %v1928_v2  ;;  %v1118_v7 = vsel %vm1117_vm14, %v2058_v45, %v1114_v3  ;;  %v1126_v8 = vmul.f32 %v2062_v4, %v2497_v47  ;;  %vm1131_vm0 = vweird.f32 %v2062_v4 }
 0x128   : > { %2065 = vrcp.f32 %v942_v11  ;;  %v842_v9 = vpop.f32.mrf.mxu2  ;;  %v1123_v10 = vsel %vm1120_vm15, %v1122_v5, %v1118_v7  ;;  %vm1132_vm2 = vmor %vm1130_vm1, %vm1131_vm0  ;;  %v1151_v26 = vand.u32 2147483648, %v942_v11  ;;  %v1149_v29 = vand.u32 2147483647, %v942_v11 }
 0x129   : > { %v860_v13 = vadd.f32 %v842_v9, %v706_v6  ;;  %v1196_v15 = vmul.f32 %v1123_v10, %v2471_v61  ;;  %v1127_v18 = vsub.f32 1.0, %v1126_v8  ;;  %vm1145_vm5 = vweird.f32 %v942_v11 }
 0x12a   : > { %v1152_v39 = vor.u32 1.1754944e-38, %v1151_v26  ;;  %vm1150_vm7 = vcmp.eq.f32.partialorder %v1149_v29, 8.507059e+37 }
 0x12b   : > { %v2517_v19 = vadd.f32 %v2358_v40, %v860_v13  ;;  %v1206_v20 = vpack.c.bf16 %v1196_v15, %v1195_v14  ;;  %v1128_v21 = vmul.f32 %v2062_v4, %v1127_v18  ;;  %v1134_v40 = vand.u32 2147483647, %v2497_v47 }
 0x12d   : > { %v2064_v22 = vpop.eup %2063  ;;  %v1929_v23 = vmul.f32 -1.442695, %v2517_v19  ;;  %1310 = vmatmul.bf16.gmra.mxu3 %v1206_v20  ;;  %v1129_v56 = vadd.f32 %v2062_v4, %v1128_v21  ;;  %vm1135_vm4 = vcmp.eq.f32.partialorder %v1134_v40, 8.507059e+37 }
 0x12e   : > { %v2066_v24 = vpop.eup %2065  ;;  %v943_v31 = vadd.f32 1.0, %v2064_v22 }
 0x12f   : > { %2067 = vpow2.f32 %v1929_v23  ;;  %v1141_v25 = vmul.f32 %v2066_v24, %v942_v11  ;;  %v1133_v27 = vsel %vm1132_vm2, %v2062_v4, %v1129_v56  ;;  %vm1146_vm3 = vweird.f32 %v2066_v24  ;;  %v2006_v4 = vld [vmem:[%s2787_s8] ss:$0 sm:$0xff] }
 0x130   : > { %2069 = vrcp.f32 %v943_v31  ;;  %v1138_v38 = vsel %vm1135_vm4, %v1137_v30, %v1133_v27  ;;  %vm1147_vm6 = vmor %vm1145_vm5, %vm1146_vm3  ;;  %v1166_v50 = vand.u32 2147483648, %v943_v31  ;;  %vm1160_vm9 = vweird.f32 %v943_v31 }
 0x131   : > { %v1142_v61 = vsub.f32 1.0, %v1141_v25  ;;  %v1197_v0 = vmul.f32 %v1138_v38, %v2485_v17  ;;  %v1164_v51 = vand.u32 2147483647, %v943_v31 }
 0x132   : > { %v1167_v60 = vor.u32 1.1754944e-38, %v1166_v50 }
 0x133   : > { %v1143_v28 = vmul.f32 %v2066_v24, %v1142_v61  ;;  %vm1165_vm12 = vcmp.eq.f32.partialorder %v1164_v51, 8.507059e+37  ;;  %v2131_v61 = vmov 128.0  }
 0x135   : > { %v2068_v32 = vpop.eup %2067  ;;  %v1144_v33 = vadd.f32 %v2066_v24, %v1143_v28 }
 0x136   : > { %v2070_v34 = vpop.eup %2069  ;;  %v944_v37 = vadd.f32 1.0, %v2068_v32 }
 0x137   : > { %v1148_v42 = vsel %vm1147_vm6, %v2066_v24, %v1144_v33  ;;  %v1156_v43 = vmul.f32 %v2070_v34, %v943_v31  ;;  %vm1161_vm8 = vweird.f32 %v2070_v34 }
 0x138   : > { %2071 = vrcp.f32 %v944_v37  ;;  %v1153_v44 = vsel %vm1150_vm7, %v1152_v39, %v1148_v42  ;;  %vm1162_vm10 = vmor %vm1160_vm9, %vm1161_vm8  ;;  %v1181_v53 = vand.u32 2147483648, %v944_v37  ;;  %v1179_v17 = vand.u32 2147483647, %v944_v37 }
 0x139   : > { %v1198_v12 = vmul.f32 %v1153_v44, %v2494_v41  ;;  %v1157_v45 = vsub.f32 1.0, %v1156_v43  ;;  %vm1175_vm13 = vweird.f32 %v944_v37  ;;  %2073 = vrcp.f32 %v2131_v61 }
 0x13a   : > { %v1182_v63 = vor.u32 1.1754944e-38, %v1181_v53  ;;  %vm1180_vm15 = vcmp.eq.f32.partialorder %v1179_v17, 8.507059e+37 }
 0x13b   : > { %v1207_v47 = vpack.c.bf16 %v1198_v12, %v1197_v0  ;;  %v1158_v57 = vmul.f32 %v2070_v34, %v1157_v45 }
 0x13d   : > { %1315 = vmatmul.bf16.gmra.mxu3 %v1207_v47  ;;  %v1159_v48 = vadd.f32 %v2070_v34, %v1158_v57 }
 0x13e   : > { %v2072_v16 = vpop.eup %2071 }
 0x13f   : > { %v1171_v49 = vmul.f32 %v2072_v16, %v944_v37  ;;  %v1163_v54 = vsel %vm1162_vm10, %v2070_v34, %v1159_v48  ;;  %vm1176_vm11 = vweird.f32 %v2072_v16  ;;  %v2074_v27 = vpop.eup %2073 }
 0x140   : > { %v1168_v62 = vsel %vm1165_vm12, %v1167_v60, %v1163_v54  ;;  %vm1177_vm14 = vmor %vm1175_vm13, %vm1176_vm11  ;;  %v1359_v29 = vmul.f32 128.0, %v2074_v27  ;;  %vm1363_vm0 = vweird.f32 %v2074_v27 }
 0x141   : > { %v1172_v52 = vsub.f32 1.0, %v1171_v49  ;;  %v1199_v55 = vmul.f32 %v1168_v62, %v2508_v59 }
 0x142   : > { %v1360_v32 = vsub.f32 1.0, %v1359_v29 }
 0x143   : > { %v1173_v58 = vmul.f32 %v2072_v16, %v1172_v52 }
 0x144   : > { %v1361_v34 = vmul.f32 %v2074_v27, %v1360_v32 }
 0x145   : > { %v1174_v41 = vadd.f32 %v2072_v16, %v1173_v58 }
 0x146   : > { %v1362_v38 = vadd.f32 %v2074_v27, %v1361_v34 }
 0x147   : > { %v1178_v1 = vsel %vm1177_vm14, %v2072_v16, %v1174_v41 }
 0x148   : > { %v1183_v46 = vsel %vm1180_vm15, %v1182_v63, %v1178_v1  ;;  %v2566_v42 = vsel %vm1363_vm0, %v2074_v27, %v1362_v38 }
 0x149   : > { %v1200_v2 = vmul.f32 %v1183_v46, %v2517_v19 }
 0x14b   : > { %v1208_v3 = vpack.c.bf16 %v1200_v2, %v1199_v55 }
 0x14d   : > { %1320 = vmatmul.bf16.gmra.mxu3 %v1208_v3 }
 0x160   : > { %v1286_v11 = vpop.f32.mrf.mxu3 }
 0x161   : > { %v1287_v35 = vadd.f32 %v2006_v4, %v1286_v11 }
 0x163   : > { %1326 = vadd.xlane.f32.xlu0 %v1287_v35 }
 0x168   : > { %v1288_v5 = vpop.f32.mrf.mxu3 }
 0x169   : > { %v1289_v6 = vadd.f32 %v2006_v4, %v1288_v5 }
 0x16b   : > { %1328 = vadd.xlane.f32.xlu0 %v1289_v6 }
 0x170   : > { %v1291_v7 = vpop.f32.mrf.mxu3 }
 0x171   : > { %v1292_v8 = vadd.f32 %v2006_v4, %v1291_v7 }
 0x173   : > { %1330 = vadd.xlane.f32.xlu1 %v1292_v8 }
 0x178   : > { %v1293_v9 = vpop.f32.mrf.mxu3 }
 0x179   : > { %v2530_v10 = vadd.f32 %v2006_v4, %v1293_v9 }
 0x17b   : > { %1332 = vadd.xlane.f32.xlu1 %v2530_v10 }
 0x180   : > { %v1296_v59 = vpop.f32.mrf.mxu3 }
 0x181   : > { %v2533_v13 = vadd.f32 %v2006_v4, %v1296_v59 }
 0x183   : > { %1334 = vadd.xlane.f32.xlu2 %v2533_v13 }
 0x188   : > { %v1298_v14 = vpop.f32.mrf.mxu3 }
 0x189   : > { %v2536_v15 = vadd.f32 %v2006_v4, %v1298_v14 }
 0x18b   : > { %1336 = vadd.xlane.f32.xlu2 %v2536_v15 }
 0x190   : > { %v1301_v18 = vpop.f32.mrf.mxu3 }
 0x191   : > { %v2539_v19 = vadd.f32 %v2006_v4, %v1301_v18 }
 0x193   : > { %1338 = vadd.xlane.f32.xlu0 %v2539_v19 }
 0x198   : > { %v1303_v20 = vpop.f32.mrf.mxu3 }
 0x199   : > { %v2542_v21 = vadd.f32 %v2006_v4, %v1303_v20 }
 0x19b   : > { %1340 = vadd.xlane.f32.xlu1 %v2542_v21 }
 0x1a0   : > { %v1306_v22 = vpop.f32.mrf.mxu3 }
 0x1a1   : > { %v2545_v23 = vadd.f32 %v2006_v4, %v1306_v22 }
 0x1a3   : > { %1342 = vadd.xlane.f32.xlu2 %v2545_v23 }
 0x1a8   : > { %v1308_v24 = vpop.f32.mrf.mxu3 }
 0x1a9   : > { %v2548_v31 = vadd.f32 %v2006_v4, %v1308_v24 }
 0x1ab   : > { %1344 = vadd.xlane.f32.xlu0 %v2548_v31 }
 0x1b0   : > { %v1311_v56 = vpop.f32.mrf.mxu3 }
 0x1b1   : > { %v2551_v25 = vadd.f32 %v2006_v4, %v1311_v56 }
 0x1b3   : > { %1346 = vadd.xlane.f32.xlu1 %v2551_v25 }
 0x1b8   : > { %v1313_v36 = vpop.f32.mrf.mxu3 }
 0x1b9   : > { %v2554_v40 = vadd.f32 %v2006_v4, %v1313_v36 }
 0x1bb   : > { %1348 = vadd.xlane.f32.xlu2 %v2554_v40 }
 0x1c0   : > { %v1316_v26 = vpop.f32.mrf.mxu3 }
 0x1c1   : > { %v2557_v28 = vadd.f32 %v2006_v4, %v1316_v26 }
 0x1c3   : > { %1350 = vadd.xlane.f32.xlu0 %v2557_v28 }
 0x1c8   : > { %v1318_v30 = vpop.f32.mrf.mxu3 }
 0x1c9   : > { %v2560_v33 = vadd.f32 %v2006_v4, %v1318_v30 }
 0x1cb   : > { %1352 = vadd.xlane.f32.xlu1 %v2560_v33 }
 0x1d0   : > { %v1321_v37 = vpop.f32.mrf.mxu3 }
 0x1d1   : > { %v2563_v39 = vadd.f32 %v2006_v4, %v1321_v37 }
 0x1d3   : > { %1354 = vadd.xlane.f32.xlu2 %v2563_v39 }
 0x1d6   : > { %v1327_v43 = vpop.xlane.xlu0 %1326 }
 0x1d7   : > { %v1365_v44 = vmul.f32 %v2566_v42, %v1327_v43 }
 0x1d8   : > { %v1323_v0 = vpop.f32.mrf.mxu3 }
 0x1d9   : > { %v2569_v12 = vsub.f32 %v1287_v35, %v1365_v44  ;;  %v2571_v45 = vadd.f32 %v2006_v4, %v1323_v0 }
 0x1db   : > { %1356 = vadd.xlane.f32.xlu0 %v2571_v45  ;;  %v1397_v47 = vmul.f32 %v2569_v12, %v2569_v12 }
 0x1dd   : > { %1413 = vadd.xlane.f32.xlu1 %v1397_v47 }
 0x1de   : > { %v1329_v57 = vpop.xlane.xlu0 %1328 }
 0x1df   : > { %v1366_v16 = vmul.f32 %v2566_v42, %v1329_v57 }
 0x1e1   : > { %v2577_v48 = vsub.f32 %v1289_v6, %v1366_v16 }
 0x1e3   : > { %v1398_v49 = vmul.f32 %v2577_v48, %v2577_v48 }
 0x1e5   : > { %1415 = vadd.xlane.f32.xlu2 %v1398_v49 }
 0x1e6   : > { %v1331_v50 = vpop.xlane.xlu1 %1330 }
 0x1e7   : > { %v1367_v51 = vmul.f32 %v2566_v42, %v1331_v50 }
 0x1e9   : > { %v2582_v52 = vsub.f32 %v1292_v8, %v1367_v51 }
 0x1eb   : > { %v1399_v53 = vmul.f32 %v2582_v52, %v2582_v52 }
 0x1ed   : > { %1417 = vadd.xlane.f32.xlu0 %v1399_v53 }
 0x1ee   : > { %v1333_v54 = vpop.xlane.xlu1 %1332 }
 0x1ef   : > { %v1368_v58 = vmul.f32 %v2566_v42, %v1333_v54 }
 0x1f1   : > { %v2588_v17 = vsub.f32 %v2530_v10, %v1368_v58 }
 0x1f3   : > { %v1400_v60 = vmul.f32 %v2588_v17, %v2588_v17 }
 0x1f5   : > { %1419 = vadd.xlane.f32.xlu1 %v1400_v60 }
 0x1f6   : > { %v1335_v41 = vpop.xlane.xlu2 %1334 }
 0x1f7   : > { %v1369_v62 = vmul.f32 %v2566_v42, %v1335_v41 }
 0x1f9   : > { %v2594_v63 = vsub.f32 %v2533_v13, %v1369_v62 }
 0x1fb   : > { %v1401_v1 = vmul.f32 %v2594_v63, %v2594_v63 }
 0x1fd   : > { %1421 = vadd.xlane.f32.xlu2 %v1401_v1 }
 0x1fe   : > { %v1337_v46 = vpop.xlane.xlu2 %1336 }
 0x1ff   : > { %v1370_v55 = vmul.f32 %v2566_v42, %v1337_v46 }
 0x201   : > { %v2600_v2 = vsub.f32 %v2536_v15, %v1370_v55 }
 0x203   : > { %v1402_v3 = vmul.f32 %v2600_v2, %v2600_v2 }
 0x205   : > { %1423 = vadd.xlane.f32.xlu0 %v1402_v3 }
 0x206   : > { %v1339_v4 = vpop.xlane.xlu0 %1338 }
 0x207   : > { %v1371_v11 = vmul.f32 %v2566_v42, %v1339_v4  ;;  %v2670_v4 = vld [vmem:[%s2788_s9] ss:$0 sm:$0xff] }
 0x209   : > { %v2606_v35 = vsub.f32 %v2539_v19, %v1371_v11 }
 0x20b   : > { %v1403_v5 = vmul.f32 %v2606_v35, %v2606_v35 }
 0x20d   : > { %1425 = vadd.xlane.f32.xlu1 %v1403_v5 }
 0x20e   : > { %v1341_v6 = vpop.xlane.xlu1 %1340 }
 0x20f   : > { %v1372_v7 = vmul.f32 %v2566_v42, %v1341_v6  ;;  %v2675_v6 = vld [vmem:[%s2789_s10] ss:$0 sm:$0xff] }
 0x211   : > { %v2612_v8 = vsub.f32 %v2542_v21, %v1372_v7 }
 0x213   : > { %v1404_v9 = vmul.f32 %v2612_v8, %v2612_v8 }
 0x215   : > { %1427 = vadd.xlane.f32.xlu2 %v1404_v9 }
 0x216   : > { %v1343_v10 = vpop.xlane.xlu2 %1342 }
 0x217   : > { %v1373_v59 = vmul.f32 %v2566_v42, %v1343_v10 }
 0x219   : > { %v2618_v13 = vsub.f32 %v2545_v23, %v1373_v59 }
 0x21b   : > { %v1405_v14 = vmul.f32 %v2618_v13, %v2618_v13 }
 0x21d   : > { %1429 = vadd.xlane.f32.xlu0 %v1405_v14 }
 0x21e   : > { %v1345_v15 = vpop.xlane.xlu0 %1344 }
 0x21f   : > { %v1374_v18 = vmul.f32 %v2566_v42, %v1345_v15 }
 0x221   : > { %v2624_v19 = vsub.f32 %v2548_v31, %v1374_v18 }
 0x223   : > { %v1406_v20 = vmul.f32 %v2624_v19, %v2624_v19 }
 0x225   : > { %1431 = vadd.xlane.f32.xlu1 %v1406_v20 }
 0x226   : > { %v1347_v21 = vpop.xlane.xlu1 %1346 }
 0x227   : > { %v1375_v22 = vmul.f32 %v2566_v42, %v1347_v21 }
 0x229   : > { %v2630_v23 = vsub.f32 %v2551_v25, %v1375_v22 }
 0x22b   : > { %v1407_v24 = vmul.f32 %v2630_v23, %v2630_v23 }
 0x22d   : > { %1433 = vadd.xlane.f32.xlu2 %v1407_v24  ;;  %v2107_v24 = vld [vmem:[%s2275_s13] sm:$0xff] }
 0x22e   : > { %v1349_v56 = vpop.xlane.xlu2 %1348 }
 0x22f   : > { %v1376_v36 = vmul.f32 %v2566_v42, %v1349_v56 }
 0x231   : > { %v2636_v31 = vsub.f32 %v2554_v40, %v1376_v36 }
 0x233   : > { %v1408_v61 = vmul.f32 %v2636_v31, %v2636_v31 }
 0x235   : > { %1435 = vadd.xlane.f32.xlu0 %v1408_v61 }
 0x236   : > { %v1351_v26 = vpop.xlane.xlu0 %1350 }
 0x237   : > { %v1377_v27 = vmul.f32 %v2566_v42, %v1351_v26 }
 0x239   : > { %v2642_v25 = vsub.f32 %v2557_v28, %v1377_v27 }
 0x23b   : > { %v1409_v29 = vmul.f32 %v2642_v25, %v2642_v25 }
 0x23d   : > { %1437 = vadd.xlane.f32.xlu1 %v1409_v29 }
 0x23e   : > { %v1353_v30 = vpop.xlane.xlu1 %1352 }
 0x23f   : > { %v1378_v32 = vmul.f32 %v2566_v42, %v1353_v30 }
 0x241   : > { %v2648_v40 = vsub.f32 %v2560_v33, %v1378_v32 }
 0x243   : > { %v1410_v34 = vmul.f32 %v2648_v40, %v2648_v40 }
 0x245   : > { %1439 = vadd.xlane.f32.xlu2 %v1410_v34 }
 0x246   : > { %v1355_v37 = vpop.xlane.xlu2 %1354 }
 0x247   : > { %v1379_v38 = vmul.f32 %v2566_v42, %v1355_v37 }
 0x249   : > { %v2654_v28 = vsub.f32 %v2563_v39, %v1379_v38 }
 0x24b   : > { %v1411_v43 = vmul.f32 %v2654_v28, %v2654_v28 }
 0x24d   : > { %1441 = vadd.xlane.f32.xlu0 %v1411_v43 }
 0x24e   : > { %v1357_v44 = vpop.xlane.xlu0 %1356 }
 0x24f   : > { %v1380_v0 = vmul.f32 %v2566_v42, %v1357_v44 }
 0x250   : > { %v1414_v47 = vpop.xlane.xlu1 %1413 }
 0x251   : > { %v2660_v33 = vsub.f32 %v2571_v45, %v1380_v0  ;;  %v1445_v57 = vmul.f32 %v1414_v47, %v2566_v42  ;;  %v2108_v47 = vld [vmem:[%s2275_s13 + $0x8] sm:$0xff] }
 0x253   : > { %v1461_v16 = vadd.f32 1e-05, %v1445_v57  ;;  %v1412_v49 = vmul.f32 %v2660_v33, %v2660_v33 }
 0x255   : > { %2075 = vrsqrt.f32 %v1461_v16  ;;  %1443 = vadd.xlane.f32.xlu1 %v1412_v49  ;;  %vm1483_vm2 = vweird.f32 %v1461_v16 }
 0x258   : > { %v1416_v39 = vpop.xlane.xlu2 %1415 }
 0x259   : > { %v1446_v50 = vmul.f32 %v1416_v39, %v2566_v42 }
 0x25b   : > { %v2076_v51 = vpop.eup %2075  ;;  %v1462_v53 = vadd.f32 1e-05, %v1446_v50 }
 0x25c   : > { %v1478_v54 = vmul.f32 %v2076_v51, %v1461_v16  ;;  %vm1484_vm1 = vweird.f32 %v2076_v51 }
 0x25d   : > { %2077 = vrsqrt.f32 %v1462_v53  ;;  %vm1485_vm3 = vmor %vm1483_vm2, %vm1484_vm1  ;;  %vm1493_vm5 = vweird.f32 %v1462_v53 }
 0x25e   : > { %v1479_v58 = vmul.f32 %v2076_v51, %v1478_v54 }
 0x260   : > { %v1480_v60 = vmul.f32 0.5, %v1479_v58  ;;  %v1418_v41 = vpop.xlane.xlu0 %1417 }
 0x261   : > { %v1447_v45 = vmul.f32 %v1418_v41, %v2566_v42 }
 0x262   : > { %v1481_v62 = vsub.f32 1.5, %v1480_v60 }
 0x263   : > { %v2078_v1 = vpop.eup %2077  ;;  %v1463_v46 = vadd.f32 1e-05, %v1447_v45 }
 0x264   : > { %v1482_v55 = vmul.f32 %v2076_v51, %v1481_v62  ;;  %v1488_v3 = vmul.f32 %v2078_v1, %v1462_v53  ;;  %vm1494_vm4 = vweird.f32 %v2078_v1 }
 0x265   : > { %2079 = vrsqrt.f32 %v1463_v46  ;;  %vm1495_vm6 = vmor %vm1493_vm5, %vm1494_vm4  ;;  %vm1503_vm8 = vweird.f32 %v1463_v46 }
 0x266   : > { %v1486_v11 = vsel %vm1485_vm3, %v2076_v51, %v1482_v55  ;;  %v1489_v5 = vmul.f32 %v2078_v1, %v1488_v3 }
 0x267   : > { %v1637_v7 = vmul.f32 %v1486_v11, %v2569_v12 }
 0x268   : > { %v1490_v9 = vmul.f32 0.5, %v1489_v5  ;;  %v1420_v10 = vpop.xlane.xlu1 %1419 }
 0x269   : > { %v1657_v59 = vmul.f32 %v2670_v4, %v1637_v7  ;;  %v1448_v14 = vmul.f32 %v1420_v10, %v2566_v42 }
 0x26a   : > { %v1491_v15 = vsub.f32 1.5, %v1490_v9 }
 0x26b   : > { %v2080_v18 = vpop.eup %2079  ;;  %v1677_v20 = vadd.f32 %v2675_v6, %v1657_v59  ;;  %v1464_v21 = vadd.f32 1e-05, %v1448_v14 }
 0x26c   : > { %v1492_v22 = vmul.f32 %v2078_v1, %v1491_v15  ;;  %v1498_v12 = vmul.f32 %v2080_v18, %v1463_v46  ;;  %vm1504_vm7 = vweird.f32 %v2080_v18 }
 0x26d   : > { %v1693_v56 = vadd.f32 %v2107_v24, %v1677_v20  ;;  %2081 = vrsqrt.f32 %v1464_v21  ;;  %vm1505_vm9 = vmor %vm1503_vm8, %vm1504_vm7  ;;  %vm1513_vm11 = vweird.f32 %v1464_v21 }
 0x26e   : > { %v1496_v36 = vsel %vm1495_vm6, %v2078_v1, %v1492_v22  ;;  %v1499_v61 = vmul.f32 %v2080_v18, %v1498_v12  ;;  %v2109_v1 = vld [vmem:[%s2275_s13 + $0x10] sm:$0xff] }
 0x26f   : > { %1709 = vst [vmem:[%s2685_s19] sm:$0xff] %v1693_v56  ;;  %v1638_v26 = vmul.f32 %v1496_v36, %v2577_v48 }
 0x270   : > { %v1500_v27 = vmul.f32 0.5, %v1499_v61  ;;  %v1422_v29 = vpop.xlane.xlu2 %1421 }
 0x271   : > { %v1658_v30 = vmul.f32 %v2670_v4, %v1638_v26  ;;  %v1449_v32 = vmul.f32 %v1422_v29, %v2566_v42 }
 0x272   : > { %v1501_v34 = vsub.f32 1.5, %v1500_v27 }
 0x273   : > { %v2082_v37 = vpop.eup %2081  ;;  %v1678_v38 = vadd.f32 %v2675_v6, %v1658_v30  ;;  %v1465_v43 = vadd.f32 1e-05, %v1449_v32 }
 0x274   : > { %v1502_v44 = vmul.f32 %v2080_v18, %v1501_v34  ;;  %v1508_v0 = vmul.f32 %v2082_v37, %v1464_v21  ;;  %vm1514_vm10 = vweird.f32 %v2082_v37  ;;  %v2110_v21 = vld [vmem:[%s2275_s13 + $0x18] sm:$0xff] }
 0x275   : > { %v1694_v57 = vadd.f32 %v2108_v47, %v1678_v38  ;;  %2083 = vrsqrt.f32 %v1465_v43  ;;  %vm1515_vm12 = vmor %vm1513_vm11, %vm1514_vm10  ;;  %vm1523_vm14 = vweird.f32 %v1465_v43  ;;  %v2111_v38 = vld [vmem:[%s2275_s13 + $0x20] sm:$0xff] }
 0x276   : > { %v1506_v48 = vsel %vm1505_vm9, %v2080_v18, %v1502_v44  ;;  %v1509_v16 = vmul.f32 %v2082_v37, %v1508_v0 }
 0x277   : > { %1710 = vst [vmem:[%s2685_s19 + $0x8] sm:$0xff] %v1694_v57  ;;  %v1639_v49 = vmul.f32 %v1506_v48, %v2582_v52 }
 0x278   : > { %v1510_v39 = vmul.f32 0.5, %v1509_v16  ;;  %v1424_v50 = vpop.xlane.xlu0 %1423 }
 0x279   : > { %v1659_v51 = vmul.f32 %v2670_v4, %v1639_v49  ;;  %v1450_v53 = vmul.f32 %v1424_v50, %v2566_v42 }
 0x27a   : > { %v1511_v54 = vsub.f32 1.5, %v1510_v39 }
 0x27b   : > { %v2084_v58 = vpop.eup %2083  ;;  %v1679_v60 = vadd.f32 %v2675_v6, %v1659_v51  ;;  %v1466_v41 = vadd.f32 1e-05, %v1450_v53 }
 0x27c   : > { %v1512_v45 = vmul.f32 %v2082_v37, %v1511_v54  ;;  %v1518_v62 = vmul.f32 %v2084_v58, %v1465_v43  ;;  %vm1524_vm13 = vweird.f32 %v2084_v58 }
 0x27d   : > { %v1695_v46 = vadd.f32 %v2109_v1, %v1679_v60  ;;  %2085 = vrsqrt.f32 %v1466_v41  ;;  %vm1525_vm15 = vmor %vm1523_vm14, %vm1524_vm13  ;;  %vm1533_vm1 = vweird.f32 %v1466_v41 }
 0x27e   : > { %v1516_v52 = vsel %vm1515_vm12, %v2082_v37, %v1512_v45  ;;  %v1519_v55 = vmul.f32 %v2084_v58, %v1518_v62 }
 0x27f   : > { %1711 = vst [vmem:[%s2685_s19 + $0x10] sm:$0xff] %v1695_v46  ;;  %v1640_v3 = vmul.f32 %v1516_v52, %v2588_v17 }
 0x280   : > { %v1520_v11 = vmul.f32 0.5, %v1519_v55  ;;  %v1426_v5 = vpop.xlane.xlu1 %1425 }
 0x281   : > { %v1660_v7 = vmul.f32 %v2670_v4, %v1640_v3  ;;  %v1451_v9 = vmul.f32 %v1426_v5, %v2566_v42 }
 0x282   : > { %v1521_v10 = vsub.f32 1.5, %v1520_v11 }
 0x283   : > { %v2086_v59 = vpop.eup %2085  ;;  %v1680_v14 = vadd.f32 %v2675_v6, %v1660_v7  ;;  %v1467_v15 = vadd.f32 1e-05, %v1451_v9 }
 0x284   : > { %v1522_v18 = vmul.f32 %v2084_v58, %v1521_v10  ;;  %v1528_v20 = vmul.f32 %v2086_v59, %v1466_v41  ;;  %vm1534_vm0 = vweird.f32 %v2086_v59  ;;  %v2113_v10 = vld [vmem:[%s2275_s13 + $0x30] sm:$0xff] }
 0x285   : > { %v1696_v22 = vadd.f32 %v2110_v21, %v1680_v14  ;;  %2087 = vrsqrt.f32 %v1467_v15  ;;  %vm1535_vm2 = vmor %vm1533_vm1, %vm1534_vm0  ;;  %vm1543_vm4 = vweird.f32 %v1467_v15 }
 0x286   : > { %v1526_v17 = vsel %vm1525_vm15, %v2084_v58, %v1522_v18  ;;  %v1529_v12 = vmul.f32 %v2086_v59, %v1528_v20  ;;  %v2112_v58 = vld [vmem:[%s2275_s13 + $0x28] sm:$0xff] }
 0x287   : > { %1712 = vst [vmem:[%s2685_s19 + $0x18] sm:$0xff] %v1696_v22  ;;  %v1641_v24 = vmul.f32 %v1526_v17, %v2594_v63 }
 0x288   : > { %v1530_v56 = vmul.f32 0.5, %v1529_v12  ;;  %v1428_v36 = vpop.xlane.xlu2 %1427 }
 0x289   : > { %v1661_v61 = vmul.f32 %v2670_v4, %v1641_v24  ;;  %v1452_v26 = vmul.f32 %v1428_v36, %v2566_v42 }
 0x28a   : > { %v1531_v27 = vsub.f32 1.5, %v1530_v56 }
 0x28b   : > { %v2088_v29 = vpop.eup %2087  ;;  %v1681_v30 = vadd.f32 %v2675_v6, %v1661_v61  ;;  %v1468_v32 = vadd.f32 1e-05, %v1452_v26  ;;  %v2114_v26 = vld [vmem:[%s2275_s13 + $0x38] sm:$0xff] }
 0x28c   : > { %v1532_v34 = vmul.f32 %v2086_v59, %v1531_v27  ;;  %v1538_v37 = vmul.f32 %v2088_v29, %v1467_v15  ;;  %vm1544_vm3 = vweird.f32 %v2088_v29 }
 0x28d   : > { %v1697_v43 = vadd.f32 %v2111_v38, %v1681_v30  ;;  %2089 = vrsqrt.f32 %v1468_v32  ;;  %vm1545_vm5 = vmor %vm1543_vm4, %vm1544_vm3  ;;  %vm1553_vm7 = vweird.f32 %v1468_v32 }
 0x28e   : > { %v1536_v63 = vsel %vm1535_vm2, %v2086_v59, %v1532_v34  ;;  %v1539_v44 = vmul.f32 %v2088_v29, %v1538_v37 }
 0x28f   : > { %1713 = vst [vmem:[%s2685_s19 + $0x20] sm:$0xff] %v1697_v43  ;;  %v1642_v0 = vmul.f32 %v1536_v63, %v2600_v2 }
 0x290   : > { %v1540_v47 = vmul.f32 0.5, %v1539_v44  ;;  %v1430_v57 = vpop.xlane.xlu0 %1429 }
 0x291   : > { %v1662_v48 = vmul.f32 %v2670_v4, %v1642_v0  ;;  %v1453_v16 = vmul.f32 %v1430_v57, %v2566_v42 }
 0x292   : > { %v1541_v49 = vsub.f32 1.5, %v1540_v47 }
 0x293   : > { %v2090_v39 = vpop.eup %2089  ;;  %v1682_v50 = vadd.f32 %v2675_v6, %v1662_v48  ;;  %v1469_v51 = vadd.f32 1e-05, %v1453_v16  ;;  %v2115_v48 = vld [vmem:[%s2275_s13 + $0x40] sm:$0xff] }
 0x294   : > { %v1542_v53 = vmul.f32 %v2088_v29, %v1541_v49  ;;  %v1548_v54 = vmul.f32 %v2090_v39, %v1468_v32  ;;  %vm1554_vm6 = vweird.f32 %v2090_v39 }
 0x295   : > { %v1698_v60 = vadd.f32 %v2112_v58, %v1682_v50  ;;  %2091 = vrsqrt.f32 %v1469_v51  ;;  %vm1555_vm8 = vmor %vm1553_vm7, %vm1554_vm6  ;;  %vm1563_vm10 = vweird.f32 %v1469_v51 }
 0x296   : > { %v1546_v2 = vsel %vm1545_vm5, %v2088_v29, %v1542_v53  ;;  %v1549_v41 = vmul.f32 %v2090_v39, %v1548_v54 }
 0x297   : > { %1714 = vst [vmem:[%s2685_s19 + $0x28] sm:$0xff] %v1698_v60  ;;  %v1643_v45 = vmul.f32 %v1546_v2, %v2606_v35 }
 0x298   : > { %v1550_v62 = vmul.f32 0.5, %v1549_v41  ;;  %v1432_v1 = vpop.xlane.xlu1 %1431 }
 0x299   : > { %v1663_v46 = vmul.f32 %v2670_v4, %v1643_v45  ;;  %v1454_v52 = vmul.f32 %v1432_v1, %v2566_v42  ;;  %v2116_v1 = vld [vmem:[%s2275_s13 + $0x48] sm:$0xff] }
 0x29a   : > { %v1551_v55 = vsub.f32 1.5, %v1550_v62 }
 0x29b   : > { %v2092_v3 = vpop.eup %2091  ;;  %v1683_v11 = vadd.f32 %v2675_v6, %v1663_v46  ;;  %v1470_v5 = vadd.f32 1e-05, %v1454_v52 }
 0x29c   : > { %v1552_v7 = vmul.f32 %v2090_v39, %v1551_v55  ;;  %v1558_v9 = vmul.f32 %v2092_v3, %v1469_v51  ;;  %vm1564_vm9 = vweird.f32 %v2092_v3 }
 0x29d   : > { %v1699_v59 = vadd.f32 %v2113_v10, %v1683_v11  ;;  %2093 = vrsqrt.f32 %v1470_v5  ;;  %vm1565_vm11 = vmor %vm1563_vm10, %vm1564_vm9  ;;  %vm1573_vm13 = vweird.f32 %v1470_v5 }
 0x29e   : > { %v1556_v35 = vsel %vm1555_vm8, %v2090_v39, %v1552_v7  ;;  %v1559_v14 = vmul.f32 %v2092_v3, %v1558_v9 }
 0x29f   : > { %1715 = vst [vmem:[%s2685_s19 + $0x30] sm:$0xff] %v1699_v59  ;;  %v1644_v15 = vmul.f32 %v1556_v35, %v2612_v8 }
 0x2a0   : > { %v1560_v18 = vmul.f32 0.5, %v1559_v14  ;;  %v1434_v20 = vpop.xlane.xlu2 %1433 }
 0x2a1   : > { %v1664_v21 = vmul.f32 %v2670_v4, %v1644_v15  ;;  %v1455_v22 = vmul.f32 %v1434_v20, %v2566_v42 }
 0x2a2   : > { %v1561_v17 = vsub.f32 1.5, %v1560_v18  ;;  %v2117_v18 = vld [vmem:[%s2275_s13 + $0x50] sm:$0xff] }
 0x2a3   : > { %v2094_v12 = vpop.eup %2093  ;;  %v1684_v24 = vadd.f32 %v2675_v6, %v1664_v21  ;;  %v1471_v56 = vadd.f32 1e-05, %v1455_v22 }
 0x2a4   : > { %v1562_v36 = vmul.f32 %v2092_v3, %v1561_v17  ;;  %v1568_v61 = vmul.f32 %v2094_v12, %v1470_v5  ;;  %vm1574_vm12 = vweird.f32 %v2094_v12 }
 0x2a5   : > { %v1700_v27 = vadd.f32 %v2114_v26, %v1684_v24  ;;  %2095 = vrsqrt.f32 %v1471_v56  ;;  %vm1575_vm14 = vmor %vm1573_vm13, %vm1574_vm12  ;;  %vm1583_vm0 = vweird.f32 %v1471_v56 }
 0x2a6   : > { %v1566_v8 = vsel %vm1565_vm11, %v2092_v3, %v1562_v36  ;;  %v1569_v29 = vmul.f32 %v2094_v12, %v1568_v61 }
 0x2a7   : > { %1716 = vst [vmem:[%s2685_s19 + $0x38] sm:$0xff] %v1700_v27  ;;  %v1645_v30 = vmul.f32 %v1566_v8, %v2618_v13 }
 0x2a8   : > { %v1570_v32 = vmul.f32 0.5, %v1569_v29  ;;  %v1436_v34 = vpop.xlane.xlu0 %1435 }
 0x2a9   : > { %v1665_v37 = vmul.f32 %v2670_v4, %v1645_v30  ;;  %v1456_v38 = vmul.f32 %v1436_v34, %v2566_v42  ;;  %v2118_v30 = vld [vmem:[%s2275_s13 + $0x58] sm:$0xff] }
 0x2aa   : > { %v1571_v43 = vsub.f32 1.5, %v1570_v32 }
 0x2ab   : > { %v2096_v63 = vpop.eup %2095  ;;  %v1685_v44 = vadd.f32 %v2675_v6, %v1665_v37  ;;  %v1472_v0 = vadd.f32 1e-05, %v1456_v38 }
 0x2ac   : > { %v1572_v47 = vmul.f32 %v2094_v12, %v1571_v43  ;;  %v1578_v57 = vmul.f32 %v2096_v63, %v1471_v56  ;;  %vm1584_vm15 = vweird.f32 %v2096_v63 }
 0x2ad   : > { %v1701_v16 = vadd.f32 %v2115_v48, %v1685_v44  ;;  %2097 = vrsqrt.f32 %v1472_v0  ;;  %vm1585_vm1 = vmor %vm1583_vm0, %vm1584_vm15  ;;  %vm1593_vm3 = vweird.f32 %v1472_v0 }
 0x2ae   : > { %v1576_v13 = vsel %vm1575_vm14, %v2094_v12, %v1572_v47  ;;  %v1579_v49 = vmul.f32 %v2096_v63, %v1578_v57 }
 0x2af   : > { %1717 = vst [vmem:[%s2685_s19 + $0x40] sm:$0xff] %v1701_v16  ;;  %v1646_v39 = vmul.f32 %v1576_v13, %v2624_v19 }
 0x2b0   : > { %v1580_v50 = vmul.f32 0.5, %v1579_v49  ;;  %v1438_v51 = vpop.xlane.xlu1 %1437  ;;  %v2119_v49 = vld [vmem:[%s2275_s13 + $0x60] sm:$0xff] }
 0x2b1   : > { %v1666_v53 = vmul.f32 %v2670_v4, %v1646_v39  ;;  %v1457_v54 = vmul.f32 %v1438_v51, %v2566_v42 }
 0x2b2   : > { %v1581_v58 = vsub.f32 1.5, %v1580_v50 }
 0x2b3   : > { %v2098_v60 = vpop.eup %2097  ;;  %v1686_v2 = vadd.f32 %v2675_v6, %v1666_v53  ;;  %v1473_v41 = vadd.f32 1e-05, %v1457_v54 }
 0x2b4   : > { %v1582_v45 = vmul.f32 %v2096_v63, %v1581_v58  ;;  %v1588_v62 = vmul.f32 %v2098_v60, %v1472_v0  ;;  %vm1594_vm2 = vweird.f32 %v2098_v60 }
 0x2b5   : > { %v1702_v46 = vadd.f32 %v2116_v1, %v1686_v2  ;;  %2099 = vrsqrt.f32 %v1473_v41  ;;  %vm1595_vm4 = vmor %vm1593_vm3, %vm1594_vm2  ;;  %vm1603_vm6 = vweird.f32 %v1473_v41 }
 0x2b6   : > { %v1586_v19 = vsel %vm1585_vm1, %v2096_v63, %v1582_v45  ;;  %v1589_v52 = vmul.f32 %v2098_v60, %v1588_v62  ;;  %v2120_v45 = vld [vmem:[%s2275_s13 + $0x68] sm:$0xff] }
 0x2b7   : > { %1718 = vst [vmem:[%s2685_s19 + $0x48] sm:$0xff] %v1702_v46  ;;  %v1647_v55 = vmul.f32 %v1586_v19, %v2630_v23 }
 0x2b8   : > { %v1590_v3 = vmul.f32 0.5, %v1589_v52  ;;  %v1440_v11 = vpop.xlane.xlu2 %1439 }
 0x2b9   : > { %v1667_v5 = vmul.f32 %v2670_v4, %v1647_v55  ;;  %v1458_v7 = vmul.f32 %v1440_v11, %v2566_v42 }
 0x2ba   : > { %v1591_v9 = vsub.f32 1.5, %v1590_v3 }
 0x2bb   : > { %v2100_v10 = vpop.eup %2099  ;;  %v1687_v59 = vadd.f32 %v2675_v6, %v1667_v5  ;;  %v1474_v35 = vadd.f32 1e-05, %v1458_v7  ;;  %v2121_v5 = vld [vmem:[%s2275_s13 + $0x70] sm:$0xff] }
 0x2bc   : > { %v1592_v14 = vmul.f32 %v2098_v60, %v1591_v9  ;;  %v1598_v15 = vmul.f32 %v2100_v10, %v1473_v41  ;;  %vm1604_vm5 = vweird.f32 %v2100_v10 }
 0x2bd   : > { %v1703_v20 = vadd.f32 %v2117_v18, %v1687_v59  ;;  %2101 = vrsqrt.f32 %v1474_v35  ;;  %vm1605_vm7 = vmor %vm1603_vm6, %vm1604_vm5  ;;  %vm1613_vm9 = vweird.f32 %v1474_v35 }
 0x2be   : > { %v1596_v23 = vsel %vm1595_vm4, %v2098_v60, %v1592_v14  ;;  %v1599_v21 = vmul.f32 %v2100_v10, %v1598_v15 }
 0x2bf   : > { %1719 = vst [vmem:[%s2685_s19 + $0x50] sm:$0xff] %v1703_v20  ;;  %v1648_v22 = vmul.f32 %v1596_v23, %v2636_v31 }
 0x2c0   : > { %v1600_v17 = vmul.f32 0.5, %v1599_v21  ;;  %v1442_v12 = vpop.xlane.xlu0 %1441 }
 0x2c1   : > { %v1668_v24 = vmul.f32 %v2670_v4, %v1648_v22  ;;  %v1459_v56 = vmul.f32 %v1442_v12, %v2566_v42 }
 0x2c2   : > { %v1601_v36 = vsub.f32 1.5, %v1600_v17 }
 0x2c3   : > { %v2102_v61 = vpop.eup %2101  ;;  %v1688_v26 = vadd.f32 %v2675_v6, %v1668_v24  ;;  %v1475_v27 = vadd.f32 1e-05, %v1459_v56 }
 0x2c4   : > { %v1602_v8 = vmul.f32 %v2100_v10, %v1601_v36  ;;  %v1608_v29 = vmul.f32 %v2102_v61, %v1474_v35  ;;  %vm1614_vm8 = vweird.f32 %v2102_v61  ;;  %v2122_v35 = vld [vmem:[%s2275_s13 + $0x78] sm:$0xff] }
 0x2c5   : > { %v1704_v32 = vadd.f32 %v2118_v30, %v1688_v26  ;;  %2103 = vrsqrt.f32 %v1475_v27  ;;  %vm1615_vm10 = vmor %vm1613_vm9, %vm1614_vm8  ;;  %vm1623_vm12 = vweird.f32 %v1475_v27 }
 0x2c6   : > { %v1606_v31 = vsel %vm1605_vm7, %v2100_v10, %v1602_v8  ;;  %v1609_v34 = vmul.f32 %v2102_v61, %v1608_v29 }
 0x2c7   : > { %1720 = vst [vmem:[%s2685_s19 + $0x58] sm:$0xff] %v1704_v32  ;;  %v1649_v37 = vmul.f32 %v1606_v31, %v2642_v25 }
 0x2c8   : > { %v1610_v38 = vmul.f32 0.5, %v1609_v34  ;;  %v1444_v43 = vpop.xlane.xlu1 %1443 }
 0x2c9   : > { %v1669_v63 = vmul.f32 %v2670_v4, %v1649_v37  ;;  %v1460_v44 = vmul.f32 %v1444_v43, %v2566_v42 }
 0x2ca   : > { %v1611_v0 = vsub.f32 1.5, %v1610_v38 }
 0x2cb   : > { %v2104_v47 = vpop.eup %2103  ;;  %v1689_v57 = vadd.f32 %v2675_v6, %v1669_v63  ;;  %v1476_v48 = vadd.f32 1e-05, %v1460_v44 }
 0x2cc   : > { %v1612_v16 = vmul.f32 %v2102_v61, %v1611_v0  ;;  %v1618_v13 = vmul.f32 %v2104_v47, %v1475_v27  ;;  %vm1624_vm11 = vweird.f32 %v2104_v47 }
 0x2cd   : > { %v1705_v39 = vadd.f32 %v2119_v49, %v1689_v57  ;;  %2105 = vrsqrt.f32 %v1476_v48  ;;  %vm1625_vm13 = vmor %vm1623_vm12, %vm1624_vm11  ;;  %vm1633_vm15 = vweird.f32 %v1476_v48 }
 0x2ce   : > { %v1616_v25 = vsel %vm1615_vm10, %v2102_v61, %v1612_v16  ;;  %v1619_v50 = vmul.f32 %v2104_v47, %v1618_v13 }
 0x2cf   : > { %1721 = vst [vmem:[%s2685_s19 + $0x60] sm:$0xff] %v1705_v39  ;;  %v1650_v42 = vmul.f32 %v1616_v25, %v2648_v40 }
 0x2d0   : > { %v1620_v51 = vmul.f32 0.5, %v1619_v50 }
 0x2d1   : > { %v1670_v53 = vmul.f32 %v2670_v4, %v1650_v42 }
 0x2d2   : > { %v1621_v54 = vsub.f32 1.5, %v1620_v51 }
 0x2d3   : > { %v2106_v58 = vpop.eup %2105  ;;  %v1690_v60 = vadd.f32 %v2675_v6, %v1670_v53 }
 0x2d4   : > { %v1622_v2 = vmul.f32 %v2104_v47, %v1621_v54  ;;  %v1628_v41 = vmul.f32 %v2106_v58, %v1476_v48  ;;  %vm1634_vm14 = vweird.f32 %v2106_v58 }
 0x2d5   : > { %v1706_v62 = vadd.f32 %v2120_v45, %v1690_v60  ;;  %vm1635_vm0 = vmor %vm1633_vm15, %vm1634_vm14 }
 0x2d6   : > { %v1626_v1 = vsel %vm1625_vm13, %v2104_v47, %v1622_v2  ;;  %v1629_v46 = vmul.f32 %v2106_v58, %v1628_v41 }
 0x2d7   : > { %1722 = vst [vmem:[%s2685_s19 + $0x68] sm:$0xff] %v1706_v62  ;;  %v1651_v40 = vmul.f32 %v1626_v1, %v2654_v28 }
 0x2d8   : > { %v1630_v19 = vmul.f32 0.5, %v1629_v46 }
 0x2d9   : > { %v1671_v52 = vmul.f32 %v2670_v4, %v1651_v40 }
 0x2da   : > { %v1631_v55 = vsub.f32 1.5, %v1630_v19 }
 0x2db   : > { %v1691_v3 = vadd.f32 %v2675_v6, %v1671_v52 }
 0x2dc   : > { %v1632_v11 = vmul.f32 %v2106_v58, %v1631_v55 }
 0x2dd   : > { %v1707_v7 = vadd.f32 %v2121_v5, %v1691_v3 }
 0x2de   : > { %v1636_v9 = vsel %vm1635_vm0, %v2106_v58, %v1632_v11 }
 0x2df   : > { %1723 = vst [vmem:[%s2685_s19 + $0x70] sm:$0xff] %v1707_v7  ;;  %v1652_v10 = vmul.f32 %v1636_v9, %v2660_v33 }
 0x2e1   : > { %v1672_v28 = vmul.f32 %v2670_v4, %v1652_v10 }
 0x2e3   : > { %v1692_v59 = vadd.f32 %v2675_v6, %v1672_v28 }
 0x2e5   : > { %v1708_v14 = vadd.f32 %v2122_v35, %v1692_v59 }
 0x2e7   : > { %1724 = vst [vmem:[%s2685_s19 + $0x78] sm:$0xff] %v1708_v14 }
 0x2e8 PF: > { %s21_s17 = sadd.s32 1, %s2129_s17  }
 0x2e9   : > { %p18_p4 = scmp.ge.s32.totalorder %s21_s17, 6  }
 0x2eb   :  { %20 = sbr.rel (!%p18_p4) target bundleno = 1 (0x1), region = 100 }

// kernel: graphcast_processor_forward.7
= control target key start
LH: loop header
LB: loop body
LE: loop exit
PB: predicated region body
PF: predicated region fallthrough
CT: control target
= control target key end

     0   :  { %14 = vsyncpa [#allocation3], 0  ;;  %s2812_s0 = inlined_call_operand.vmem [shape: f32[256,128], index: 0, kind: input, shape index: {}]   ;;  %s2813_s1 = inlined_call_operand.vmem [shape: f32[256,128], index: 1, kind: input, shape index: {}]   ;;  %s2814_s2 = inlined_call_operand.vmem [shape: bf16[128,128], index: 2, kind: input, shape index: {}]   ;;  %s2815_s3 = inlined_call_operand.vmem [shape: bf16[128,128], index: 3, kind: input, shape index: {}]   ;;  %s2816_s4 = inlined_call_operand.vmem [shape: f32[1,128], index: 4, kind: input, shape index: {}, may-alias: {4,6,8}]   ;;  %s2817_s5 = inlined_call_operand.vmem [shape: bf16[128,128], index: 5, kind: input, shape index: {}]   ;;  %s2818_s6 = inlined_call_operand.vmem [shape: f32[1,128], index: 6, kind: input, shape index: {}, may-alias: {4,6,8}]   ;;  %s2819_s7 = inlined_call_operand.vmem [shape: f32[1,128], index: 7, kind: input, shape index: {}]   ;;  %s2820_s8 = inlined_call_operand.vmem [shape: f32[1,128], index: 8, kind: input, shape index: {}, may-alias: {4,6,8}]   ;;  %s2821_s9 = inlined_call_operand.hbm [shape: f32[256,128], index: 9, kind: output, shape index: {}]  }
   0x1   :  { %16 = vsyncpa [#allocation3 + $0x1], 0  ;;  %s2036_s30 = smov 0   ;;  %s2038_s10 = smov 0  }
   0x2   :  { %s2040_s11 = smov 0   ;;  %s2042_s12 = smov 0  }
   0x3 LB: > { %s2057_s13 = sadd.s32 4294967295, %s1981_s12   ;;  %s1584_s14 = sadd.s32 4294967294, %s1981_s12   ;;  %s1981_s12 = sphi %s2042_s12, %s2849_s12   ;;  %s1977_s11 = sphi %s2040_s11, %s2848_s11   ;;  %s1973_s10 = sphi %s2038_s10, %s2847_s10   ;;  %s1969_s30 = sphi %s2036_s30, %s2846_s30  }
   0x4   : > { %s2061_s15 = sadd.s32 1, %s1981_s12   ;;  %s228_s16 = sadd.s32 1, %s1977_s11 }
   0x5   : > { %s225_s17 = ssub.s32 %s1981_s12, %s2061_s15  ;;  %p238_p0 = scmp.ne.s32.totalorder %s1977_s11, %s1973_s10 }
   0x6   : > { %p226_p1 = scmp.eq.s32.totalorder %s225_s17, 0  ;;  %p239_p2 = scmp.eq.s32.totalorder %s2057_s13, 1 }
   0x7   : > { %p244_p3 = scmp.ne.s32.totalorder %s1973_s10, %s1969_s30  ;;  %p245_p4 = scmp.eq.s32.totalorder %s1584_s14, 1 }
   0x8   : > { %s2072_s18 = scalar_select %p226_p1, %s1977_s11, %s228_s16  }
   0x9   : > { %p2074_p5 = por %p239_p2, %p238_p0  ;;  %p2078_p6 = por %p245_p4, %p244_p3 }
   0xa   : > { %p1587_p7 = scmp.ge.s32.totalorder %s1981_s12, 1  ;;  %p302_p8 = scmp.lt.s32.totalorder %s1981_s12, 3 }
   0xc   : > { %p303_p9 = pnand %p1587_p7, %p302_p8 }
   0xd   : > { %s1589_s21 = sshll.u32 (!%p303_p9), %s2057_s13, 4  ;;  %s1734_s16 = sshll.u32 (!%p303_p9), %s2057_s13, 7 }
   0xe   : > { %306 = sbr.rel (%p303_p9) target bundleno = 724 (0x2d4), region = 56  ;;  %p344_p10 = scmp.lt.s32.totalorder (!%p303_p9), %s1589_s21, 31 }
   0xf   : > { %s1506_s24 = scalar_lea.hbm (!%p303_p9), %s2821_s9, %s1734_s16 }
  0x10   : > { %s1509_s26 = sshll.u32 (!%p303_p9), %s1506_s24, 4  ;;  %s1510_s26 = int_to_ptr.hbm [resolvable:$true] %s1509_s26 }
  0x11   : > { %s1933_s27 = sshra.s32 (!%p303_p9), %s1510_s26, 4  ;;  %s1934_s27 = int_to_ptr.hbm [resolvable:$true] %s1933_s27 }
  0x12   : > { %s1935_s29 = scalar_lea.hbm (!%p303_p9), %s1934_s27, 128  ;;  %p1940_p0 = scmp.lt.s32.totalorder (!%p303_p9), %s1934_s27, %s2821_s9 }
  0x13   : > { %v1725_v0 = vld [vmem:[%s2815_s3 + $0x38] sm:$0xff]  ;;  %v1724_v2 = vld [vmem:[%s2815_s3 + $0x30] sm:$0xff]  ;;  %v1723_v4 = vld [vmem:[%s2815_s3 + $0x28] sm:$0xff]  ;;  %s2851_s21 = smov (!%p344_p10, %s1589_s21), 31  ;;  %p1936_p11 = scmp.ne.s32.totalorder %s1934_s27, %s1935_s29 }
  0x14   : > { %v1717_v1 = vld [vmem:[%s2814_s2 + $0x38] sm:$0xff]  ;;  %484 = vmatpush.bf16.msra.mxu0 %v1725_v0  ;;  %1735 = vmatpush.bf16.msra.mxu3 %v1725_v0  ;;  %v1716_v3 = vld [vmem:[%s2814_s2 + $0x30] sm:$0xff]  ;;  %v1715_v5 = vld [vmem:[%s2814_s2 + $0x28] sm:$0xff]  ;;  %s1590_s23 = sshll.u32 %s2851_s21, 3 }
  0x15   : > { %581 = vmatpush.bf16.msra.mxu1 %v1717_v1  ;;  %v1722_v6 = vld [vmem:[%s2815_s3 + $0x20] sm:$0xff]  ;;  %v1721_v8 = vld [vmem:[%s2815_s3 + $0x18] sm:$0xff]  ;;  %v1720_v10 = vld [vmem:[%s2815_s3 + $0x10] sm:$0xff]  ;;  %s2127_s28 = scalar_lea.vmem %s2813_s1, %s1590_s23  ;;  %s2135_s17 = scalar_lea.vmem %s2812_s0, %s1590_s23 }
  0x16   : > { %v1714_v7 = vld [vmem:[%s2814_s2 + $0x20] sm:$0xff]  ;;  %v1713_v9 = vld [vmem:[%s2814_s2 + $0x18] sm:$0xff]  ;;  %v1712_v11 = vld [vmem:[%s2814_s2 + $0x10] sm:$0xff]  ;;  %s340_s23 = sand.u32 1, %s1973_s10   ;;  %p1937_p12 = pnand %p1936_p11, %p2074_p5 }
  0x17   : > { %v1719_v12 = vld [vmem:[%s2815_s3 + $0x8] sm:$0xff]  ;;  %v1718_v14 = vld [vmem:[%s2815_s3] sm:$0xff]  ;;  %v398_v25 = vld [vmem:[%s2127_s28 + $0x10] sm:$0xff]  ;;  %s1588_s14 = sshll.u32 %s340_s23, 7  ;;  %s1495_s13 = scalar_lea.sflag [#allocation3], %s340_s23 }
  0x18   : > { %485 = vmatpush.bf16.msra.mxu0 %v1724_v2  ;;  %1736 = vmatpush.bf16.msra.mxu3 %v1724_v2  ;;  %v1711_v13 = vld [vmem:[%s2814_s2 + $0x8] sm:$0xff]  ;;  %v396_v15 = vld [vmem:[%s2127_s28] sm:$0xff]  ;;  %v399_v26 = vld [vmem:[%s2127_s28 + $0x18] sm:$0xff]  ;;  %s2668_s21 = scalar_lea.vmem [#allocation2], %s1588_s14  ;;  %p1938_p13 = pneg %p1937_p12 }
  0x19   : > { %582 = vmatpush.bf16.msra.mxu1 %v1716_v3  ;;  %v397_v16 = vld [vmem:[%s2127_s28 + $0x8] sm:$0xff]  ;;  %v408_v17 = vld [vmem:[%s2127_s28 + $0x60] sm:$0xff]  ;;  %v410_v27 = vld [vmem:[%s2127_s28 + $0x70] sm:$0xff]  ;;  %v413_v31 = vpack.c.bf16 %v399_v26, %v398_v25  ;;  %s1507_s25 = sshll.u32 %s2668_s21, 4  ;;  %s1508_s25 = int_to_ptr.vmem [resolvable:$true] %s1507_s25 }
  0x1a   : > { %v409_v18 = vld [vmem:[%s2127_s28 + $0x68] sm:$0xff]  ;;  %v1710_v19 = vld [vmem:[%s2814_s2] sm:$0xff]  ;;  %v412_v22 = vpack.c.bf16 %v397_v16, %v396_v15  ;;  %v411_v28 = vld [vmem:[%s2127_s28 + $0x78] sm:$0xff] }
  0x1b   : > { %v356_v20 = vld [vmem:[%s2135_s17] sm:$0xff]  ;;  %v357_v21 = vld [vmem:[%s2135_s17 + $0x8] sm:$0xff]  ;;  %v418_v23 = vpack.c.bf16 %v409_v18, %v408_v17  ;;  %v358_v29 = vld [vmem:[%s2135_s17 + $0x10] sm:$0xff]  ;;  %v419_v32 = vpack.c.bf16 %v411_v28, %v410_v27 }
  0x1c   : > { %486 = vmatpush.bf16.msra.mxu0 %v1723_v4  ;;  %1737 = vmatpush.bf16.msra.mxu3 %v1723_v4  ;;  %v372_v24 = vpack.c.bf16 %v357_v21, %v356_v20  ;;  %v359_v30 = vld [vmem:[%s2135_s17 + $0x18] sm:$0xff]  ;;  %v400_v34 = vld [vmem:[%s2127_s28 + $0x20] sm:$0xff]  ;;  %v401_v35 = vld [vmem:[%s2127_s28 + $0x28] sm:$0xff] }
  0x1d   : > { %583 = vmatpush.bf16.msra.mxu1 %v1715_v5  ;;  %v373_v33 = vpack.c.bf16 %v359_v30, %v358_v29  ;;  %v368_v36 = vld [vmem:[%s2135_s17 + $0x60] sm:$0xff]  ;;  %v369_v37 = vld [vmem:[%s2135_s17 + $0x68] sm:$0xff]  ;;  %v414_v40 = vpack.c.bf16 %v401_v35, %v400_v34  ;;  %v402_v43 = vld [vmem:[%s2127_s28 + $0x30] sm:$0xff] }
  0x1e   : > { %v360_v38 = vld [vmem:[%s2135_s17 + $0x20] sm:$0xff]  ;;  %v361_v39 = vld [vmem:[%s2135_s17 + $0x28] sm:$0xff]  ;;  %v378_v41 = vpack.c.bf16 %v369_v37, %v368_v36  ;;  %v403_v44 = vld [vmem:[%s2127_s28 + $0x38] sm:$0xff] }
  0x1f   : > { %v374_v42 = vpack.c.bf16 %v361_v39, %v360_v38  ;;  %v370_v45 = vld [vmem:[%s2135_s17 + $0x70] sm:$0xff]  ;;  %v371_v46 = vld [vmem:[%s2135_s17 + $0x78] sm:$0xff]  ;;  %v415_v49 = vpack.c.bf16 %v403_v44, %v402_v43  ;;  %v404_v52 = vld [vmem:[%s2127_s28 + $0x40] sm:$0xff] }
  0x20   : > { %487 = vmatpush.bf16.msra.mxu0 %v1722_v6  ;;  %1738 = vmatpush.bf16.msra.mxu3 %v1722_v6  ;;  %v362_v47 = vld [vmem:[%s2135_s17 + $0x30] sm:$0xff]  ;;  %v363_v48 = vld [vmem:[%s2135_s17 + $0x38] sm:$0xff]  ;;  %v379_v50 = vpack.c.bf16 %v371_v46, %v370_v45  ;;  %v405_v53 = vld [vmem:[%s2127_s28 + $0x48] sm:$0xff] }
  0x21   : > { %584 = vmatpush.bf16.msra.mxu1 %v1714_v7  ;;  %v375_v51 = vpack.c.bf16 %v363_v48, %v362_v47  ;;  %v364_v54 = vld [vmem:[%s2135_s17 + $0x40] sm:$0xff]  ;;  %v365_v55 = vld [vmem:[%s2135_s17 + $0x48] sm:$0xff]  ;;  %v416_v56 = vpack.c.bf16 %v405_v53, %v404_v52  ;;  %v406_v58 = vld [vmem:[%s2127_s28 + $0x50] sm:$0xff] }
  0x22   : > { %v376_v57 = vpack.c.bf16 %v365_v55, %v364_v54  ;;  %v407_v59 = vld [vmem:[%s2127_s28 + $0x58] sm:$0xff]  ;;  %v366_v60 = vld [vmem:[%s2135_s17 + $0x50] sm:$0xff]  ;;  %v1731_v2 = vld [vmem:[%s2817_s5 + $0x28] sm:$0xff] }
  0x23   : > { %v367_v61 = vld [vmem:[%s2135_s17 + $0x58] sm:$0xff]  ;;  %v417_v62 = vpack.c.bf16 %v407_v59, %v406_v58  ;;  %v2193_v6 = vld [vmem:[%s2816_s4] ss:$0 sm:$0xff]  ;;  %s1939_s17 = scalar_lea.hbm %s2821_s9, 256 }
  0x24   : > { %488 = vmatpush.bf16.msra.mxu0 %v1721_v8  ;;  %1739 = vmatpush.bf16.msra.mxu3 %v1721_v8  ;;  %v377_v63 = vpack.c.bf16 %v367_v61, %v366_v60  ;;  %v1733_v0 = vld [vmem:[%s2817_s5 + $0x38] sm:$0xff]  ;;  %v1728_v8 = vld [vmem:[%s2817_s5 + $0x10] sm:$0xff]  ;;  %v1726_v16 = vld [vmem:[%s2817_s5] sm:$0xff]  ;;  %p1941_p1 = scmp.lt.s32.totalorder %s1939_s17, %s1935_s29 }
  0x25   : > { %585 = vmatpush.bf16.msra.mxu1 %v1713_v9  ;;  %1046 = vmatpush.bf16.msra.mxu2 %v1733_v0  ;;  %v1729_v4 = vld [vmem:[%s2817_s5 + $0x18] sm:$0xff] }
  0x26   : > { %p1942_p2 = por %p1941_p1, %p1940_p0 }
  0x28   : > { %489 = vmatpush.bf16.msra.mxu0 %v1720_v10  ;;  %1740 = vmatpush.bf16.msra.mxu3 %v1720_v10  ;;  %p1943_p3 = pnand %p1942_p2, %p1938_p13 }
  0x29   : > { %586 = vmatpush.bf16.msra.mxu1 %v1712_v11 }
  0x2c   : > { %490 = vmatpush.bf16.msra.mxu0 %v1719_v12  ;;  %1741 = vmatpush.bf16.msra.mxu3 %v1719_v12 }
  0x2d   : > { %587 = vmatpush.bf16.msra.mxu1 %v1711_v13 }
  0x30   : > { %491 = vmatpush.bf16.msra.mxu0 %v1718_v14  ;;  %1742 = vmatpush.bf16.msra.mxu3 %v1718_v14 }
  0x31   : > { %588 = vmatpush.bf16.msra.mxu1 %v1710_v19 }
  0x33   : > { %492 = vmatmul.bf16.vlgmr.msra.gmra.mxu0 %v412_v22  ;;  %522 = vmatmul.bf16.vlgmr.msra.gmra.mxu3 %v418_v23 }
  0x34   : > { %1743 = vmatpush.bf16.msrb.mxu3 %v1717_v1  ;;  %589 = vmatmul.bf16.vlgmr.msra.gmra.mxu1 %v372_v24  ;;  %v1732_v1 = vld [vmem:[%s2817_s5 + $0x30] sm:$0xff] }
  0x35   : > { %1047 = vmatpush.bf16.msra.mxu2 %v1732_v1 }
  0x38   : > { %1744 = vmatpush.bf16.msrb.mxu3 %v1716_v3  ;;  %v1730_v3 = vld [vmem:[%s2817_s5 + $0x20] sm:$0xff] }
  0x39   : > { %1048 = vmatpush.bf16.msra.mxu2 %v1731_v2 }
  0x3c   : > { %1745 = vmatpush.bf16.msrb.mxu3 %v1715_v5 }
  0x3d   : > { %1049 = vmatpush.bf16.msra.mxu2 %v1730_v3 }
  0x40   : > { %1746 = vmatpush.bf16.msrb.mxu3 %v1714_v7 }
  0x41   : > { %1050 = vmatpush.bf16.msra.mxu2 %v1729_v4 }
  0x43   : > { %497 = vmatmul.bf16.gmra.mxu0 %v413_v31  ;;  %527 = vmatmul.bf16.gmra.mxu3 %v419_v32 }
  0x44   : > { %1747 = vmatpush.bf16.msrb.mxu3 %v1713_v9  ;;  %594 = vmatmul.bf16.gmra.mxu1 %v373_v33 }
  0x45   : > { %1051 = vmatpush.bf16.msra.mxu2 %v1728_v8 }
  0x48   : > { %1748 = vmatpush.bf16.msrb.mxu3 %v1712_v11  ;;  %v1727_v11 = vld [vmem:[%s2817_s5 + $0x8] sm:$0xff] }
  0x49   : > { %1052 = vmatpush.bf16.msra.mxu2 %v1727_v11 }
  0x4c   : > { %1749 = vmatpush.bf16.msrb.mxu3 %v1711_v13 }
  0x4d   : > { %1053 = vmatpush.bf16.msra.mxu2 %v1726_v16 }
  0x50   : > { %1750 = vmatpush.bf16.msrb.mxu3 %v1710_v19 }
  0x53   : > { %502 = vmatmul.bf16.gmra.mxu0 %v414_v40  ;;  %619 = vmatmul.bf16.vlgmr.msrb.gmra.mxu3 %v378_v41 }
  0x54   : > { %599 = vmatmul.bf16.gmra.mxu1 %v374_v42  ;;  %1751 = vmatpush.bf16.msra.mxu3 %v1733_v0 }
  0x58   : > { %1752 = vmatpush.bf16.msra.mxu3 %v1732_v1 }
  0x5c   : > { %1753 = vmatpush.bf16.msra.mxu3 %v1731_v2 }
  0x60   : > { %1754 = vmatpush.bf16.msra.mxu3 %v1730_v3 }
  0x63   : > { %507 = vmatmul.bf16.gmra.mxu0 %v415_v49  ;;  %624 = vmatmul.bf16.gmra.mxu3 %v379_v50 }
  0x64   : > { %604 = vmatmul.bf16.gmra.mxu1 %v375_v51  ;;  %1755 = vmatpush.bf16.msra.mxu3 %v1729_v4 }
  0x68   : > { %1756 = vmatpush.bf16.msra.mxu3 %v1728_v8 }
  0x6c   : > { %1757 = vmatpush.bf16.msra.mxu3 %v1727_v11 }
  0x70   : > { %1758 = vmatpush.bf16.msra.mxu3 %v1726_v16 }
  0x73   : > { %512 = vmatmul.bf16.gmra.mxu0 %v416_v56 }
  0x74   : > { %609 = vmatmul.bf16.gmra.mxu1 %v376_v57 }
  0x83   : > { %517 = vmatmul.bf16.gmra.mxu0 %v417_v62 }
  0x84   : > { %614 = vmatmul.bf16.gmra.mxu1 %v377_v63 }
  0xb0   : > { %v493_v5 = vpop.f32.mrf.mxu0 }
  0xb1   : > { %v590_v7 = vpop.f32.mrf.mxu1 }
  0xb2   : > { %v591_v9 = vadd.f32 %v590_v7, %v493_v5 }
  0xb4   : > { %v2199_v10 = vadd.f32 %v2193_v6, %v591_v9 }
  0xb6   : > { %v1657_v12 = vmul.f32 -1.442695, %v2199_v10  ;;  %v2205_v13 = vpop.f32.mrf.mxu3 }
  0xb8   : > { %1805 = vpow2.f32 %v1657_v12  ;;  %v495_v14 = vpop.f32.mrf.mxu0 }
  0xb9   : > { %v592_v15 = vpop.f32.mrf.mxu1 }
  0xba   : > { %v593_v17 = vadd.f32 %v592_v15, %v495_v14 }
  0xbc   : > { %v2211_v18 = vadd.f32 %v2193_v6, %v593_v17 }
  0xbe   : > { %v1806_v19 = vpop.eup %1805  ;;  %v1658_v20 = vmul.f32 -1.442695, %v2211_v18  ;;  %v2214_v21 = vpop.f32.mrf.mxu3 }
  0xbf   : > { %v698_v22 = vadd.f32 1.0, %v1806_v19 }
  0xc0   : > { %1807 = vpow2.f32 %v1658_v20  ;;  %v498_v23 = vpop.f32.mrf.mxu0 }
  0xc1   : > { %1809 = vrcp.f32 %v698_v22  ;;  %v595_v24 = vpop.f32.mrf.mxu1  ;;  %v725_v48 = vand.u32 2147483648, %v698_v22  ;;  %vm719_vm1 = vweird.f32 %v698_v22  ;;  %v723_v50 = vand.u32 2147483647, %v698_v22 }
  0xc2   : > { %v596_v25 = vadd.f32 %v595_v24, %v498_v23 }
  0xc3   : > { %v726_v58 = vor.u32 1.1754944e-38, %v725_v48  ;;  %vm724_vm4 = vcmp.eq.f32.partialorder %v723_v50, 8.507059e+37 }
  0xc4   : > { %v2217_v26 = vadd.f32 %v2193_v6, %v596_v25 }
  0xc6   : > { %v1808_v27 = vpop.eup %1807  ;;  %v1659_v28 = vmul.f32 -1.442695, %v2217_v26  ;;  %v2220_v29 = vpop.f32.mrf.mxu3 }
  0xc7   : > { %v1810_v30 = vpop.eup %1809  ;;  %v699_v31 = vadd.f32 1.0, %v1808_v27 }
  0xc8   : > { %1811 = vpow2.f32 %v1659_v28  ;;  %v500_v32 = vpop.f32.mrf.mxu0  ;;  %v715_v33 = vmul.f32 %v1810_v30, %v698_v22  ;;  %vm720_vm0 = vweird.f32 %v1810_v30 }
  0xc9   : > { %1813 = vrcp.f32 %v699_v31  ;;  %v597_v34 = vpop.f32.mrf.mxu1  ;;  %vm2231_vm2 = vmor %vm719_vm1, %vm720_vm0  ;;  %v738_v53 = vand.u32 2147483647, %v699_v31  ;;  %v740_v54 = vand.u32 2147483648, %v699_v31  ;;  %vm734_vm5 = vweird.f32 %v699_v31 }
  0xca   : > { %v598_v35 = vadd.f32 %v597_v34, %v500_v32  ;;  %v716_v36 = vsub.f32 1.0, %v715_v33 }
  0xcb   : > { %v741_v3 = vor.u32 1.1754944e-38, %v740_v54  ;;  %vm739_vm7 = vcmp.eq.f32.partialorder %v738_v53, 8.507059e+37 }
  0xcc   : > { %v2223_v37 = vadd.f32 %v2193_v6, %v598_v35  ;;  %v717_v38 = vmul.f32 %v1810_v30, %v716_v36 }
  0xce   : > { %v1812_v39 = vpop.eup %1811  ;;  %v1660_v40 = vmul.f32 -1.442695, %v2223_v37  ;;  %v2226_v41 = vpop.f32.mrf.mxu3  ;;  %v718_v45 = vadd.f32 %v1810_v30, %v717_v38 }
  0xcf   : > { %v1814_v42 = vpop.eup %1813  ;;  %v2228_v43 = vadd.f32 1.0, %v1812_v39 }
  0xd0   : > { %1815 = vpow2.f32 %v1660_v40  ;;  %v503_v44 = vpop.f32.mrf.mxu0  ;;  %v730_v46 = vmul.f32 %v1814_v42, %v699_v31  ;;  %v722_v56 = vsel %vm2231_vm2, %v1810_v30, %v718_v45  ;;  %vm735_vm3 = vweird.f32 %v1814_v42 }
  0xd1   : > { %1817 = vrcp.f32 %v2228_v43  ;;  %v600_v47 = vpop.f32.mrf.mxu1  ;;  %v727_v2 = vsel %vm724_vm4, %v726_v58, %v722_v56  ;;  %vm736_vm6 = vmor %vm734_vm5, %vm735_vm3  ;;  %v753_v28 = vand.u32 2147483647, %v2228_v43  ;;  %v755_v35 = vand.u32 2147483648, %v2228_v43 }
  0xd2   : > { %v601_v49 = vadd.f32 %v600_v47, %v503_v44  ;;  %v731_v51 = vsub.f32 1.0, %v730_v46  ;;  %vm749_vm9 = vweird.f32 %v2228_v43 }
  0xd3   : > { %vm754_vm11 = vcmp.eq.f32.partialorder %v753_v28, 8.507059e+37 }
  0xd4   : > { %v2236_v55 = vadd.f32 %v2193_v6, %v601_v49  ;;  %v732_v57 = vmul.f32 %v1814_v42, %v731_v51  ;;  %v756_v49 = vor.u32 1.1754944e-38, %v755_v35 }
  0xd6   : > { %v1816_v59 = vpop.eup %1815  ;;  %v1661_v60 = vmul.f32 -1.442695, %v2236_v55  ;;  %v620_v61 = vpop.f32.mrf.mxu3  ;;  %v733_v62 = vadd.f32 %v1814_v42, %v732_v57 }
  0xd7   : > { %v2241_v63 = vpop.eup %1817  ;;  %v2243_v0 = vadd.f32 1.0, %v1816_v59  ;;  %v621_v1 = vadd.f32 %v620_v61, %v2205_v13  ;;  %v954_v13 = vmul.f32 %v727_v2, %v2199_v10 }
  0xd8   : > { %1819 = vpow2.f32 %v1661_v60  ;;  %v505_v4 = vpop.f32.mrf.mxu0  ;;  %v737_v5 = vsel %vm736_vm6, %v1814_v42, %v733_v62  ;;  %v745_v7 = vmul.f32 %v2241_v63, %v2228_v43  ;;  %vm750_vm8 = vweird.f32 %v2241_v63 }
  0xd9   : > { %1821 = vrcp.f32 %v2243_v0  ;;  %v2250_v8 = vadd.f32 %v2193_v6, %v621_v1  ;;  %v602_v9 = vpop.f32.mrf.mxu1  ;;  %v742_v11 = vsel %vm739_vm7, %v741_v3, %v737_v5  ;;  %v768_v36 = vand.u32 2147483647, %v2243_v0  ;;  %vm2280_vm10 = vmor %vm749_vm9, %vm750_vm8 }
  0xda   : > { %v603_v12 = vadd.f32 %v602_v9, %v505_v4  ;;  %v955_v14 = vmul.f32 %v742_v11, %v2211_v18  ;;  %v746_v15 = vsub.f32 1.0, %v745_v7  ;;  %v770_v46 = vand.u32 2147483648, %v2243_v0 }
  0xdb   : > { %v1669_v16 = vmul.f32 -1.442695, %v2250_v8  ;;  %vm764_vm13 = vweird.f32 %v2243_v0  ;;  %vm2290_vm14 = vcmp.eq.f32.partialorder %v768_v36, 8.507059e+37 }
  0xdc   : > { %v2256_v17 = vadd.f32 %v2193_v6, %v603_v12  ;;  %v970_v19 = vpack.c.bf16 %v955_v14, %v954_v13  ;;  %v747_v20 = vmul.f32 %v2241_v63, %v746_v15  ;;  %v771_v59 = vor.u32 1.1754944e-38, %v770_v46 }
  0xdd   : > { %1823 = vpow2.f32 %v1669_v16 }
  0xde   : > { %v1820_v22 = vpop.eup %1819  ;;  %v1662_v23 = vmul.f32 -1.442695, %v2256_v17  ;;  %1054 = vmatmul.bf16.vlgmr.msra.gmra.mxu2 %v970_v19  ;;  %v622_v24 = vpop.f32.mrf.mxu3  ;;  %v748_v33 = vadd.f32 %v2241_v63, %v747_v20 }
  0xdf   : > { %v1822_v25 = vpop.eup %1821  ;;  %v2260_v27 = vadd.f32 1.0, %v1820_v22  ;;  %v623_v10 = vadd.f32 %v622_v24, %v2214_v21 }
  0xe0   : > { %1825 = vpow2.f32 %v1662_v23  ;;  %v508_v18 = vpop.f32.mrf.mxu0  ;;  %v760_v30 = vmul.f32 %v1822_v25, %v2243_v0  ;;  %v752_v47 = vsel %vm2280_vm10, %v2241_v63, %v748_v33  ;;  %vm765_vm12 = vweird.f32 %v1822_v25 }
  0xe1   : > { %1827 = vrcp.f32 %v2260_v27  ;;  %v2267_v31 = vadd.f32 %v2193_v6, %v623_v10  ;;  %v605_v32 = vpop.f32.mrf.mxu1  ;;  %v757_v58 = vsel %vm754_vm11, %v756_v49, %v752_v47  ;;  %vm766_vm15 = vmor %vm764_vm13, %vm765_vm12  ;;  %v783_v61 = vand.u32 2147483647, %v2260_v27 }
  0xe2   : > { %v606_v34 = vadd.f32 %v605_v32, %v508_v18  ;;  %v761_v21 = vsub.f32 1.0, %v760_v30  ;;  %vm779_vm0 = vweird.f32 %v2260_v27  ;;  %v956_v9 = vmul.f32 %v757_v58, %v2217_v26 }
  0xe3   : > { %v1824_v38 = vpop.eup %1823  ;;  %v1670_v39 = vmul.f32 -1.442695, %v2267_v31  ;;  %vm2326_vm1 = vcmp.eq.f32.partialorder %v783_v61, 8.507059e+37 }
  0xe4   : > { %v2275_v40 = vadd.f32 1.0, %v1824_v38  ;;  %v2278_v42 = vadd.f32 %v2193_v6, %v606_v34  ;;  %v762_v45 = vmul.f32 %v1822_v25, %v761_v21 }
  0xe5   : > { %1829 = vpow2.f32 %v1670_v39 }
  0xe6   : > { %v1826_v43 = vpop.eup %1825  ;;  %1831 = vrcp.f32 %v2275_v40  ;;  %v625_v48 = vpop.f32.mrf.mxu3  ;;  %v1663_v53 = vmul.f32 -1.442695, %v2278_v42  ;;  %v763_v56 = vadd.f32 %v1822_v25, %v762_v45  ;;  %v903_v5 = vand.u32 2147483647, %v2275_v40 }
  0xe7   : > { %v2294_v51 = vpop.eup %1827  ;;  %v2296_v52 = vadd.f32 1.0, %v1826_v43  ;;  %v626_v54 = vadd.f32 %v625_v48, %v2220_v29  ;;  %v785_v29 = vand.u32 2147483648, %v2260_v27  ;;  %v905_v13 = vand.u32 2147483648, %v2275_v40 }
  0xe8   : > { %v510_v57 = vpop.f32.mrf.mxu0  ;;  %v775_v60 = vmul.f32 %v2294_v51, %v2260_v27  ;;  %v767_v0 = vsel %vm766_vm15, %v1822_v25, %v763_v56  ;;  %vm899_vm2 = vweird.f32 %v2275_v40  ;;  %vm780_vm3 = vweird.f32 %v2294_v51 }
  0xe9   : > { %1833 = vrcp.f32 %v2296_v52  ;;  %v2305_v62 = vadd.f32 %v2193_v6, %v626_v54  ;;  %v607_v63 = vpop.f32.mrf.mxu1  ;;  %v772_v2 = vsel %vm2290_vm14, %v771_v59, %v767_v0  ;;  %v786_v22 = vor.u32 1.1754944e-38, %v785_v29  ;;  %vm2353_vm7 = vmor %vm779_vm0, %vm780_vm3 }
  0xea   : > { %1835 = vpow2.f32 %v1663_v53  ;;  %v608_v1 = vadd.f32 %v607_v63, %v510_v57  ;;  %v776_v3 = vsub.f32 1.0, %v775_v60  ;;  %v957_v11 = vmul.f32 %v772_v2, %v2223_v37 }
  0xeb   : > { %v1830_v4 = vpop.eup %1829  ;;  %v1671_v7 = vmul.f32 -1.442695, %v2305_v62  ;;  %vm2333_vm4 = vcmp.eq.f32.partialorder %v903_v5, 8.507059e+37  ;;  %v906_v32 = vor.u32 1.1754944e-38, %v905_v13  ;;  %vm794_vm6 = vweird.f32 %v2296_v52 }
  0xec   : > { %v2315_v12 = vpop.eup %1831  ;;  %v2318_v14 = vadd.f32 1.0, %v1830_v4  ;;  %v2321_v15 = vadd.f32 %v2193_v6, %v608_v1  ;;  %v777_v16 = vmul.f32 %v2294_v51, %v776_v3  ;;  %v971_v20 = vpack.c.bf16 %v957_v11, %v956_v9 }
  0xed   : > { %v895_v19 = vmul.f32 %v2315_v12, %v2275_v40  ;;  %1837 = vpow2.f32 %v1671_v7  ;;  %vm900_vm5 = vweird.f32 %v2315_v12  ;;  %v798_v45 = vand.u32 2147483647, %v2296_v52 }
  0xee   : > { %1839 = vrcp.f32 %v2318_v14  ;;  %v627_v37 = vpop.f32.mrf.mxu3  ;;  %v1664_v10 = vmul.f32 -1.442695, %v2321_v15  ;;  %1059 = vmatmul.bf16.gmra.mxu2 %v971_v20  ;;  %v778_v28 = vadd.f32 %v2294_v51, %v777_v16  ;;  %v800_v46 = vand.u32 2147483648, %v2296_v52  ;;  %vm2370_vm9 = vmor %vm899_vm2, %vm900_vm5 }
  0xef   : > { %v1834_v23 = vpop.eup %1833  ;;  %v896_v24 = vsub.f32 1.0, %v895_v19  ;;  %v628_v18 = vadd.f32 %v627_v37, %v2226_v41  ;;  %vm914_vm8 = vweird.f32 %v2318_v14  ;;  %v918_v58 = vand.u32 2147483647, %v2318_v14 }
  0xf0   : > { %v1836_v30 = vpop.eup %1835  ;;  %v513_v33 = vpop.f32.mrf.mxu0  ;;  %v790_v34 = vmul.f32 %v1834_v23, %v2296_v52  ;;  %1841 = vpow2.f32 %v1664_v10  ;;  %v782_v27 = vsel %vm2353_vm7, %v2294_v51, %v778_v28  ;;  %vm795_vm10 = vweird.f32 %v1834_v23 }
  0xf1   : > { %v897_v35 = vmul.f32 %v2315_v12, %v896_v24  ;;  %v2344_v21 = vadd.f32 1.0, %v1836_v30  ;;  %v2347_v36 = vadd.f32 %v2193_v6, %v628_v18  ;;  %v610_v41 = vpop.f32.mrf.mxu1  ;;  %v920_v40 = vand.u32 2147483648, %v2318_v14  ;;  %vm796_vm11 = vmor %vm794_vm6, %vm795_vm10 }
  0xf2   : > { %v611_v38 = vadd.f32 %v610_v41, %v513_v33  ;;  %v791_v44 = vsub.f32 1.0, %v790_v34  ;;  %v787_v60 = vsel %vm2326_vm1, %v786_v22, %v782_v27  ;;  %vm799_vm12 = vcmp.eq.f32.partialorder %v798_v45, 8.507059e+37 }
  0xf3   : > { %v1838_v47 = vpop.eup %1837  ;;  %v898_v43 = vadd.f32 %v2315_v12, %v897_v35  ;;  %1843 = vrcp.f32 %v2344_v21  ;;  %v1672_v48 = vmul.f32 -1.442695, %v2347_v36  ;;  %v801_v29 = vor.u32 1.1754944e-38, %v800_v46 }
  0xf4   : > { %v1840_v49 = vpop.eup %1839  ;;  %v2374_v53 = vadd.f32 1.0, %v1838_v47  ;;  %v2377_v54 = vadd.f32 %v2193_v6, %v611_v38  ;;  %v792_v56 = vmul.f32 %v1834_v23, %v791_v44  ;;  %vm919_vm14 = vcmp.eq.f32.partialorder %v918_v58, 8.507059e+37 }
  0xf5   : > { %v902_v51 = vsel %vm2370_vm9, %v2315_v12, %v898_v43  ;;  %v910_v57 = vmul.f32 %v1840_v49, %v2318_v14  ;;  %1845 = vpow2.f32 %v1672_v48  ;;  %vm915_vm13 = vweird.f32 %v1840_v49 }
  0xf6   : > { %v1665_v59 = vmul.f32 -1.442695, %v2377_v54  ;;  %v793_v61 = vadd.f32 %v1834_v23, %v792_v56  ;;  %v1842_v63 = vpop.eup %1841  ;;  %1847 = vrcp.f32 %v2374_v53  ;;  %v907_v1 = vsel %vm2333_vm4, %v906_v32, %v902_v51  ;;  %vm916_vm15 = vmor %vm914_vm8, %vm915_vm13 }
  0xf7   : > { %v911_v0 = vsub.f32 1.0, %v910_v57  ;;  %v2393_v2 = vadd.f32 1.0, %v1842_v63  ;;  %v958_v12 = vmul.f32 %v787_v60, %v2236_v55  ;;  %v966_v20 = vmul.f32 %v907_v1, %v2250_v8 }
  0xf8   : > { %1849 = vpow2.f32 %v1665_v59  ;;  %v515_v3 = vpop.f32.mrf.mxu0  ;;  %v797_v4 = vsel %vm796_vm11, %v1834_v23, %v793_v61  ;;  %v921_v37 = vor.u32 1.1754944e-38, %v920_v40  ;;  %vm809_vm0 = vweird.f32 %v2344_v21 }
  0xf9   : > { %v2395_v5 = vpop.eup %1843  ;;  %v912_v7 = vmul.f32 %v1840_v49, %v911_v0  ;;  %v612_v9 = vpop.f32.mrf.mxu1  ;;  %v802_v11 = vsel %vm799_vm12, %v801_v29, %v797_v4  ;;  %1851 = vrcp.f32 %v2393_v2  ;;  %v813_v8 = vand.u32 2147483647, %v2344_v21 }
  0xfa   : > { %v613_v52 = vadd.f32 %v612_v9, %v515_v3  ;;  %v959_v13 = vmul.f32 %v802_v11, %v2256_v17  ;;  %v805_v16 = vmul.f32 %v2395_v5, %v2344_v21  ;;  %v815_v10 = vand.u32 2147483648, %v2344_v21 }
  0xfb   : > { %v1846_v19 = vpop.eup %1845  ;;  %v913_v26 = vadd.f32 %v1840_v49, %v912_v7  ;;  %vm810_vm1 = vweird.f32 %v2395_v5  ;;  %v828_v34 = vand.u32 2147483647, %v2393_v2  ;;  %v830_v39 = vand.u32 2147483648, %v2393_v2 }
  0xfc   : > { %v2405_v22 = vadd.f32 1.0, %v1846_v19  ;;  %v2408_v55 = vadd.f32 %v2193_v6, %v613_v52  ;;  %v972_v23 = vpack.c.bf16 %v959_v13, %v958_v12  ;;  %v806_v24 = vsub.f32 1.0, %v805_v16  ;;  %v2410_v17 = vpop.eup %1847  ;;  %vm2432_vm3 = vmor %vm809_vm0, %vm810_vm1 }
  0xfd   : > { %v917_v25 = vsel %vm916_vm15, %v1840_v49, %v913_v26  ;;  %v925_v44 = vmul.f32 %v2410_v17, %v2374_v53  ;;  %vm929_vm2 = vweird.f32 %v2374_v53  ;;  %vm2436_vm4 = vcmp.eq.f32.partialorder %v813_v8, 8.507059e+37 }
  0xfe   : > { %v1850_v18 = vpop.eup %1849  ;;  %v922_v28 = vsel %vm919_vm14, %v921_v37, %v917_v25  ;;  %1853 = vrcp.f32 %v2405_v22  ;;  %v1666_v14 = vmul.f32 -1.442695, %v2408_v55  ;;  %v807_v30 = vmul.f32 %v2395_v5, %v806_v24  ;;  %1064 = vmatmul.bf16.gmra.mxu2 %v972_v23 }
  0xff   : > { %v967_v32 = vmul.f32 %v922_v28, %v2267_v31  ;;  %v2419_v33 = vadd.f32 1.0, %v1850_v18  ;;  %v1852_v35 = vpop.eup %1851  ;;  %v816_v27 = vor.u32 1.1754944e-38, %v815_v10  ;;  %v926_v49 = vsub.f32 1.0, %v925_v44 }
 0x100   : > { %1855 = vpow2.f32 %v1666_v14  ;;  %v518_v41 = vpop.f32.mrf.mxu0  ;;  %v808_v38 = vadd.f32 %v2395_v5, %v807_v30  ;;  %v820_v46 = vmul.f32 %v1852_v35, %v2393_v2  ;;  %vm824_vm5 = vweird.f32 %v2393_v2 }
 0x101   : > { %v976_v45 = vpack.c.bf16 %v967_v32, %v966_v20  ;;  %1857 = vrcp.f32 %v2419_v33  ;;  %v615_v31 = vpop.f32.mrf.mxu1  ;;  %vm2444_vm6 = vcmp.eq.f32.partialorder %v828_v34, 8.507059e+37  ;;  %v831_v58 = vor.u32 1.1754944e-38, %v830_v39 }
 0x102   : > { %v616_v47 = vadd.f32 %v615_v31, %v518_v41  ;;  %v812_v50 = vsel %vm2432_vm3, %v2395_v5, %v808_v38  ;;  %v821_v56 = vsub.f32 1.0, %v820_v46  ;;  %v927_v40 = vmul.f32 %v2410_v17, %v926_v49 }
 0x103   : > { %1084 = vmatmul.bf16.vlgmr.msra.gmra.mxu3 %v976_v45  ;;  %vm930_vm7 = vweird.f32 %v2410_v17  ;;  %vm825_vm8 = vweird.f32 %v1852_v35  ;;  %v933_v60 = vand.u32 2147483647, %v2374_v53  ;;  %v817_v29 = vsel %vm2436_vm4, %v816_v27, %v812_v50 }
 0x104   : > { %v1854_v51 = vpop.eup %1853  ;;  %v2449_v57 = vadd.f32 %v2193_v6, %v616_v47  ;;  %v822_v59 = vmul.f32 %v1852_v35, %v821_v56  ;;  %v928_v1 = vadd.f32 %v2410_v17, %v927_v40  ;;  %v935_v3 = vand.u32 2147483648, %v2374_v53  ;;  %vm2466_vm9 = vmor %vm929_vm2, %vm930_vm7 }
 0x105   : > { %v940_v61 = vmul.f32 %v1854_v51, %v2405_v22  ;;  %vm944_vm10 = vweird.f32 %v2405_v22  ;;  %vm826_vm11 = vmor %vm824_vm5, %vm825_vm8  ;;  %vm945_vm12 = vweird.f32 %v1854_v51  ;;  %v948_v52 = vand.u32 2147483647, %v2405_v22 }
 0x106   : > { %v1856_v63 = vpop.eup %1855  ;;  %v1667_v0 = vmul.f32 -1.442695, %v2449_v57  ;;  %v823_v7 = vadd.f32 %v1852_v35, %v822_v59  ;;  %v950_v13 = vand.u32 2147483648, %v2405_v22  ;;  %v932_v19 = vsel %vm2466_vm9, %v2410_v17, %v928_v1  ;;  %vm946_vm14 = vmor %vm944_vm10, %vm945_vm12 }
 0x107   : > { %v2460_v4 = vpop.eup %1857  ;;  %v2462_v5 = vadd.f32 1.0, %v1856_v63  ;;  %v941_v11 = vsub.f32 1.0, %v940_v61  ;;  %v936_v2 = vor.u32 1.1754944e-38, %v935_v3  ;;  %v960_v24 = vmul.f32 %v817_v29, %v2278_v42 }
 0x108   : > { %1859 = vpow2.f32 %v1667_v0  ;;  %v520_v12 = vpop.f32.mrf.mxu0  ;;  %v827_v16 = vsel %vm826_vm11, %v1852_v35, %v823_v7  ;;  %v835_v23 = vmul.f32 %v2460_v4, %v2419_v33  ;;  %vm934_vm13 = vcmp.eq.f32.partialorder %v933_v60, 8.507059e+37 }
 0x109   : > { %1861 = vrcp.f32 %v2462_v5  ;;  %v617_v53 = vpop.f32.mrf.mxu1  ;;  %v942_v20 = vmul.f32 %v1854_v51, %v941_v11  ;;  %v832_v37 = vsel %vm2444_vm6, %v831_v58, %v827_v16  ;;  %v937_v18 = vsel %vm934_vm13, %v936_v2, %v932_v19  ;;  %v1802_v2 = vld [vmem:[%s2818_s6] ss:$0 sm:$0xff] }
 0x10a   : > { %v618_v26 = vadd.f32 %v617_v53, %v520_v12  ;;  %v961_v25 = vmul.f32 %v832_v37, %v2321_v15  ;;  %v951_v17 = vor.u32 1.1754944e-38, %v950_v13  ;;  %v836_v28 = vsub.f32 1.0, %v835_v23 }
 0x10b   : > { %v943_v8 = vadd.f32 %v1854_v51, %v942_v20  ;;  %vm949_vm15 = vcmp.eq.f32.partialorder %v948_v52, 8.507059e+37  ;;  %vm840_vm0 = vweird.f32 %v2460_v4  ;;  %v845_v45 = vand.u32 2147483648, %v2419_v33 }
 0x10c   : > { %v2487_v10 = vadd.f32 %v2193_v6, %v618_v26  ;;  %v973_v14 = vpack.c.bf16 %v961_v25, %v960_v24  ;;  %v837_v15 = vmul.f32 %v2460_v4, %v836_v28  ;;  %v968_v6 = vmul.f32 %v937_v18, %v2305_v62 }
 0x10d   : > { %v947_v30 = vsel %vm946_vm14, %v1854_v51, %v943_v8  ;;  %vm839_vm1 = vweird.f32 %v2419_v33  ;;  %v843_v31 = vand.u32 2147483647, %v2419_v33  ;;  %v860_v62 = vand.u32 2147483648, %v2462_v5 }
 0x10e   : > { %v1860_v32 = vpop.eup %1859  ;;  %v1668_v42 = vmul.f32 -1.442695, %v2487_v10  ;;  %v952_v34 = vsel %vm949_vm15, %v951_v17, %v947_v30  ;;  %1069 = vmatmul.bf16.gmra.mxu2 %v973_v14  ;;  %v838_v22 = vadd.f32 %v2460_v4, %v837_v15  ;;  %vm841_vm2 = vmor %vm839_vm1, %vm840_vm0  ;;  %v858_v43 = vand.u32 2147483647, %v2462_v5 }
 0x10f   : > { %v1862_v35 = vpop.eup %1861  ;;  %v708_v41 = vadd.f32 1.0, %v1860_v32  ;;  %v969_v38 = vmul.f32 %v952_v34, %v2347_v36  ;;  %v846_v48 = vor.u32 1.1754944e-38, %v845_v45  ;;  %vm844_vm4 = vcmp.eq.f32.partialorder %v843_v31, 8.507059e+37 }
 0x110   : > { %1863 = vpow2.f32 %v1668_v42  ;;  %v850_v39 = vmul.f32 %v1862_v35, %v2462_v5  ;;  %v842_v36 = vsel %vm841_vm2, %v2460_v4, %v838_v22  ;;  %vm855_vm3 = vweird.f32 %v1862_v35 }
 0x111   : > { %1865 = vrcp.f32 %v708_v41  ;;  %v977_v44 = vpack.c.bf16 %v969_v38, %v968_v6  ;;  %vm854_vm5 = vweird.f32 %v2462_v5  ;;  %v847_v33 = vsel %vm844_vm4, %v846_v48, %v842_v36 }
 0x112   : > { %v851_v46 = vsub.f32 1.0, %v850_v39  ;;  %vm856_vm6 = vmor %vm854_vm5, %vm855_vm3  ;;  %v861_v21 = vor.u32 1.1754944e-38, %v860_v62  ;;  %vm859_vm7 = vcmp.eq.f32.partialorder %v858_v43, 8.507059e+37  ;;  %v962_v59 = vmul.f32 %v847_v33, %v2377_v54 }
 0x113   : > { %1089 = vmatmul.bf16.gmra.mxu3 %v977_v44  ;;  %v875_v4 = vand.u32 2147483648, %v708_v41  ;;  %vm869_vm9 = vweird.f32 %v708_v41  ;;  %v873_v5 = vand.u32 2147483647, %v708_v41 }
 0x114   : > { %v852_v47 = vmul.f32 %v1862_v35, %v851_v46 }
 0x115   : > { %v876_v52 = vor.u32 1.1754944e-38, %v875_v4  ;;  %vm874_vm12 = vcmp.eq.f32.partialorder %v873_v5, 8.507059e+37 }
 0x116   : > { %v1864_v27 = vpop.eup %1863  ;;  %v853_v49 = vadd.f32 %v1862_v35, %v852_v47 }
 0x117   : > { %v1866_v50 = vpop.eup %1865  ;;  %v709_v56 = vadd.f32 1.0, %v1864_v27 }
 0x118   : > { %v857_v51 = vsel %vm856_vm6, %v1862_v35, %v853_v49  ;;  %v865_v58 = vmul.f32 %v1866_v50, %v708_v41  ;;  %vm870_vm8 = vweird.f32 %v1866_v50  ;;  %v1983_v49 = vmov 128.0  }
 0x119   : > { %1867 = vrcp.f32 %v709_v56  ;;  %v862_v40 = vsel %vm859_vm7, %v861_v21, %v857_v51  ;;  %vm871_vm10 = vmor %vm869_vm9, %vm870_vm8  ;;  %v890_v9 = vand.u32 2147483648, %v709_v56  ;;  %v888_v54 = vand.u32 2147483647, %v709_v56 }
 0x11a   : > { %v963_v60 = vmul.f32 %v862_v40, %v2408_v55  ;;  %v866_v61 = vsub.f32 1.0, %v865_v58  ;;  %vm884_vm13 = vweird.f32 %v709_v56  ;;  %1869 = vrcp.f32 %v1983_v49 }
 0x11b   : > { %v891_v53 = vor.u32 1.1754944e-38, %v890_v9  ;;  %vm889_vm15 = vcmp.eq.f32.partialorder %v888_v54, 8.507059e+37 }
 0x11c   : > { %v974_v63 = vpack.c.bf16 %v963_v60, %v962_v59  ;;  %v867_v0 = vmul.f32 %v1866_v50, %v866_v61 }
 0x11e   : > { %1074 = vmatmul.bf16.gmra.mxu2 %v974_v63  ;;  %v868_v1 = vadd.f32 %v1866_v50, %v867_v0 }
 0x11f   : > { %v1868_v29 = vpop.eup %1867 }
 0x120   : > { %v880_v3 = vmul.f32 %v1868_v29, %v709_v56  ;;  %v872_v11 = vsel %vm871_vm10, %v1866_v50, %v868_v1  ;;  %vm885_vm11 = vweird.f32 %v1868_v29  ;;  %v1870_v50 = vpop.eup %1869 }
 0x121   : > { %v877_v13 = vsel %vm874_vm12, %v876_v52, %v872_v11  ;;  %vm886_vm14 = vmor %vm884_vm13, %vm885_vm11  ;;  %v1128_v33 = vmul.f32 128.0, %v1870_v50  ;;  %vm1132_vm0 = vweird.f32 %v1870_v50 }
 0x122   : > { %v881_v7 = vsub.f32 1.0, %v880_v3  ;;  %v964_v20 = vmul.f32 %v877_v13, %v2449_v57 }
 0x123   : > { %v1129_v21 = vsub.f32 1.0, %v1128_v33 }
 0x124   : > { %v882_v12 = vmul.f32 %v1868_v29, %v881_v7 }
 0x125   : > { %v1130_v51 = vmul.f32 %v1870_v50, %v1129_v21 }
 0x126   : > { %v883_v55 = vadd.f32 %v1868_v29, %v882_v12 }
 0x127   : > { %v1131_v58 = vadd.f32 %v1870_v50, %v1130_v51 }
 0x128   : > { %v887_v16 = vsel %vm886_vm14, %v1868_v29, %v883_v55 }
 0x129   : > { %v892_v19 = vsel %vm889_vm15, %v891_v53, %v887_v16  ;;  %v2552_v40 = vsel %vm1132_vm0, %v1870_v50, %v1131_v58 }
 0x12a   : > { %v965_v26 = vmul.f32 %v892_v19, %v2487_v10 }
 0x12c   : > { %v975_v37 = vpack.c.bf16 %v965_v26, %v964_v20 }
 0x12e   : > { %1079 = vmatmul.bf16.gmra.mxu2 %v975_v37 }
 0x161   : > { %v1055_v23 = vpop.f32.mrf.mxu2 }
 0x162   : > { %v1056_v24 = vadd.f32 %v1802_v2, %v1055_v23 }
 0x164   : > { %1095 = vadd.xlane.f32.xlu0 %v1056_v24 }
 0x169   : > { %v1057_v25 = vpop.f32.mrf.mxu2 }
 0x16a   : > { %v1058_v8 = vadd.f32 %v1802_v2, %v1057_v25 }
 0x16c   : > { %1097 = vadd.xlane.f32.xlu0 %v1058_v8 }
 0x171   : > { %v1060_v18 = vpop.f32.mrf.mxu2 }
 0x172   : > { %v1061_v17 = vadd.f32 %v1802_v2, %v1060_v18 }
 0x174   : > { %1099 = vadd.xlane.f32.xlu1 %v1061_v17 }
 0x179   : > { %v1062_v28 = vpop.f32.mrf.mxu2 }
 0x17a   : > { %v2513_v14 = vadd.f32 %v1802_v2, %v1062_v28 }
 0x17c   : > { %1101 = vadd.xlane.f32.xlu1 %v2513_v14 }
 0x181   : > { %v1065_v57 = vpop.f32.mrf.mxu2 }
 0x182   : > { %v2516_v10 = vadd.f32 %v1802_v2, %v1065_v57 }
 0x184   : > { %1103 = vadd.xlane.f32.xlu2 %v2516_v10 }
 0x186   : > { %v1085_v30 = vpop.f32.mrf.mxu3 }
 0x187   : > { %v2519_v32 = vadd.f32 %v1802_v2, %v1085_v30 }
 0x189   : > { %1119 = vadd.xlane.f32.xlu0 %v2519_v32  ;;  %v1067_v42 = vpop.f32.mrf.mxu2 }
 0x18a   : > { %v2522_v34 = vadd.f32 %v1802_v2, %v1067_v42 }
 0x18c   : > { %1105 = vadd.xlane.f32.xlu2 %v2522_v34 }
 0x18e   : > { %v1087_v15 = vpop.f32.mrf.mxu3 }
 0x18f   : > { %v2525_v35 = vadd.f32 %v1802_v2, %v1087_v15 }
 0x191   : > { %1121 = vadd.xlane.f32.xlu1 %v2525_v35  ;;  %v1070_v41 = vpop.f32.mrf.mxu2 }
 0x192   : > { %v2528_v6 = vadd.f32 %v1802_v2, %v1070_v41 }
 0x194   : > { %1107 = vadd.xlane.f32.xlu0 %v2528_v6 }
 0x196   : > { %v1090_v45 = vpop.f32.mrf.mxu3 }
 0x197   : > { %v2549_v56 = vadd.f32 %v1802_v2, %v1090_v45 }
 0x199   : > { %v1072_v38 = vpop.f32.mrf.mxu2 }
 0x19a   : > { %v2531_v22 = vadd.f32 %v1802_v2, %v1072_v38 }
 0x19c   : > { %1109 = vadd.xlane.f32.xlu1 %v2531_v22 }
 0x19e   : > { %v1092_v62 = vpop.f32.mrf.mxu3 }
 0x19f   : > { %v2540_v47 = vadd.f32 %v1802_v2, %v1092_v62 }
 0x1a1   : > { %v1075_v39 = vpop.f32.mrf.mxu2 }
 0x1a2   : > { %v2534_v44 = vadd.f32 %v1802_v2, %v1075_v39 }
 0x1a4   : > { %1111 = vadd.xlane.f32.xlu2 %v2534_v44 }
 0x1a9   : > { %v1077_v31 = vpop.f32.mrf.mxu2 }
 0x1aa   : > { %v2537_v46 = vadd.f32 %v1802_v2, %v1077_v31 }
 0x1ac   : > { %1113 = vadd.xlane.f32.xlu0 %v2537_v46 }
 0x1b1   : > { %v1080_v36 = vpop.f32.mrf.mxu2 }
 0x1b2   : > { %v2542_v43 = vadd.f32 %v1802_v2, %v1080_v36 }
 0x1b4   : > { %1115 = vadd.xlane.f32.xlu1 %v2542_v43  ;;  %1125 = vadd.xlane.f32.xlu0 %v2540_v47 }
 0x1b9   : > { %v1082_v48 = vpop.f32.mrf.mxu2 }
 0x1ba   : > { %v2546_v27 = vadd.f32 %v1802_v2, %v1082_v48 }
 0x1bc   : > { %1117 = vadd.xlane.f32.xlu2 %v2546_v27 }
 0x1c4   : > { %1123 = vadd.xlane.f32.xlu2 %v2549_v56 }
 0x1d7   : > { %v1096_v59 = vpop.xlane.xlu0 %1095 }
 0x1d8   : > { %v1134_v60 = vmul.f32 %v2552_v40, %v1096_v59 }
 0x1da   : > { %v2555_v61 = vsub.f32 %v1056_v24, %v1134_v60 }
 0x1dc   : > { %v1166_v63 = vmul.f32 %v2555_v61, %v2555_v61 }
 0x1de   : > { %1182 = vadd.xlane.f32.xlu1 %v1166_v63 }
 0x1df   : > { %v1098_v0 = vpop.xlane.xlu0 %1097 }
 0x1e0   : > { %v1135_v29 = vmul.f32 %v2552_v40, %v1098_v0 }
 0x1e2   : > { %v2560_v1 = vsub.f32 %v1058_v8, %v1135_v29 }
 0x1e4   : > { %v1167_v3 = vmul.f32 %v2560_v1, %v2560_v1 }
 0x1e6   : > { %1184 = vadd.xlane.f32.xlu2 %v1167_v3 }
 0x1e7   : > { %v1100_v4 = vpop.xlane.xlu1 %1099 }
 0x1e8   : > { %v1136_v5 = vmul.f32 %v2552_v40, %v1100_v4 }
 0x1ea   : > { %v2565_v7 = vsub.f32 %v1061_v17, %v1136_v5 }
 0x1ec   : > { %v1168_v9 = vmul.f32 %v2565_v7, %v2565_v7 }
 0x1ee   : > { %1186 = vadd.xlane.f32.xlu0 %v1168_v9 }
 0x1ef   : > { %v1102_v11 = vpop.xlane.xlu1 %1101 }
 0x1f0   : > { %v1137_v12 = vmul.f32 %v2552_v40, %v1102_v11 }
 0x1f2   : > { %v2571_v54 = vsub.f32 %v2513_v14, %v1137_v12 }
 0x1f4   : > { %v1169_v52 = vmul.f32 %v2571_v54, %v2571_v54 }
 0x1f6   : > { %1188 = vadd.xlane.f32.xlu1 %v1169_v52 }
 0x1f7   : > { %v1104_v55 = vpop.xlane.xlu2 %1103 }
 0x1f8   : > { %v1138_v13 = vmul.f32 %v2552_v40, %v1104_v55 }
 0x1fa   : > { %v2577_v53 = vsub.f32 %v2516_v10, %v1138_v13 }
 0x1fc   : > { %v1120_v16 = vpop.xlane.xlu0 %1119  ;;  %v1170_v20 = vmul.f32 %v2577_v53, %v2577_v53 }
 0x1fd   : > { %v1146_v19 = vmul.f32 %v2552_v40, %v1120_v16 }
 0x1fe   : > { %1190 = vadd.xlane.f32.xlu2 %v1170_v20 }
 0x1ff   : > { %v2583_v26 = vsub.f32 %v2519_v32, %v1146_v19  ;;  %v1106_v37 = vpop.xlane.xlu2 %1105 }
 0x200   : > { %v1139_v2 = vmul.f32 %v2552_v40, %v1106_v37 }
 0x201   : > { %v1178_v23 = vmul.f32 %v2583_v26, %v2583_v26 }
 0x202   : > { %v2589_v24 = vsub.f32 %v2522_v34, %v1139_v2  ;;  %v2653_v2 = vld [vmem:[%s2819_s7] ss:$0 sm:$0xff] }
 0x203   : > { %1206 = vadd.xlane.f32.xlu1 %v1178_v23 }
 0x204   : > { %v1171_v25 = vmul.f32 %v2589_v24, %v2589_v24  ;;  %v1122_v8 = vpop.xlane.xlu1 %1121 }
 0x205   : > { %v1147_v49 = vmul.f32 %v2552_v40, %v1122_v8  ;;  %v2659_v8 = vld [vmem:[%s2820_s8] ss:$0 sm:$0xff] }
 0x206   : > { %1192 = vadd.xlane.f32.xlu0 %v1171_v25 }
 0x207   : > { %v1108_v18 = vpop.xlane.xlu0 %1107  ;;  %v2631_v21 = vsub.f32 %v2525_v35, %v1147_v49 }
 0x208   : > { %v1140_v17 = vmul.f32 %v2552_v40, %v1108_v18 }
 0x209   : > { %v1179_v58 = vmul.f32 %v2631_v21, %v2631_v21 }
 0x20a   : > { %v2595_v28 = vsub.f32 %v2528_v6, %v1140_v17 }
 0x20c   : > { %v1172_v14 = vmul.f32 %v2595_v28, %v2595_v28 }
 0x20e   : > { %1194 = vadd.xlane.f32.xlu1 %v1172_v14 }
 0x20f   : > { %v1110_v57 = vpop.xlane.xlu1 %1109 }
 0x210   : > { %v1141_v10 = vmul.f32 %v2552_v40, %v1110_v57 }
 0x212   : > { %v2601_v30 = vsub.f32 %v2531_v22, %v1141_v10 }
 0x214   : > { %v1173_v32 = vmul.f32 %v2601_v30, %v2601_v30 }
 0x216   : > { %1196 = vadd.xlane.f32.xlu2 %v1173_v32 }
 0x217   : > { %v1112_v42 = vpop.xlane.xlu2 %1111 }
 0x218   : > { %v1142_v34 = vmul.f32 %v2552_v40, %v1112_v42 }
 0x21a   : > { %v2607_v15 = vsub.f32 %v2534_v44, %v1142_v34 }
 0x21c   : > { %v1174_v41 = vmul.f32 %v2607_v15, %v2607_v15 }
 0x21e   : > { %1198 = vadd.xlane.f32.xlu0 %v1174_v41 }
 0x21f   : > { %v1114_v6 = vpop.xlane.xlu0 %1113 }
 0x220   : > { %v1143_v38 = vmul.f32 %v2552_v40, %v1114_v6 }
 0x222   : > { %v2613_v22 = vsub.f32 %v2537_v46, %v1143_v38  ;;  %v1903_v38 = vld [vmem:[%s2127_s28] sm:$0xff] }
 0x224   : > { %v1175_v39 = vmul.f32 %v2613_v22, %v2613_v22 }
 0x226   : > { %1200 = vadd.xlane.f32.xlu1 %v1175_v39 }
 0x227   : > { %v1116_v45 = vpop.xlane.xlu1 %1115  ;;  %v1126_v31 = vpop.xlane.xlu0 %1125 }
 0x228   : > { %v1144_v62 = vmul.f32 %v2552_v40, %v1116_v45  ;;  %v1149_v44 = vmul.f32 %v2552_v40, %v1126_v31 }
 0x22a   : > { %v2620_v36 = vsub.f32 %v2542_v43, %v1144_v62  ;;  %v2623_v48 = vsub.f32 %v2540_v47, %v1149_v44 }
 0x22c   : > { %v1176_v46 = vmul.f32 %v2620_v36, %v2620_v36  ;;  %v1181_v50 = vmul.f32 %v2623_v48, %v2623_v48 }
 0x22e   : > { %1202 = vadd.xlane.f32.xlu2 %v1176_v46  ;;  %1212 = vadd.xlane.f32.xlu1 %v1181_v50 }
 0x22f   : > { %v1118_v33 = vpop.xlane.xlu2 %1117 }
 0x230   : > { %v1145_v43 = vmul.f32 %v2552_v40, %v1118_v33 }
 0x232   : > { %v2635_v51 = vsub.f32 %v2546_v27, %v1145_v43 }
 0x234   : > { %v1177_v47 = vmul.f32 %v2635_v51, %v2635_v51 }
 0x236   : > { %1204 = vadd.xlane.f32.xlu0 %v1177_v47  ;;  %1208 = vadd.xlane.f32.xlu2 %v1179_v58 }
 0x237   : > { %v1124_v59 = vpop.xlane.xlu2 %1123 }
 0x238   : > { %v1148_v60 = vmul.f32 %v2552_v40, %v1124_v59  ;;  %v1904_v59 = vld [vmem:[%s2127_s28 + $0x8] sm:$0xff] }
 0x23a   : > { %v2643_v63 = vsub.f32 %v2549_v56, %v1148_v60 }
 0x23c   : > { %v1180_v35 = vmul.f32 %v2643_v63, %v2643_v63 }
 0x23e   : > { %1210 = vadd.xlane.f32.xlu0 %v1180_v35 }
 0x251   : > { %v1183_v27 = vpop.xlane.xlu1 %1182 }
 0x252   : > { %v1214_v0 = vmul.f32 %v1183_v27, %v2552_v40 }
 0x254   : > { %v1230_v29 = vadd.f32 1e-05, %v1214_v0 }
 0x256   : > { %1871 = vrsqrt.f32 %v1230_v29  ;;  %vm1252_vm2 = vweird.f32 %v1230_v29 }
 0x259   : > { %v1185_v3 = vpop.xlane.xlu2 %1184 }
 0x25a   : > { %v1215_v4 = vmul.f32 %v1185_v3, %v2552_v40 }
 0x25c   : > { %v1872_v5 = vpop.eup %1871  ;;  %v1231_v9 = vadd.f32 1e-05, %v1215_v4 }
 0x25d   : > { %v1247_v11 = vmul.f32 %v1872_v5, %v1230_v29  ;;  %vm1253_vm1 = vweird.f32 %v1872_v5 }
 0x25e   : > { %1873 = vrsqrt.f32 %v1231_v9  ;;  %vm1254_vm3 = vmor %vm1252_vm2, %vm1253_vm1  ;;  %vm1262_vm5 = vweird.f32 %v1231_v9 }
 0x25f   : > { %v1248_v12 = vmul.f32 %v1872_v5, %v1247_v11 }
 0x261   : > { %v1249_v56 = vmul.f32 0.5, %v1248_v12  ;;  %v1187_v52 = vpop.xlane.xlu0 %1186 }
 0x262   : > { %v1216_v13 = vmul.f32 %v1187_v52, %v2552_v40 }
 0x263   : > { %v1250_v55 = vsub.f32 1.5, %v1249_v56 }
 0x264   : > { %v1874_v16 = vpop.eup %1873  ;;  %v1232_v37 = vadd.f32 1e-05, %v1216_v13 }
 0x265   : > { %v1251_v19 = vmul.f32 %v1872_v5, %v1250_v55  ;;  %v1257_v20 = vmul.f32 %v1874_v16, %v1231_v9  ;;  %vm1263_vm4 = vweird.f32 %v1874_v16 }
 0x266   : > { %1875 = vrsqrt.f32 %v1232_v37  ;;  %vm1264_vm6 = vmor %vm1262_vm5, %vm1263_vm4  ;;  %vm1272_vm8 = vweird.f32 %v1232_v37 }
 0x267   : > { %v1255_v23 = vsel %vm1254_vm3, %v1872_v5, %v1251_v19  ;;  %v1258_v25 = vmul.f32 %v1874_v16, %v1257_v20 }
 0x268   : > { %v1406_v18 = vmul.f32 %v1255_v23, %v2555_v61 }
 0x269   : > { %v1259_v17 = vmul.f32 0.5, %v1258_v25  ;;  %v1189_v57 = vpop.xlane.xlu1 %1188 }
 0x26a   : > { %v1426_v14 = vmul.f32 %v2653_v2, %v1406_v18  ;;  %v1217_v32 = vmul.f32 %v1189_v57, %v2552_v40 }
 0x26b   : > { %v1260_v10 = vsub.f32 1.5, %v1259_v17 }
 0x26c   : > { %v1446_v42 = vadd.f32 %v2659_v8, %v1426_v14  ;;  %v1876_v34 = vpop.eup %1875  ;;  %v1233_v6 = vadd.f32 1e-05, %v1217_v32 }
 0x26d   : > { %v1261_v41 = vmul.f32 %v1874_v16, %v1260_v10  ;;  %v1267_v61 = vmul.f32 %v1876_v34, %v1232_v37  ;;  %vm1273_vm7 = vweird.f32 %v1876_v34  ;;  %v1905_v37 = vld [vmem:[%s2127_s28 + $0x10] sm:$0xff] }
 0x26e   : > { %v1462_v39 = vadd.f32 %v1903_v38, %v1446_v42  ;;  %1877 = vrsqrt.f32 %v1233_v6  ;;  %vm1274_vm9 = vmor %vm1272_vm8, %vm1273_vm7  ;;  %vm1282_vm11 = vweird.f32 %v1233_v6 }
 0x26f   : > { %v1265_v45 = vsel %vm1264_vm6, %v1874_v16, %v1261_v41  ;;  %v1268_v62 = vmul.f32 %v1876_v34, %v1267_v61 }
 0x270   : > { %1478 = vst [vmem:[%s2668_s21] sm:$0xff] %v1462_v39  ;;  %v1407_v31 = vmul.f32 %v1265_v45, %v2560_v1 }
 0x271   : > { %v1269_v49 = vmul.f32 0.5, %v1268_v62  ;;  %v1191_v46 = vpop.xlane.xlu2 %1190 }
 0x272   : > { %v1427_v44 = vmul.f32 %v2653_v2, %v1407_v31  ;;  %v1218_v50 = vmul.f32 %v1191_v46, %v2552_v40  ;;  %v1906_v31 = vld [vmem:[%s2127_s28 + $0x18] sm:$0xff] }
 0x273   : > { %v1270_v43 = vsub.f32 1.5, %v1269_v49 }
 0x274   : > { %v1447_v33 = vadd.f32 %v2659_v8, %v1427_v44  ;;  %v1878_v47 = vpop.eup %1877  ;;  %v1234_v58 = vadd.f32 1e-05, %v1218_v50 }
 0x275   : > { %v1271_v35 = vmul.f32 %v1876_v34, %v1270_v43  ;;  %v1277_v27 = vmul.f32 %v1878_v47, %v1233_v6  ;;  %vm1283_vm10 = vweird.f32 %v1878_v47 }
 0x276   : > { %v1463_v60 = vadd.f32 %v1904_v59, %v1447_v33  ;;  %v1207_v1 = vpop.xlane.xlu1 %1206  ;;  %1879 = vrsqrt.f32 %v1234_v58  ;;  %vm1284_vm12 = vmor %vm1282_vm11, %vm1283_vm10  ;;  %vm1292_vm14 = vweird.f32 %v1234_v58 }
 0x277   : > { %v1226_v0 = vmul.f32 %v1207_v1, %v2552_v40  ;;  %v1275_v29 = vsel %vm1274_vm9, %v1876_v34, %v1271_v35  ;;  %v1278_v3 = vmul.f32 %v1878_v47, %v1277_v27 }
 0x278   : > { %1479 = vst [vmem:[%s2668_s21 + $0x8] sm:$0xff] %v1463_v60  ;;  %v1408_v4 = vmul.f32 %v1275_v29, %v2565_v7 }
 0x279   : > { %v1242_v5 = vadd.f32 1e-05, %v1226_v0  ;;  %v1279_v9 = vmul.f32 0.5, %v1278_v3  ;;  %v1193_v11 = vpop.xlane.xlu0 %1192 }
 0x27a   : > { %v1428_v12 = vmul.f32 %v2653_v2, %v1408_v4  ;;  %v1219_v56 = vmul.f32 %v1193_v11, %v2552_v40  ;;  %v1907_v4 = vld [vmem:[%s2127_s28 + $0x20] sm:$0xff] }
 0x27b   : > { %1881 = vrsqrt.f32 %v1242_v5  ;;  %v1280_v52 = vsub.f32 1.5, %v1279_v9  ;;  %vm1372_vm1 = vweird.f32 %v1242_v5 }
 0x27c   : > { %v1880_v55 = vpop.eup %1879  ;;  %v1448_v13 = vadd.f32 %v2659_v8, %v1428_v12  ;;  %v1235_v16 = vadd.f32 1e-05, %v1219_v56 }
 0x27d   : > { %v1281_v19 = vmul.f32 %v1878_v47, %v1280_v52  ;;  %v1287_v20 = vmul.f32 %v1880_v55, %v1234_v58  ;;  %vm1293_vm13 = vweird.f32 %v1880_v55 }
 0x27e   : > { %v1464_v7 = vadd.f32 %v1905_v37, %v1448_v13  ;;  %1883 = vrsqrt.f32 %v1235_v16  ;;  %vm1294_vm15 = vmor %vm1292_vm14, %vm1293_vm13  ;;  %vm1302_vm4 = vweird.f32 %v1235_v16  ;;  %v1908_v13 = vld [vmem:[%s2127_s28 + $0x60] sm:$0xff] }
 0x27f   : > { %v1285_v23 = vsel %vm1284_vm12, %v1878_v47, %v1281_v19  ;;  %v1288_v25 = vmul.f32 %v1880_v55, %v1287_v20 }
 0x280   : > { %1480 = vst [vmem:[%s2668_s21 + $0x10] sm:$0xff] %v1464_v7  ;;  %v1409_v17 = vmul.f32 %v1285_v23, %v2571_v54 }
 0x281   : > { %v1882_v18 = vpop.eup %1881  ;;  %v1289_v14 = vmul.f32 0.5, %v1288_v25  ;;  %v1195_v10 = vpop.xlane.xlu1 %1194 }
 0x282   : > { %v1367_v57 = vmul.f32 %v1882_v18, %v1242_v5  ;;  %v1429_v32 = vmul.f32 %v2653_v2, %v1409_v17  ;;  %v1220_v42 = vmul.f32 %v1195_v10, %v2552_v40  ;;  %vm1373_vm0 = vweird.f32 %v1882_v18  ;;  %v1909_v17 = vld [vmem:[%s2127_s28 + $0x28] sm:$0xff] }
 0x283   : > { %v1290_v34 = vsub.f32 1.5, %v1289_v14  ;;  %vm1374_vm2 = vmor %vm1372_vm1, %vm1373_vm0 }
 0x284   : > { %v1368_v41 = vmul.f32 %v1882_v18, %v1367_v57  ;;  %v1884_v6 = vpop.eup %1883  ;;  %v1449_v38 = vadd.f32 %v2659_v8, %v1429_v32  ;;  %v1236_v39 = vadd.f32 1e-05, %v1220_v42 }
 0x285   : > { %v1291_v61 = vmul.f32 %v1880_v55, %v1290_v34  ;;  %v1297_v54 = vmul.f32 %v1884_v6, %v1235_v16  ;;  %vm1303_vm3 = vweird.f32 %v1884_v6 }
 0x286   : > { %v1369_v45 = vmul.f32 0.5, %v1368_v41  ;;  %v1465_v62 = vadd.f32 %v1906_v31, %v1449_v38  ;;  %1885 = vrsqrt.f32 %v1236_v39  ;;  %vm1304_vm5 = vmor %vm1302_vm4, %vm1303_vm3  ;;  %vm1312_vm7 = vweird.f32 %v1236_v39 }
 0x287   : > { %v1295_v44 = vsel %vm1294_vm15, %v1880_v55, %v1291_v61  ;;  %v1298_v46 = vmul.f32 %v1884_v6, %v1297_v54 }
 0x288   : > { %v1370_v49 = vsub.f32 1.5, %v1369_v45  ;;  %1481 = vst [vmem:[%s2668_s21 + $0x18] sm:$0xff] %v1465_v62  ;;  %v1410_v50 = vmul.f32 %v1295_v44, %v2577_v53  ;;  %v1910_v62 = vld [vmem:[%s2127_s28 + $0x30] sm:$0xff] }
 0x289   : > { %v1299_v43 = vmul.f32 0.5, %v1298_v46  ;;  %v1197_v47 = vpop.xlane.xlu2 %1196 }
 0x28a   : > { %v1371_v33 = vmul.f32 %v1882_v18, %v1370_v49  ;;  %v1430_v58 = vmul.f32 %v2653_v2, %v1410_v50  ;;  %v1221_v59 = vmul.f32 %v1197_v47, %v2552_v40 }
 0x28b   : > { %v1300_v35 = vsub.f32 1.5, %v1299_v43 }
 0x28c   : > { %v1375_v60 = vsel %vm1374_vm2, %v1882_v18, %v1371_v33  ;;  %v1886_v27 = vpop.eup %1885  ;;  %v1450_v1 = vadd.f32 %v2659_v8, %v1430_v58  ;;  %v1237_v53 = vadd.f32 1e-05, %v1221_v59 }
 0x28d   : > { %v1418_v0 = vmul.f32 %v1375_v60, %v2583_v26  ;;  %v1301_v29 = vmul.f32 %v1884_v6, %v1300_v35  ;;  %v1307_v3 = vmul.f32 %v1886_v27, %v1236_v39  ;;  %vm1313_vm6 = vweird.f32 %v1886_v27 }
 0x28e   : > { %v1466_v5 = vadd.f32 %v1907_v4, %v1450_v1  ;;  %1887 = vrsqrt.f32 %v1237_v53  ;;  %vm1314_vm8 = vmor %vm1312_vm7, %vm1313_vm6  ;;  %vm1322_vm10 = vweird.f32 %v1237_v53 }
 0x28f   : > { %v1438_v9 = vmul.f32 %v2653_v2, %v1418_v0  ;;  %v1305_v11 = vsel %vm1304_vm5, %v1884_v6, %v1301_v29  ;;  %v1308_v12 = vmul.f32 %v1886_v27, %v1307_v3  ;;  %v1911_v29 = vld [vmem:[%s2127_s28 + $0x38] sm:$0xff] }
 0x290   : > { %1482 = vst [vmem:[%s2668_s21 + $0x20] sm:$0xff] %v1466_v5  ;;  %v1411_v52 = vmul.f32 %v1305_v11, %v2589_v24 }
 0x291   : > { %v1458_v56 = vadd.f32 %v2659_v8, %v1438_v9  ;;  %v1309_v26 = vmul.f32 0.5, %v1308_v12  ;;  %v1199_v55 = vpop.xlane.xlu0 %1198 }
 0x292   : > { %v1431_v19 = vmul.f32 %v2653_v2, %v1411_v52  ;;  %v1222_v20 = vmul.f32 %v1199_v55, %v2552_v40 }
 0x293   : > { %v1474_v16 = vadd.f32 %v1908_v13, %v1458_v56  ;;  %v1310_v37 = vsub.f32 1.5, %v1309_v26 }
 0x294   : > { %v1888_v7 = vpop.eup %1887  ;;  %v1451_v23 = vadd.f32 %v2659_v8, %v1431_v19  ;;  %v1238_v25 = vadd.f32 1e-05, %v1222_v20 }
 0x295   : > { %1490 = vst [vmem:[%s2668_s21 + $0x60] sm:$0xff] %v1474_v16  ;;  %v1311_v18 = vmul.f32 %v1886_v27, %v1310_v37  ;;  %v1317_v24 = vmul.f32 %v1888_v7, %v1237_v53  ;;  %vm1323_vm9 = vweird.f32 %v1888_v7 }
 0x296   : > { %v1467_v14 = vadd.f32 %v1909_v17, %v1451_v23  ;;  %1889 = vrsqrt.f32 %v1238_v25  ;;  %vm1324_vm11 = vmor %vm1322_vm10, %vm1323_vm9  ;;  %vm1332_vm13 = vweird.f32 %v1238_v25 }
 0x297   : > { %v1315_v57 = vsel %vm1314_vm8, %v1886_v27, %v1311_v18  ;;  %v1318_v10 = vmul.f32 %v1888_v7, %v1317_v24 }
 0x298   : > { %1483 = vst [vmem:[%s2668_s21 + $0x28] sm:$0xff] %v1467_v14  ;;  %v1412_v32 = vmul.f32 %v1315_v57, %v2595_v28 }
 0x299   : > { %v1319_v42 = vmul.f32 0.5, %v1318_v10  ;;  %v1201_v34 = vpop.xlane.xlu1 %1200 }
 0x29a   : > { %v1432_v41 = vmul.f32 %v2653_v2, %v1412_v32  ;;  %v1223_v6 = vmul.f32 %v1201_v34, %v2552_v40 }
 0x29b   : > { %v1320_v38 = vsub.f32 1.5, %v1319_v42 }
 0x29c   : > { %v1890_v39 = vpop.eup %1889  ;;  %v1452_v61 = vadd.f32 %v2659_v8, %v1432_v41  ;;  %v1239_v45 = vadd.f32 1e-05, %v1223_v6 }
 0x29d   : > { %v1321_v54 = vmul.f32 %v1888_v7, %v1320_v38  ;;  %v1327_v31 = vmul.f32 %v1890_v39, %v1238_v25  ;;  %vm1333_vm12 = vweird.f32 %v1890_v39  ;;  %v1912_v25 = vld [vmem:[%s2127_s28 + $0x40] sm:$0xff] }
 0x29e   : > { %v1468_v44 = vadd.f32 %v1910_v62, %v1452_v61  ;;  %1891 = vrsqrt.f32 %v1239_v45  ;;  %vm1334_vm14 = vmor %vm1332_vm13, %vm1333_vm12  ;;  %vm1342_vm0 = vweird.f32 %v1239_v45 }
 0x29f   : > { %v1325_v28 = vsel %vm1324_vm11, %v1888_v7, %v1321_v54  ;;  %v1328_v49 = vmul.f32 %v1890_v39, %v1327_v31 }
 0x2a0   : > { %1484 = vst [vmem:[%s2668_s21 + $0x30] sm:$0xff] %v1468_v44  ;;  %v1413_v46 = vmul.f32 %v1325_v28, %v2601_v30  ;;  %v1913_v44 = vld [vmem:[%s2127_s28 + $0x48] sm:$0xff] }
 0x2a1   : > { %v1329_v50 = vmul.f32 0.5, %v1328_v49  ;;  %v1203_v33 = vpop.xlane.xlu2 %1202  ;;  %v1213_v43 = vpop.xlane.xlu1 %1212 }
 0x2a2   : > { %v1433_v47 = vmul.f32 %v2653_v2, %v1413_v46  ;;  %v1224_v58 = vmul.f32 %v1203_v33, %v2552_v40  ;;  %v1229_v59 = vmul.f32 %v1213_v43, %v2552_v40 }
 0x2a3   : > { %v1330_v60 = vsub.f32 1.5, %v1329_v50 }
 0x2a4   : > { %v1892_v35 = vpop.eup %1891  ;;  %v1453_v27 = vadd.f32 %v2659_v8, %v1433_v47  ;;  %v1240_v1 = vadd.f32 1e-05, %v1224_v58  ;;  %v2718_v0 = vadd.f32 1e-05, %v1229_v59 }
 0x2a5   : > { %v1331_v30 = vmul.f32 %v1890_v39, %v1330_v60  ;;  %v1337_v53 = vmul.f32 %v1892_v35, %v1239_v45  ;;  %vm1343_vm15 = vweird.f32 %v1892_v35 }
 0x2a6   : > { %v1469_v3 = vadd.f32 %v1911_v29, %v1453_v27  ;;  %1893 = vrsqrt.f32 %v1240_v1  ;;  %vm1344_vm1 = vmor %vm1342_vm0, %vm1343_vm15  ;;  %vm1352_vm4 = vweird.f32 %v1240_v1  ;;  %vm1402_vm6 = vweird.f32 %v2718_v0 }
 0x2a7   : > { %v1335_v4 = vsel %vm1334_vm14, %v1890_v39, %v1331_v30  ;;  %v1338_v5 = vmul.f32 %v1892_v35, %v1337_v53  ;;  %1895 = vrsqrt.f32 %v2718_v0 }
 0x2a8   : > { %1485 = vst [vmem:[%s2668_s21 + $0x38] sm:$0xff] %v1469_v3  ;;  %v1414_v9 = vmul.f32 %v1335_v4, %v2607_v15 }
 0x2a9   : > { %v1339_v11 = vmul.f32 0.5, %v1338_v5  ;;  %v1209_v12 = vpop.xlane.xlu2 %1208  ;;  %v1205_v56 = vpop.xlane.xlu0 %1204 }
 0x2aa   : > { %v1434_v52 = vmul.f32 %v2653_v2, %v1414_v9  ;;  %v1227_v26 = vmul.f32 %v1209_v12, %v2552_v40  ;;  %v1225_v55 = vmul.f32 %v1205_v56, %v2552_v40  ;;  %v1915_v9 = vld [vmem:[%s2127_s28 + $0x78] sm:$0xff] }
 0x2ab   : > { %v1340_v13 = vsub.f32 1.5, %v1339_v11 }
 0x2ac   : > { %v1894_v16 = vpop.eup %1893  ;;  %v1454_v19 = vadd.f32 %v2659_v8, %v1434_v52  ;;  %v2728_v20 = vadd.f32 1e-05, %v1227_v26  ;;  %v2730_v37 = vadd.f32 1e-05, %v1225_v55 }
 0x2ad   : > { %v1896_v15 = vpop.eup %1895  ;;  %v1341_v7 = vmul.f32 %v1892_v35, %v1340_v13  ;;  %v1347_v23 = vmul.f32 %v1894_v16, %v1240_v1  ;;  %vm1353_vm2 = vweird.f32 %v1894_v16 }
 0x2ae   : > { %v1470_v18 = vadd.f32 %v1912_v25, %v1454_v19  ;;  %v1397_v24 = vmul.f32 %v1896_v15, %v2718_v0  ;;  %1897 = vrsqrt.f32 %v2728_v20  ;;  %vm1403_vm3 = vweird.f32 %v1896_v15  ;;  %vm1354_vm5 = vmor %vm1352_vm4, %vm1353_vm2 }
 0x2af   : > { %v1345_v17 = vsel %vm1344_vm1, %v1892_v35, %v1341_v7  ;;  %v1348_v14 = vmul.f32 %v1894_v16, %v1347_v23  ;;  %1899 = vrsqrt.f32 %v2730_v37  ;;  %vm1404_vm7 = vmor %vm1402_vm6, %vm1403_vm3  ;;  %vm1382_vm10 = vweird.f32 %v2728_v20 }
 0x2b0   : > { %1486 = vst [vmem:[%s2668_s21 + $0x40] sm:$0xff] %v1470_v18  ;;  %v1415_v57 = vmul.f32 %v1345_v17, %v2613_v22  ;;  %v1398_v10 = vmul.f32 %v1896_v15, %v1397_v24  ;;  %vm1362_vm12 = vweird.f32 %v2730_v37 }
 0x2b1   : > { %v1349_v32 = vmul.f32 0.5, %v1348_v14  ;;  %v1211_v42 = vpop.xlane.xlu0 %1210 }
 0x2b2   : > { %v1435_v34 = vmul.f32 %v2653_v2, %v1415_v57  ;;  %v1399_v41 = vmul.f32 0.5, %v1398_v10  ;;  %v1228_v6 = vmul.f32 %v1211_v42, %v2552_v40  ;;  %v1918_v57 = vld [vmem:[%s2127_s28 + $0x70] sm:$0xff] }
 0x2b3   : > { %v1350_v38 = vsub.f32 1.5, %v1349_v32 }
 0x2b4   : > { %v1898_v39 = vpop.eup %1897  ;;  %v1455_v61 = vadd.f32 %v2659_v8, %v1435_v34  ;;  %v1400_v45 = vsub.f32 1.5, %v1399_v41  ;;  %v2741_v54 = vadd.f32 1e-05, %v1228_v6 }
 0x2b5   : > { %v1900_v22 = vpop.eup %1899  ;;  %v1351_v31 = vmul.f32 %v1894_v16, %v1350_v38  ;;  %v1377_v62 = vmul.f32 %v1898_v39, %v2728_v20  ;;  %vm1383_vm8 = vweird.f32 %v1898_v39 }
 0x2b6   : > { %v1471_v28 = vadd.f32 %v1913_v44, %v1455_v61  ;;  %v1401_v49 = vmul.f32 %v1896_v15, %v1400_v45  ;;  %v1357_v40 = vmul.f32 %v1900_v22, %v2730_v37  ;;  %1901 = vrsqrt.f32 %v2741_v54  ;;  %vm1384_vm11 = vmor %vm1382_vm10, %vm1383_vm8 }
 0x2b7   : > { %v1355_v46 = vsel %vm1354_vm5, %v1894_v16, %v1351_v31  ;;  %v1378_v50 = vmul.f32 %v1898_v39, %v1377_v62  ;;  %vm1363_vm9 = vweird.f32 %v1900_v22  ;;  %vm1392_vm15 = vweird.f32 %v2741_v54 }
 0x2b8   : > { %1487 = vst [vmem:[%s2668_s21 + $0x48] sm:$0xff] %v1471_v28  ;;  %v1416_v33 = vmul.f32 %v1355_v46, %v2620_v36  ;;  %v1405_v43 = vsel %vm1404_vm7, %v1896_v15, %v1401_v49  ;;  %v1358_v47 = vmul.f32 %v1900_v22, %v1357_v40  ;;  %vm1364_vm13 = vmor %vm1362_vm12, %vm1363_vm9  ;;  %v1916_v15 = vld [vmem:[%s2127_s28 + $0x68] sm:$0xff] }
 0x2b9   : > { %v1421_v58 = vmul.f32 %v1405_v43, %v2623_v48  ;;  %v1379_v59 = vmul.f32 0.5, %v1378_v50  ;;  %v1914_v48 = vld [vmem:[%s2127_s28 + $0x50] sm:$0xff] }
 0x2ba   : > { %v1436_v60 = vmul.f32 %v2653_v2, %v1416_v33  ;;  %v1359_v35 = vmul.f32 0.5, %v1358_v47 }
 0x2bb   : > { %v1441_v27 = vmul.f32 %v2653_v2, %v1421_v58  ;;  %v1380_v1 = vsub.f32 1.5, %v1379_v59 }
 0x2bc   : > { %v1456_v0 = vadd.f32 %v2659_v8, %v1436_v60  ;;  %v1360_v30 = vsub.f32 1.5, %v1359_v35  ;;  %v1902_v36 = vpop.eup %1901 }
 0x2bd   : > { %v1461_v53 = vadd.f32 %v2659_v8, %v1441_v27  ;;  %v1381_v29 = vmul.f32 %v1898_v39, %v1380_v1  ;;  %v1387_v5 = vmul.f32 %v1902_v36, %v2741_v54  ;;  %vm1393_vm14 = vweird.f32 %v1902_v36 }
 0x2be   : > { %v1472_v3 = vadd.f32 %v1914_v48, %v1456_v0  ;;  %v1361_v4 = vmul.f32 %v1900_v22, %v1360_v30  ;;  %vm1394_vm0 = vmor %vm1392_vm15, %vm1393_vm14 }
 0x2bf   : > { %v1477_v11 = vadd.f32 %v1915_v9, %v1461_v53  ;;  %v1385_v12 = vsel %vm1384_vm11, %v1898_v39, %v1381_v29  ;;  %v1388_v26 = vmul.f32 %v1902_v36, %v1387_v5 }
 0x2c0   : > { %1488 = vst [vmem:[%s2668_s21 + $0x50] sm:$0xff] %v1472_v3  ;;  %v1419_v56 = vmul.f32 %v1385_v12, %v2631_v21  ;;  %v1365_v52 = vsel %vm1364_vm13, %v1900_v22, %v1361_v4 }
 0x2c1   : > { %1493 = vst [vmem:[%s2668_s21 + $0x78] sm:$0xff] %v1477_v11  ;;  %v1417_v55 = vmul.f32 %v1365_v52, %v2635_v51  ;;  %v1389_v16 = vmul.f32 0.5, %v1388_v26  ;;  %v1917_v51 = vld [vmem:[%s2127_s28 + $0x58] sm:$0xff] }
 0x2c2   : > { %v1439_v13 = vmul.f32 %v2653_v2, %v1419_v56 }
 0x2c3   : > { %v1437_v19 = vmul.f32 %v2653_v2, %v1417_v55  ;;  %v1390_v37 = vsub.f32 1.5, %v1389_v16 }
 0x2c4   : > { %v1459_v20 = vadd.f32 %v2659_v8, %v1439_v13 }
 0x2c5   : > { %v1457_v21 = vadd.f32 %v2659_v8, %v1437_v19  ;;  %v1391_v23 = vmul.f32 %v1902_v36, %v1390_v37 }
 0x2c6   : > { %v1475_v7 = vadd.f32 %v1916_v15, %v1459_v20 }
 0x2c7   : > { %v1473_v25 = vadd.f32 %v1917_v51, %v1457_v21  ;;  %v1395_v18 = vsel %vm1394_vm0, %v1902_v36, %v1391_v23 }
 0x2c8   : > { %1491 = vst [vmem:[%s2668_s21 + $0x68] sm:$0xff] %v1475_v7  ;;  %v1420_v24 = vmul.f32 %v1395_v18, %v2643_v63 }
 0x2c9   : > { %1489 = vst [vmem:[%s2668_s21 + $0x58] sm:$0xff] %v1473_v25 }
 0x2ca   : > { %v1440_v17 = vmul.f32 %v2653_v2, %v1420_v24 }
 0x2cc   : > { %v1460_v14 = vadd.f32 %v2659_v8, %v1440_v17 }
 0x2ce   : > { %v1476_v10 = vadd.f32 %v1918_v57, %v1460_v14 }
 0x2d0   : > { %1492 = vst [vmem:[%s2668_s21 + $0x70] sm:$0xff] %v1476_v10 }
 0x2d1   : > { %1946 = shalt.err (!%p1943_p3)
}
 0x2d2   : > { %s1984_s28 = smov 128   ;;  %s1985_s23 = smov 8  }
 0x2d3   : > { %1759 = dma.vmem_to_hbm [thread:$0]  (%p2074_p5), %s1508_s25, 2048, %s1510_s26, %s1495_s13, %s1984_s28, %s1984_s28, %s1985_s23  }
 0x2d4 PF: > { %p1765_p4 = scmp.ge.s32.totalorder %s1981_s12, 2  ;;  %s1524_s21 = sand.u32 1, %s1969_s30  }
 0x2d5   : > { %s1525_s14 = scalar_lea.sflag [#allocation3], %s1524_s21 }
 0x2d6   : > { %p1762_p7 = pnand %p1765_p4, %p2078_p6 }
 0x2d8   : > { %p1763_p8 = pneg %p1762_p7 }
 0x2da   : > { %1964 = dma.done.wait (%p1763_p8), %s1525_s14, 2048  }
 0x2db   : > { %1966 = vsyncadd (%p1763_p8), %s1525_s14, 4294965248  ;;  %p19_p9 = scmp.ge.s32.totalorder %s2061_s15, 4   ;;  %s2846_s30 = smov %s1973_s10 }
 0x2dc   : > { %s2847_s10 = smov %s1977_s11  ;;  %s2848_s11 = smov %s2072_s18 }
 0x2dd   : > { %s2849_s12 = smov %s2061_s15  ;;  %21 = sbr.rel (!%p19_p9) target bundleno = 3 (0x3), region = 94 }
 0x2e2   :  { %1531 = vsyncpa [#allocation3], 1 }
 0x2e3   :  { %1533 = vsyncpa [#allocation3 + $0x1], 1 }

// kernel: graphcast_processor_forward.5
= control target key start
LH: loop header
LB: loop body
LE: loop exit
PB: predicated region body
PF: predicated region fallthrough
CT: control target
= control target key end

     0   :  { %s1923_s30 = smov 0   ;;  %s2627_s0 = inlined_call_operand.vmem [shape: f32[256,128], index: 0, kind: input, shape index: {}]   ;;  %s2628_s1 = inlined_call_operand.vmem [shape: f32[256,128], index: 1, kind: input, shape index: {}]   ;;  %s2629_s2 = inlined_call_operand.vmem [shape: bf16[128,128], index: 2, kind: input, shape index: {}]   ;;  %s2630_s3 = inlined_call_operand.vmem [shape: bf16[128,128], index: 3, kind: input, shape index: {}]   ;;  %s2631_s4 = inlined_call_operand.vmem [shape: f32[1,128], index: 4, kind: input, shape index: {}, may-alias: {4,6,8}]   ;;  %s2632_s5 = inlined_call_operand.vmem [shape: bf16[128,128], index: 5, kind: input, shape index: {}]   ;;  %s2633_s6 = inlined_call_operand.vmem [shape: f32[1,128], index: 6, kind: input, shape index: {}, may-alias: {4,6,8}]   ;;  %s2634_s7 = inlined_call_operand.vmem [shape: f32[1,128], index: 7, kind: input, shape index: {}]   ;;  %s2635_s8 = inlined_call_operand.vmem [shape: f32[1,128], index: 8, kind: input, shape index: {}, may-alias: {4,6,8}]   ;;  %s2636_s9 = inlined_call_operand.vmem [shape: f32[256,128], index: 9, kind: output, shape index: {}]  }
   0x1 LB: > { %s1564_s10 = sadd.s32 4294967295, %s1870_s30   ;;  %p1568_p0 = scmp.ge.s32.totalorder %s1870_s30, 1  ;;  %s1870_s30 = sphi %s1923_s30, %s19_s30  }
   0x2   : > { %p299_p1 = scmp.lt.s32.totalorder %s1870_s30, 3 }
   0x4   : > { %p300_p2 = pnand %p1568_p0, %p299_p1 }
   0x5   : > { %s1569_s23 = sshll.u32 (!%p300_p2), %s1564_s10, 4 }
   0x6   : > { %303 = sbr.rel (%p300_p2) target bundleno = 713 (0x2c9), region = 56  ;;  %p341_p3 = scmp.lt.s32.totalorder (!%p300_p2), %s1569_s23, 31 }
   0xb   : > { %v1704_v0 = vld [vmem:[%s2630_s3 + $0x38] sm:$0xff]  ;;  %v1703_v2 = vld [vmem:[%s2630_s3 + $0x30] sm:$0xff]  ;;  %v1702_v4 = vld [vmem:[%s2630_s3 + $0x28] sm:$0xff]  ;;  %s2660_s23 = smov (!%p341_p3, %s1569_s23), 31 }
   0xc   : > { %v1696_v1 = vld [vmem:[%s2629_s2 + $0x38] sm:$0xff]  ;;  %486 = vmatpush.bf16.msra.mxu0 %v1704_v0  ;;  %1713 = vmatpush.bf16.msra.mxu3 %v1704_v0  ;;  %v1695_v3 = vld [vmem:[%s2629_s2 + $0x30] sm:$0xff]  ;;  %v1694_v5 = vld [vmem:[%s2629_s2 + $0x28] sm:$0xff]  ;;  %s1967_s16 = sshll.u32 %s2660_s23, 3 }
   0xd   : > { %583 = vmatpush.bf16.msra.mxu1 %v1696_v1  ;;  %v1701_v6 = vld [vmem:[%s2630_s3 + $0x20] sm:$0xff]  ;;  %v1700_v8 = vld [vmem:[%s2630_s3 + $0x18] sm:$0xff]  ;;  %v1699_v10 = vld [vmem:[%s2630_s3 + $0x10] sm:$0xff]  ;;  %s1976_s21 = scalar_lea.vmem %s2628_s1, %s1967_s16  ;;  %s1985_s26 = scalar_lea.vmem %s2627_s0, %s1967_s16 }
   0xe   : > { %v1693_v7 = vld [vmem:[%s2629_s2 + $0x20] sm:$0xff]  ;;  %v1692_v9 = vld [vmem:[%s2629_s2 + $0x18] sm:$0xff]  ;;  %v1691_v11 = vld [vmem:[%s2629_s2 + $0x10] sm:$0xff]  ;;  %s2518_s20 = scalar_lea.vmem %s2636_s9, %s1967_s16 }
   0xf   : > { %v1698_v12 = vld [vmem:[%s2630_s3 + $0x8] sm:$0xff]  ;;  %v1697_v14 = vld [vmem:[%s2630_s3] sm:$0xff]  ;;  %v400_v25 = vld [vmem:[%s1976_s21 + $0x10] sm:$0xff] }
  0x10   : > { %487 = vmatpush.bf16.msra.mxu0 %v1703_v2  ;;  %1714 = vmatpush.bf16.msra.mxu3 %v1703_v2  ;;  %v1690_v13 = vld [vmem:[%s2629_s2 + $0x8] sm:$0xff]  ;;  %v398_v15 = vld [vmem:[%s1976_s21] sm:$0xff]  ;;  %v401_v26 = vld [vmem:[%s1976_s21 + $0x18] sm:$0xff] }
  0x11   : > { %584 = vmatpush.bf16.msra.mxu1 %v1695_v3  ;;  %v399_v16 = vld [vmem:[%s1976_s21 + $0x8] sm:$0xff]  ;;  %v410_v17 = vld [vmem:[%s1976_s21 + $0x60] sm:$0xff]  ;;  %v412_v27 = vld [vmem:[%s1976_s21 + $0x70] sm:$0xff]  ;;  %v415_v31 = vpack.c.bf16 %v401_v26, %v400_v25 }
  0x12   : > { %v411_v18 = vld [vmem:[%s1976_s21 + $0x68] sm:$0xff]  ;;  %v1689_v19 = vld [vmem:[%s2629_s2] sm:$0xff]  ;;  %v414_v22 = vpack.c.bf16 %v399_v16, %v398_v15  ;;  %v413_v28 = vld [vmem:[%s1976_s21 + $0x78] sm:$0xff] }
  0x13   : > { %v358_v20 = vld [vmem:[%s1985_s26] sm:$0xff]  ;;  %v359_v21 = vld [vmem:[%s1985_s26 + $0x8] sm:$0xff]  ;;  %v420_v23 = vpack.c.bf16 %v411_v18, %v410_v17  ;;  %v360_v29 = vld [vmem:[%s1985_s26 + $0x10] sm:$0xff]  ;;  %v421_v32 = vpack.c.bf16 %v413_v28, %v412_v27 }
  0x14   : > { %488 = vmatpush.bf16.msra.mxu0 %v1702_v4  ;;  %1715 = vmatpush.bf16.msra.mxu3 %v1702_v4  ;;  %v374_v24 = vpack.c.bf16 %v359_v21, %v358_v20  ;;  %v361_v30 = vld [vmem:[%s1985_s26 + $0x18] sm:$0xff]  ;;  %v402_v34 = vld [vmem:[%s1976_s21 + $0x20] sm:$0xff]  ;;  %v403_v35 = vld [vmem:[%s1976_s21 + $0x28] sm:$0xff] }
  0x15   : > { %585 = vmatpush.bf16.msra.mxu1 %v1694_v5  ;;  %v375_v33 = vpack.c.bf16 %v361_v30, %v360_v29  ;;  %v370_v36 = vld [vmem:[%s1985_s26 + $0x60] sm:$0xff]  ;;  %v371_v37 = vld [vmem:[%s1985_s26 + $0x68] sm:$0xff]  ;;  %v416_v40 = vpack.c.bf16 %v403_v35, %v402_v34  ;;  %v404_v43 = vld [vmem:[%s1976_s21 + $0x30] sm:$0xff] }
  0x16   : > { %v362_v38 = vld [vmem:[%s1985_s26 + $0x20] sm:$0xff]  ;;  %v363_v39 = vld [vmem:[%s1985_s26 + $0x28] sm:$0xff]  ;;  %v380_v41 = vpack.c.bf16 %v371_v37, %v370_v36  ;;  %v405_v44 = vld [vmem:[%s1976_s21 + $0x38] sm:$0xff] }
  0x17   : > { %v376_v42 = vpack.c.bf16 %v363_v39, %v362_v38  ;;  %v372_v45 = vld [vmem:[%s1985_s26 + $0x70] sm:$0xff]  ;;  %v373_v46 = vld [vmem:[%s1985_s26 + $0x78] sm:$0xff]  ;;  %v417_v49 = vpack.c.bf16 %v405_v44, %v404_v43  ;;  %v406_v52 = vld [vmem:[%s1976_s21 + $0x40] sm:$0xff] }
  0x18   : > { %489 = vmatpush.bf16.msra.mxu0 %v1701_v6  ;;  %1716 = vmatpush.bf16.msra.mxu3 %v1701_v6  ;;  %v364_v47 = vld [vmem:[%s1985_s26 + $0x30] sm:$0xff]  ;;  %v365_v48 = vld [vmem:[%s1985_s26 + $0x38] sm:$0xff]  ;;  %v381_v50 = vpack.c.bf16 %v373_v46, %v372_v45  ;;  %v407_v53 = vld [vmem:[%s1976_s21 + $0x48] sm:$0xff] }
  0x19   : > { %586 = vmatpush.bf16.msra.mxu1 %v1693_v7  ;;  %v377_v51 = vpack.c.bf16 %v365_v48, %v364_v47  ;;  %v366_v54 = vld [vmem:[%s1985_s26 + $0x40] sm:$0xff]  ;;  %v367_v55 = vld [vmem:[%s1985_s26 + $0x48] sm:$0xff]  ;;  %v418_v56 = vpack.c.bf16 %v407_v53, %v406_v52  ;;  %v408_v58 = vld [vmem:[%s1976_s21 + $0x50] sm:$0xff] }
  0x1a   : > { %v378_v57 = vpack.c.bf16 %v367_v55, %v366_v54  ;;  %v409_v59 = vld [vmem:[%s1976_s21 + $0x58] sm:$0xff]  ;;  %v368_v60 = vld [vmem:[%s1985_s26 + $0x50] sm:$0xff]  ;;  %v1710_v2 = vld [vmem:[%s2632_s5 + $0x28] sm:$0xff] }
  0x1b   : > { %v369_v61 = vld [vmem:[%s1985_s26 + $0x58] sm:$0xff]  ;;  %v419_v62 = vpack.c.bf16 %v409_v59, %v408_v58  ;;  %v2043_v6 = vld [vmem:[%s2631_s4] ss:$0 sm:$0xff] }
  0x1c   : > { %490 = vmatpush.bf16.msra.mxu0 %v1700_v8  ;;  %1717 = vmatpush.bf16.msra.mxu3 %v1700_v8  ;;  %v379_v63 = vpack.c.bf16 %v369_v61, %v368_v60  ;;  %v1712_v0 = vld [vmem:[%s2632_s5 + $0x38] sm:$0xff]  ;;  %v1707_v8 = vld [vmem:[%s2632_s5 + $0x10] sm:$0xff]  ;;  %v1705_v16 = vld [vmem:[%s2632_s5] sm:$0xff] }
  0x1d   : > { %587 = vmatpush.bf16.msra.mxu1 %v1692_v9  ;;  %1048 = vmatpush.bf16.msra.mxu2 %v1712_v0  ;;  %v1708_v4 = vld [vmem:[%s2632_s5 + $0x18] sm:$0xff] }
  0x20   : > { %491 = vmatpush.bf16.msra.mxu0 %v1699_v10  ;;  %1718 = vmatpush.bf16.msra.mxu3 %v1699_v10 }
  0x21   : > { %588 = vmatpush.bf16.msra.mxu1 %v1691_v11 }
  0x24   : > { %492 = vmatpush.bf16.msra.mxu0 %v1698_v12  ;;  %1719 = vmatpush.bf16.msra.mxu3 %v1698_v12 }
  0x25   : > { %589 = vmatpush.bf16.msra.mxu1 %v1690_v13 }
  0x28   : > { %493 = vmatpush.bf16.msra.mxu0 %v1697_v14  ;;  %1720 = vmatpush.bf16.msra.mxu3 %v1697_v14 }
  0x29   : > { %590 = vmatpush.bf16.msra.mxu1 %v1689_v19 }
  0x2b   : > { %494 = vmatmul.bf16.vlgmr.msra.gmra.mxu0 %v414_v22  ;;  %524 = vmatmul.bf16.vlgmr.msra.gmra.mxu3 %v420_v23 }
  0x2c   : > { %1721 = vmatpush.bf16.msrb.mxu3 %v1696_v1  ;;  %591 = vmatmul.bf16.vlgmr.msra.gmra.mxu1 %v374_v24  ;;  %v1711_v1 = vld [vmem:[%s2632_s5 + $0x30] sm:$0xff] }
  0x2d   : > { %1049 = vmatpush.bf16.msra.mxu2 %v1711_v1 }
  0x30   : > { %1722 = vmatpush.bf16.msrb.mxu3 %v1695_v3  ;;  %v1709_v3 = vld [vmem:[%s2632_s5 + $0x20] sm:$0xff] }
  0x31   : > { %1050 = vmatpush.bf16.msra.mxu2 %v1710_v2 }
  0x34   : > { %1723 = vmatpush.bf16.msrb.mxu3 %v1694_v5 }
  0x35   : > { %1051 = vmatpush.bf16.msra.mxu2 %v1709_v3 }
  0x38   : > { %1724 = vmatpush.bf16.msrb.mxu3 %v1693_v7 }
  0x39   : > { %1052 = vmatpush.bf16.msra.mxu2 %v1708_v4 }
  0x3b   : > { %499 = vmatmul.bf16.gmra.mxu0 %v415_v31  ;;  %529 = vmatmul.bf16.gmra.mxu3 %v421_v32 }
  0x3c   : > { %1725 = vmatpush.bf16.msrb.mxu3 %v1692_v9  ;;  %596 = vmatmul.bf16.gmra.mxu1 %v375_v33 }
  0x3d   : > { %1053 = vmatpush.bf16.msra.mxu2 %v1707_v8 }
  0x40   : > { %1726 = vmatpush.bf16.msrb.mxu3 %v1691_v11  ;;  %v1706_v11 = vld [vmem:[%s2632_s5 + $0x8] sm:$0xff] }
  0x41   : > { %1054 = vmatpush.bf16.msra.mxu2 %v1706_v11 }
  0x44   : > { %1727 = vmatpush.bf16.msrb.mxu3 %v1690_v13 }
  0x45   : > { %1055 = vmatpush.bf16.msra.mxu2 %v1705_v16 }
  0x48   : > { %1728 = vmatpush.bf16.msrb.mxu3 %v1689_v19 }
  0x4b   : > { %504 = vmatmul.bf16.gmra.mxu0 %v416_v40  ;;  %621 = vmatmul.bf16.vlgmr.msrb.gmra.mxu3 %v380_v41 }
  0x4c   : > { %601 = vmatmul.bf16.gmra.mxu1 %v376_v42  ;;  %1729 = vmatpush.bf16.msra.mxu3 %v1712_v0 }
  0x50   : > { %1730 = vmatpush.bf16.msra.mxu3 %v1711_v1 }
  0x54   : > { %1731 = vmatpush.bf16.msra.mxu3 %v1710_v2 }
  0x58   : > { %1732 = vmatpush.bf16.msra.mxu3 %v1709_v3 }
  0x5b   : > { %509 = vmatmul.bf16.gmra.mxu0 %v417_v49  ;;  %626 = vmatmul.bf16.gmra.mxu3 %v381_v50 }
  0x5c   : > { %606 = vmatmul.bf16.gmra.mxu1 %v377_v51  ;;  %1733 = vmatpush.bf16.msra.mxu3 %v1708_v4 }
  0x60   : > { %1734 = vmatpush.bf16.msra.mxu3 %v1707_v8 }
  0x64   : > { %1735 = vmatpush.bf16.msra.mxu3 %v1706_v11 }
  0x68   : > { %1736 = vmatpush.bf16.msra.mxu3 %v1705_v16 }
  0x6b   : > { %514 = vmatmul.bf16.gmra.mxu0 %v418_v56 }
  0x6c   : > { %611 = vmatmul.bf16.gmra.mxu1 %v378_v57 }
  0x7b   : > { %519 = vmatmul.bf16.gmra.mxu0 %v419_v62 }
  0x7c   : > { %616 = vmatmul.bf16.gmra.mxu1 %v379_v63 }
  0xa8   : > { %v495_v5 = vpop.f32.mrf.mxu0 }
  0xa9   : > { %v592_v7 = vpop.f32.mrf.mxu1 }
  0xaa   : > { %v593_v9 = vadd.f32 %v592_v7, %v495_v5 }
  0xac   : > { %v2049_v10 = vadd.f32 %v2043_v6, %v593_v9 }
  0xae   : > { %v1639_v12 = vmul.f32 -1.442695, %v2049_v10  ;;  %v2055_v13 = vpop.f32.mrf.mxu3 }
  0xb0   : > { %1750 = vpow2.f32 %v1639_v12  ;;  %v497_v14 = vpop.f32.mrf.mxu0 }
  0xb1   : > { %v594_v15 = vpop.f32.mrf.mxu1 }
  0xb2   : > { %v595_v17 = vadd.f32 %v594_v15, %v497_v14 }
  0xb4   : > { %v2061_v18 = vadd.f32 %v2043_v6, %v595_v17 }
  0xb6   : > { %v1751_v19 = vpop.eup %1750  ;;  %v1640_v20 = vmul.f32 -1.442695, %v2061_v18  ;;  %v2064_v21 = vpop.f32.mrf.mxu3 }
  0xb7   : > { %v700_v22 = vadd.f32 1.0, %v1751_v19 }
  0xb8   : > { %1752 = vpow2.f32 %v1640_v20  ;;  %v500_v23 = vpop.f32.mrf.mxu0 }
  0xb9   : > { %1754 = vrcp.f32 %v700_v22  ;;  %v597_v24 = vpop.f32.mrf.mxu1  ;;  %v727_v48 = vand.u32 2147483648, %v700_v22  ;;  %vm721_vm1 = vweird.f32 %v700_v22  ;;  %v725_v50 = vand.u32 2147483647, %v700_v22 }
  0xba   : > { %v598_v25 = vadd.f32 %v597_v24, %v500_v23 }
  0xbb   : > { %v728_v58 = vor.u32 1.1754944e-38, %v727_v48  ;;  %vm726_vm4 = vcmp.eq.f32.partialorder %v725_v50, 8.507059e+37 }
  0xbc   : > { %v2067_v26 = vadd.f32 %v2043_v6, %v598_v25 }
  0xbe   : > { %v1753_v27 = vpop.eup %1752  ;;  %v1641_v28 = vmul.f32 -1.442695, %v2067_v26  ;;  %v2070_v29 = vpop.f32.mrf.mxu3 }
  0xbf   : > { %v1755_v30 = vpop.eup %1754  ;;  %v701_v31 = vadd.f32 1.0, %v1753_v27 }
  0xc0   : > { %1756 = vpow2.f32 %v1641_v28  ;;  %v502_v32 = vpop.f32.mrf.mxu0  ;;  %v717_v33 = vmul.f32 %v1755_v30, %v700_v22  ;;  %vm722_vm0 = vweird.f32 %v1755_v30 }
  0xc1   : > { %1758 = vrcp.f32 %v701_v31  ;;  %v599_v34 = vpop.f32.mrf.mxu1  ;;  %vm2081_vm2 = vmor %vm721_vm1, %vm722_vm0  ;;  %v740_v53 = vand.u32 2147483647, %v701_v31  ;;  %v742_v54 = vand.u32 2147483648, %v701_v31  ;;  %vm736_vm5 = vweird.f32 %v701_v31 }
  0xc2   : > { %v600_v35 = vadd.f32 %v599_v34, %v502_v32  ;;  %v718_v36 = vsub.f32 1.0, %v717_v33 }
  0xc3   : > { %v743_v3 = vor.u32 1.1754944e-38, %v742_v54  ;;  %vm741_vm7 = vcmp.eq.f32.partialorder %v740_v53, 8.507059e+37 }
  0xc4   : > { %v2073_v37 = vadd.f32 %v2043_v6, %v600_v35  ;;  %v719_v38 = vmul.f32 %v1755_v30, %v718_v36 }
  0xc6   : > { %v1757_v39 = vpop.eup %1756  ;;  %v1642_v40 = vmul.f32 -1.442695, %v2073_v37  ;;  %v2076_v41 = vpop.f32.mrf.mxu3  ;;  %v720_v45 = vadd.f32 %v1755_v30, %v719_v38 }
  0xc7   : > { %v1759_v42 = vpop.eup %1758  ;;  %v2078_v43 = vadd.f32 1.0, %v1757_v39 }
  0xc8   : > { %1760 = vpow2.f32 %v1642_v40  ;;  %v505_v44 = vpop.f32.mrf.mxu0  ;;  %v732_v46 = vmul.f32 %v1759_v42, %v701_v31  ;;  %v724_v56 = vsel %vm2081_vm2, %v1755_v30, %v720_v45  ;;  %vm737_vm3 = vweird.f32 %v1759_v42 }
  0xc9   : > { %1762 = vrcp.f32 %v2078_v43  ;;  %v602_v47 = vpop.f32.mrf.mxu1  ;;  %v729_v2 = vsel %vm726_vm4, %v728_v58, %v724_v56  ;;  %vm738_vm6 = vmor %vm736_vm5, %vm737_vm3  ;;  %v755_v28 = vand.u32 2147483647, %v2078_v43  ;;  %v757_v35 = vand.u32 2147483648, %v2078_v43 }
  0xca   : > { %v603_v49 = vadd.f32 %v602_v47, %v505_v44  ;;  %v733_v51 = vsub.f32 1.0, %v732_v46  ;;  %vm751_vm9 = vweird.f32 %v2078_v43 }
  0xcb   : > { %vm756_vm11 = vcmp.eq.f32.partialorder %v755_v28, 8.507059e+37 }
  0xcc   : > { %v2086_v55 = vadd.f32 %v2043_v6, %v603_v49  ;;  %v734_v57 = vmul.f32 %v1759_v42, %v733_v51  ;;  %v758_v49 = vor.u32 1.1754944e-38, %v757_v35 }
  0xce   : > { %v1761_v59 = vpop.eup %1760  ;;  %v1643_v60 = vmul.f32 -1.442695, %v2086_v55  ;;  %v622_v61 = vpop.f32.mrf.mxu3  ;;  %v735_v62 = vadd.f32 %v1759_v42, %v734_v57 }
  0xcf   : > { %v2091_v63 = vpop.eup %1762  ;;  %v2093_v0 = vadd.f32 1.0, %v1761_v59  ;;  %v623_v1 = vadd.f32 %v622_v61, %v2055_v13  ;;  %v956_v13 = vmul.f32 %v729_v2, %v2049_v10 }
  0xd0   : > { %1764 = vpow2.f32 %v1643_v60  ;;  %v507_v4 = vpop.f32.mrf.mxu0  ;;  %v739_v5 = vsel %vm738_vm6, %v1759_v42, %v735_v62  ;;  %v747_v7 = vmul.f32 %v2091_v63, %v2078_v43  ;;  %vm752_vm8 = vweird.f32 %v2091_v63 }
  0xd1   : > { %1766 = vrcp.f32 %v2093_v0  ;;  %v2100_v8 = vadd.f32 %v2043_v6, %v623_v1  ;;  %v604_v9 = vpop.f32.mrf.mxu1  ;;  %v744_v11 = vsel %vm741_vm7, %v743_v3, %v739_v5  ;;  %v770_v36 = vand.u32 2147483647, %v2093_v0  ;;  %vm2130_vm10 = vmor %vm751_vm9, %vm752_vm8 }
  0xd2   : > { %v605_v12 = vadd.f32 %v604_v9, %v507_v4  ;;  %v957_v14 = vmul.f32 %v744_v11, %v2061_v18  ;;  %v748_v15 = vsub.f32 1.0, %v747_v7  ;;  %v772_v46 = vand.u32 2147483648, %v2093_v0 }
  0xd3   : > { %v1651_v16 = vmul.f32 -1.442695, %v2100_v8  ;;  %vm766_vm13 = vweird.f32 %v2093_v0  ;;  %vm2140_vm14 = vcmp.eq.f32.partialorder %v770_v36, 8.507059e+37 }
  0xd4   : > { %v2106_v17 = vadd.f32 %v2043_v6, %v605_v12  ;;  %v972_v19 = vpack.c.bf16 %v957_v14, %v956_v13  ;;  %v749_v20 = vmul.f32 %v2091_v63, %v748_v15  ;;  %v773_v59 = vor.u32 1.1754944e-38, %v772_v46 }
  0xd5   : > { %1768 = vpow2.f32 %v1651_v16 }
  0xd6   : > { %v1765_v22 = vpop.eup %1764  ;;  %v1644_v23 = vmul.f32 -1.442695, %v2106_v17  ;;  %1056 = vmatmul.bf16.vlgmr.msra.gmra.mxu2 %v972_v19  ;;  %v624_v24 = vpop.f32.mrf.mxu3  ;;  %v750_v33 = vadd.f32 %v2091_v63, %v749_v20 }
  0xd7   : > { %v1767_v25 = vpop.eup %1766  ;;  %v2110_v27 = vadd.f32 1.0, %v1765_v22  ;;  %v625_v10 = vadd.f32 %v624_v24, %v2064_v21 }
  0xd8   : > { %1770 = vpow2.f32 %v1644_v23  ;;  %v510_v18 = vpop.f32.mrf.mxu0  ;;  %v762_v30 = vmul.f32 %v1767_v25, %v2093_v0  ;;  %v754_v47 = vsel %vm2130_vm10, %v2091_v63, %v750_v33  ;;  %vm767_vm12 = vweird.f32 %v1767_v25 }
  0xd9   : > { %1772 = vrcp.f32 %v2110_v27  ;;  %v2117_v31 = vadd.f32 %v2043_v6, %v625_v10  ;;  %v607_v32 = vpop.f32.mrf.mxu1  ;;  %v759_v58 = vsel %vm756_vm11, %v758_v49, %v754_v47  ;;  %vm768_vm15 = vmor %vm766_vm13, %vm767_vm12  ;;  %v785_v61 = vand.u32 2147483647, %v2110_v27 }
  0xda   : > { %v608_v34 = vadd.f32 %v607_v32, %v510_v18  ;;  %v763_v21 = vsub.f32 1.0, %v762_v30  ;;  %vm781_vm0 = vweird.f32 %v2110_v27  ;;  %v958_v9 = vmul.f32 %v759_v58, %v2067_v26 }
  0xdb   : > { %v1769_v38 = vpop.eup %1768  ;;  %v1652_v39 = vmul.f32 -1.442695, %v2117_v31  ;;  %vm2176_vm1 = vcmp.eq.f32.partialorder %v785_v61, 8.507059e+37 }
  0xdc   : > { %v2125_v40 = vadd.f32 1.0, %v1769_v38  ;;  %v2128_v42 = vadd.f32 %v2043_v6, %v608_v34  ;;  %v764_v45 = vmul.f32 %v1767_v25, %v763_v21 }
  0xdd   : > { %1774 = vpow2.f32 %v1652_v39 }
  0xde   : > { %v1771_v43 = vpop.eup %1770  ;;  %1776 = vrcp.f32 %v2125_v40  ;;  %v627_v48 = vpop.f32.mrf.mxu3  ;;  %v1645_v53 = vmul.f32 -1.442695, %v2128_v42  ;;  %v765_v56 = vadd.f32 %v1767_v25, %v764_v45  ;;  %v905_v5 = vand.u32 2147483647, %v2125_v40 }
  0xdf   : > { %v2144_v51 = vpop.eup %1772  ;;  %v2146_v52 = vadd.f32 1.0, %v1771_v43  ;;  %v628_v54 = vadd.f32 %v627_v48, %v2070_v29  ;;  %v787_v29 = vand.u32 2147483648, %v2110_v27  ;;  %v907_v13 = vand.u32 2147483648, %v2125_v40 }
  0xe0   : > { %v512_v57 = vpop.f32.mrf.mxu0  ;;  %v777_v60 = vmul.f32 %v2144_v51, %v2110_v27  ;;  %v769_v0 = vsel %vm768_vm15, %v1767_v25, %v765_v56  ;;  %vm901_vm2 = vweird.f32 %v2125_v40  ;;  %vm782_vm3 = vweird.f32 %v2144_v51 }
  0xe1   : > { %1778 = vrcp.f32 %v2146_v52  ;;  %v2155_v62 = vadd.f32 %v2043_v6, %v628_v54  ;;  %v609_v63 = vpop.f32.mrf.mxu1  ;;  %v774_v2 = vsel %vm2140_vm14, %v773_v59, %v769_v0  ;;  %v788_v22 = vor.u32 1.1754944e-38, %v787_v29  ;;  %vm2203_vm7 = vmor %vm781_vm0, %vm782_vm3 }
  0xe2   : > { %1780 = vpow2.f32 %v1645_v53  ;;  %v610_v1 = vadd.f32 %v609_v63, %v512_v57  ;;  %v778_v3 = vsub.f32 1.0, %v777_v60  ;;  %v959_v11 = vmul.f32 %v774_v2, %v2073_v37 }
  0xe3   : > { %v1775_v4 = vpop.eup %1774  ;;  %v1653_v7 = vmul.f32 -1.442695, %v2155_v62  ;;  %vm2183_vm4 = vcmp.eq.f32.partialorder %v905_v5, 8.507059e+37  ;;  %v908_v32 = vor.u32 1.1754944e-38, %v907_v13  ;;  %vm796_vm6 = vweird.f32 %v2146_v52 }
  0xe4   : > { %v2165_v12 = vpop.eup %1776  ;;  %v2168_v14 = vadd.f32 1.0, %v1775_v4  ;;  %v2171_v15 = vadd.f32 %v2043_v6, %v610_v1  ;;  %v779_v16 = vmul.f32 %v2144_v51, %v778_v3  ;;  %v973_v20 = vpack.c.bf16 %v959_v11, %v958_v9 }
  0xe5   : > { %v897_v19 = vmul.f32 %v2165_v12, %v2125_v40  ;;  %1782 = vpow2.f32 %v1653_v7  ;;  %vm902_vm5 = vweird.f32 %v2165_v12  ;;  %v800_v45 = vand.u32 2147483647, %v2146_v52 }
  0xe6   : > { %1784 = vrcp.f32 %v2168_v14  ;;  %v629_v37 = vpop.f32.mrf.mxu3  ;;  %v1646_v10 = vmul.f32 -1.442695, %v2171_v15  ;;  %1061 = vmatmul.bf16.gmra.mxu2 %v973_v20  ;;  %v780_v28 = vadd.f32 %v2144_v51, %v779_v16  ;;  %v802_v46 = vand.u32 2147483648, %v2146_v52  ;;  %vm2220_vm9 = vmor %vm901_vm2, %vm902_vm5 }
  0xe7   : > { %v1779_v23 = vpop.eup %1778  ;;  %v898_v24 = vsub.f32 1.0, %v897_v19  ;;  %v630_v18 = vadd.f32 %v629_v37, %v2076_v41  ;;  %vm916_vm8 = vweird.f32 %v2168_v14  ;;  %v920_v58 = vand.u32 2147483647, %v2168_v14 }
  0xe8   : > { %v1781_v30 = vpop.eup %1780  ;;  %v515_v33 = vpop.f32.mrf.mxu0  ;;  %v792_v34 = vmul.f32 %v1779_v23, %v2146_v52  ;;  %1786 = vpow2.f32 %v1646_v10  ;;  %v784_v27 = vsel %vm2203_vm7, %v2144_v51, %v780_v28  ;;  %vm797_vm10 = vweird.f32 %v1779_v23 }
  0xe9   : > { %v899_v35 = vmul.f32 %v2165_v12, %v898_v24  ;;  %v2194_v21 = vadd.f32 1.0, %v1781_v30  ;;  %v2197_v36 = vadd.f32 %v2043_v6, %v630_v18  ;;  %v612_v41 = vpop.f32.mrf.mxu1  ;;  %v922_v40 = vand.u32 2147483648, %v2168_v14  ;;  %vm798_vm11 = vmor %vm796_vm6, %vm797_vm10 }
  0xea   : > { %v613_v38 = vadd.f32 %v612_v41, %v515_v33  ;;  %v793_v44 = vsub.f32 1.0, %v792_v34  ;;  %v789_v60 = vsel %vm2176_vm1, %v788_v22, %v784_v27  ;;  %vm801_vm12 = vcmp.eq.f32.partialorder %v800_v45, 8.507059e+37 }
  0xeb   : > { %v1783_v47 = vpop.eup %1782  ;;  %v900_v43 = vadd.f32 %v2165_v12, %v899_v35  ;;  %1788 = vrcp.f32 %v2194_v21  ;;  %v1654_v48 = vmul.f32 -1.442695, %v2197_v36  ;;  %v803_v29 = vor.u32 1.1754944e-38, %v802_v46 }
  0xec   : > { %v1785_v49 = vpop.eup %1784  ;;  %v2224_v53 = vadd.f32 1.0, %v1783_v47  ;;  %v2227_v54 = vadd.f32 %v2043_v6, %v613_v38  ;;  %v794_v56 = vmul.f32 %v1779_v23, %v793_v44  ;;  %vm921_vm14 = vcmp.eq.f32.partialorder %v920_v58, 8.507059e+37 }
  0xed   : > { %v904_v51 = vsel %vm2220_vm9, %v2165_v12, %v900_v43  ;;  %v912_v57 = vmul.f32 %v1785_v49, %v2168_v14  ;;  %1790 = vpow2.f32 %v1654_v48  ;;  %vm917_vm13 = vweird.f32 %v1785_v49 }
  0xee   : > { %v1647_v59 = vmul.f32 -1.442695, %v2227_v54  ;;  %v795_v61 = vadd.f32 %v1779_v23, %v794_v56  ;;  %v1787_v63 = vpop.eup %1786  ;;  %1792 = vrcp.f32 %v2224_v53  ;;  %v909_v1 = vsel %vm2183_vm4, %v908_v32, %v904_v51  ;;  %vm918_vm15 = vmor %vm916_vm8, %vm917_vm13 }
  0xef   : > { %v913_v0 = vsub.f32 1.0, %v912_v57  ;;  %v2243_v2 = vadd.f32 1.0, %v1787_v63  ;;  %v960_v12 = vmul.f32 %v789_v60, %v2086_v55  ;;  %v968_v20 = vmul.f32 %v909_v1, %v2100_v8 }
  0xf0   : > { %1794 = vpow2.f32 %v1647_v59  ;;  %v517_v3 = vpop.f32.mrf.mxu0  ;;  %v799_v4 = vsel %vm798_vm11, %v1779_v23, %v795_v61  ;;  %v923_v37 = vor.u32 1.1754944e-38, %v922_v40  ;;  %vm811_vm0 = vweird.f32 %v2194_v21 }
  0xf1   : > { %v2245_v5 = vpop.eup %1788  ;;  %v914_v7 = vmul.f32 %v1785_v49, %v913_v0  ;;  %v614_v9 = vpop.f32.mrf.mxu1  ;;  %v804_v11 = vsel %vm801_vm12, %v803_v29, %v799_v4  ;;  %1796 = vrcp.f32 %v2243_v2  ;;  %v815_v8 = vand.u32 2147483647, %v2194_v21 }
  0xf2   : > { %v615_v52 = vadd.f32 %v614_v9, %v517_v3  ;;  %v961_v13 = vmul.f32 %v804_v11, %v2106_v17  ;;  %v807_v16 = vmul.f32 %v2245_v5, %v2194_v21  ;;  %v817_v10 = vand.u32 2147483648, %v2194_v21 }
  0xf3   : > { %v1791_v19 = vpop.eup %1790  ;;  %v915_v26 = vadd.f32 %v1785_v49, %v914_v7  ;;  %vm812_vm1 = vweird.f32 %v2245_v5  ;;  %v830_v34 = vand.u32 2147483647, %v2243_v2  ;;  %v832_v39 = vand.u32 2147483648, %v2243_v2 }
  0xf4   : > { %v2255_v22 = vadd.f32 1.0, %v1791_v19  ;;  %v2258_v55 = vadd.f32 %v2043_v6, %v615_v52  ;;  %v974_v23 = vpack.c.bf16 %v961_v13, %v960_v12  ;;  %v808_v24 = vsub.f32 1.0, %v807_v16  ;;  %v2260_v17 = vpop.eup %1792  ;;  %vm2282_vm3 = vmor %vm811_vm0, %vm812_vm1 }
  0xf5   : > { %v919_v25 = vsel %vm918_vm15, %v1785_v49, %v915_v26  ;;  %v927_v44 = vmul.f32 %v2260_v17, %v2224_v53  ;;  %vm931_vm2 = vweird.f32 %v2224_v53  ;;  %vm2286_vm4 = vcmp.eq.f32.partialorder %v815_v8, 8.507059e+37 }
  0xf6   : > { %v1795_v18 = vpop.eup %1794  ;;  %v924_v28 = vsel %vm921_vm14, %v923_v37, %v919_v25  ;;  %1798 = vrcp.f32 %v2255_v22  ;;  %v1648_v14 = vmul.f32 -1.442695, %v2258_v55  ;;  %v809_v30 = vmul.f32 %v2245_v5, %v808_v24  ;;  %1066 = vmatmul.bf16.gmra.mxu2 %v974_v23 }
  0xf7   : > { %v969_v32 = vmul.f32 %v924_v28, %v2117_v31  ;;  %v2269_v33 = vadd.f32 1.0, %v1795_v18  ;;  %v1797_v35 = vpop.eup %1796  ;;  %v818_v27 = vor.u32 1.1754944e-38, %v817_v10  ;;  %v928_v49 = vsub.f32 1.0, %v927_v44 }
  0xf8   : > { %1800 = vpow2.f32 %v1648_v14  ;;  %v520_v41 = vpop.f32.mrf.mxu0  ;;  %v810_v38 = vadd.f32 %v2245_v5, %v809_v30  ;;  %v822_v46 = vmul.f32 %v1797_v35, %v2243_v2  ;;  %vm826_vm5 = vweird.f32 %v2243_v2 }
  0xf9   : > { %v978_v45 = vpack.c.bf16 %v969_v32, %v968_v20  ;;  %1802 = vrcp.f32 %v2269_v33  ;;  %v617_v31 = vpop.f32.mrf.mxu1  ;;  %vm2294_vm6 = vcmp.eq.f32.partialorder %v830_v34, 8.507059e+37  ;;  %v833_v58 = vor.u32 1.1754944e-38, %v832_v39 }
  0xfa   : > { %v618_v47 = vadd.f32 %v617_v31, %v520_v41  ;;  %v814_v50 = vsel %vm2282_vm3, %v2245_v5, %v810_v38  ;;  %v823_v56 = vsub.f32 1.0, %v822_v46  ;;  %v929_v40 = vmul.f32 %v2260_v17, %v928_v49 }
  0xfb   : > { %1086 = vmatmul.bf16.vlgmr.msra.gmra.mxu3 %v978_v45  ;;  %vm932_vm7 = vweird.f32 %v2260_v17  ;;  %vm827_vm8 = vweird.f32 %v1797_v35  ;;  %v935_v60 = vand.u32 2147483647, %v2224_v53  ;;  %v819_v29 = vsel %vm2286_vm4, %v818_v27, %v814_v50 }
  0xfc   : > { %v1799_v51 = vpop.eup %1798  ;;  %v2299_v57 = vadd.f32 %v2043_v6, %v618_v47  ;;  %v824_v59 = vmul.f32 %v1797_v35, %v823_v56  ;;  %v930_v1 = vadd.f32 %v2260_v17, %v929_v40  ;;  %v937_v3 = vand.u32 2147483648, %v2224_v53  ;;  %vm2316_vm9 = vmor %vm931_vm2, %vm932_vm7 }
  0xfd   : > { %v942_v61 = vmul.f32 %v1799_v51, %v2255_v22  ;;  %vm946_vm10 = vweird.f32 %v2255_v22  ;;  %vm828_vm11 = vmor %vm826_vm5, %vm827_vm8  ;;  %vm947_vm12 = vweird.f32 %v1799_v51  ;;  %v950_v52 = vand.u32 2147483647, %v2255_v22 }
  0xfe   : > { %v1801_v63 = vpop.eup %1800  ;;  %v1649_v0 = vmul.f32 -1.442695, %v2299_v57  ;;  %v825_v7 = vadd.f32 %v1797_v35, %v824_v59  ;;  %v952_v13 = vand.u32 2147483648, %v2255_v22  ;;  %v934_v19 = vsel %vm2316_vm9, %v2260_v17, %v930_v1  ;;  %vm948_vm14 = vmor %vm946_vm10, %vm947_vm12 }
  0xff   : > { %v2310_v4 = vpop.eup %1802  ;;  %v2312_v5 = vadd.f32 1.0, %v1801_v63  ;;  %v943_v11 = vsub.f32 1.0, %v942_v61  ;;  %v938_v2 = vor.u32 1.1754944e-38, %v937_v3  ;;  %v962_v24 = vmul.f32 %v819_v29, %v2128_v42 }
 0x100   : > { %1804 = vpow2.f32 %v1649_v0  ;;  %v522_v12 = vpop.f32.mrf.mxu0  ;;  %v829_v16 = vsel %vm828_vm11, %v1797_v35, %v825_v7  ;;  %v837_v23 = vmul.f32 %v2310_v4, %v2269_v33  ;;  %vm936_vm13 = vcmp.eq.f32.partialorder %v935_v60, 8.507059e+37 }
 0x101   : > { %1806 = vrcp.f32 %v2312_v5  ;;  %v619_v53 = vpop.f32.mrf.mxu1  ;;  %v944_v20 = vmul.f32 %v1799_v51, %v943_v11  ;;  %v834_v37 = vsel %vm2294_vm6, %v833_v58, %v829_v16  ;;  %v939_v18 = vsel %vm936_vm13, %v938_v2, %v934_v19  ;;  %v1747_v2 = vld [vmem:[%s2633_s6] ss:$0 sm:$0xff] }
 0x102   : > { %v620_v26 = vadd.f32 %v619_v53, %v522_v12  ;;  %v963_v25 = vmul.f32 %v834_v37, %v2171_v15  ;;  %v953_v17 = vor.u32 1.1754944e-38, %v952_v13  ;;  %v838_v28 = vsub.f32 1.0, %v837_v23 }
 0x103   : > { %v945_v8 = vadd.f32 %v1799_v51, %v944_v20  ;;  %vm951_vm15 = vcmp.eq.f32.partialorder %v950_v52, 8.507059e+37  ;;  %vm842_vm0 = vweird.f32 %v2310_v4  ;;  %v847_v45 = vand.u32 2147483648, %v2269_v33 }
 0x104   : > { %v2337_v10 = vadd.f32 %v2043_v6, %v620_v26  ;;  %v975_v14 = vpack.c.bf16 %v963_v25, %v962_v24  ;;  %v839_v15 = vmul.f32 %v2310_v4, %v838_v28  ;;  %v970_v6 = vmul.f32 %v939_v18, %v2155_v62 }
 0x105   : > { %v949_v30 = vsel %vm948_vm14, %v1799_v51, %v945_v8  ;;  %vm841_vm1 = vweird.f32 %v2269_v33  ;;  %v845_v31 = vand.u32 2147483647, %v2269_v33  ;;  %v862_v62 = vand.u32 2147483648, %v2312_v5 }
 0x106   : > { %v1805_v32 = vpop.eup %1804  ;;  %v1650_v42 = vmul.f32 -1.442695, %v2337_v10  ;;  %v954_v34 = vsel %vm951_vm15, %v953_v17, %v949_v30  ;;  %1071 = vmatmul.bf16.gmra.mxu2 %v975_v14  ;;  %v840_v22 = vadd.f32 %v2310_v4, %v839_v15  ;;  %vm843_vm2 = vmor %vm841_vm1, %vm842_vm0  ;;  %v860_v43 = vand.u32 2147483647, %v2312_v5 }
 0x107   : > { %v1807_v35 = vpop.eup %1806  ;;  %v710_v41 = vadd.f32 1.0, %v1805_v32  ;;  %v971_v38 = vmul.f32 %v954_v34, %v2197_v36  ;;  %v848_v48 = vor.u32 1.1754944e-38, %v847_v45  ;;  %vm846_vm4 = vcmp.eq.f32.partialorder %v845_v31, 8.507059e+37 }
 0x108   : > { %1808 = vpow2.f32 %v1650_v42  ;;  %v852_v39 = vmul.f32 %v1807_v35, %v2312_v5  ;;  %v844_v36 = vsel %vm843_vm2, %v2310_v4, %v840_v22  ;;  %vm857_vm3 = vweird.f32 %v1807_v35 }
 0x109   : > { %1810 = vrcp.f32 %v710_v41  ;;  %v979_v44 = vpack.c.bf16 %v971_v38, %v970_v6  ;;  %vm856_vm5 = vweird.f32 %v2312_v5  ;;  %v849_v33 = vsel %vm846_vm4, %v848_v48, %v844_v36 }
 0x10a   : > { %v853_v46 = vsub.f32 1.0, %v852_v39  ;;  %vm858_vm6 = vmor %vm856_vm5, %vm857_vm3  ;;  %v863_v21 = vor.u32 1.1754944e-38, %v862_v62  ;;  %vm861_vm7 = vcmp.eq.f32.partialorder %v860_v43, 8.507059e+37  ;;  %v964_v59 = vmul.f32 %v849_v33, %v2227_v54 }
 0x10b   : > { %1091 = vmatmul.bf16.gmra.mxu3 %v979_v44  ;;  %v877_v4 = vand.u32 2147483648, %v710_v41  ;;  %vm871_vm9 = vweird.f32 %v710_v41  ;;  %v875_v5 = vand.u32 2147483647, %v710_v41 }
 0x10c   : > { %v854_v47 = vmul.f32 %v1807_v35, %v853_v46 }
 0x10d   : > { %v878_v52 = vor.u32 1.1754944e-38, %v877_v4  ;;  %vm876_vm12 = vcmp.eq.f32.partialorder %v875_v5, 8.507059e+37 }
 0x10e   : > { %v1809_v27 = vpop.eup %1808  ;;  %v855_v49 = vadd.f32 %v1807_v35, %v854_v47 }
 0x10f   : > { %v1811_v50 = vpop.eup %1810  ;;  %v711_v56 = vadd.f32 1.0, %v1809_v27 }
 0x110   : > { %v859_v51 = vsel %vm858_vm6, %v1807_v35, %v855_v49  ;;  %v867_v58 = vmul.f32 %v1811_v50, %v710_v41  ;;  %vm872_vm8 = vweird.f32 %v1811_v50  ;;  %v1872_v49 = vmov 128.0  }
 0x111   : > { %1812 = vrcp.f32 %v711_v56  ;;  %v864_v40 = vsel %vm861_vm7, %v863_v21, %v859_v51  ;;  %vm873_vm10 = vmor %vm871_vm9, %vm872_vm8  ;;  %v892_v9 = vand.u32 2147483648, %v711_v56  ;;  %v890_v54 = vand.u32 2147483647, %v711_v56 }
 0x112   : > { %v965_v60 = vmul.f32 %v864_v40, %v2258_v55  ;;  %v868_v61 = vsub.f32 1.0, %v867_v58  ;;  %vm886_vm13 = vweird.f32 %v711_v56  ;;  %1814 = vrcp.f32 %v1872_v49 }
 0x113   : > { %v893_v53 = vor.u32 1.1754944e-38, %v892_v9  ;;  %vm891_vm15 = vcmp.eq.f32.partialorder %v890_v54, 8.507059e+37 }
 0x114   : > { %v976_v63 = vpack.c.bf16 %v965_v60, %v964_v59  ;;  %v869_v0 = vmul.f32 %v1811_v50, %v868_v61 }
 0x116   : > { %1076 = vmatmul.bf16.gmra.mxu2 %v976_v63  ;;  %v870_v1 = vadd.f32 %v1811_v50, %v869_v0 }
 0x117   : > { %v1813_v29 = vpop.eup %1812 }
 0x118   : > { %v882_v3 = vmul.f32 %v1813_v29, %v711_v56  ;;  %v874_v11 = vsel %vm873_vm10, %v1811_v50, %v870_v1  ;;  %vm887_vm11 = vweird.f32 %v1813_v29  ;;  %v1815_v50 = vpop.eup %1814 }
 0x119   : > { %v879_v13 = vsel %vm876_vm12, %v878_v52, %v874_v11  ;;  %vm888_vm14 = vmor %vm886_vm13, %vm887_vm11  ;;  %v1130_v33 = vmul.f32 128.0, %v1815_v50  ;;  %vm1134_vm0 = vweird.f32 %v1815_v50 }
 0x11a   : > { %v883_v7 = vsub.f32 1.0, %v882_v3  ;;  %v966_v20 = vmul.f32 %v879_v13, %v2299_v57 }
 0x11b   : > { %v1131_v21 = vsub.f32 1.0, %v1130_v33 }
 0x11c   : > { %v884_v12 = vmul.f32 %v1813_v29, %v883_v7 }
 0x11d   : > { %v1132_v51 = vmul.f32 %v1815_v50, %v1131_v21 }
 0x11e   : > { %v885_v55 = vadd.f32 %v1813_v29, %v884_v12 }
 0x11f   : > { %v1133_v58 = vadd.f32 %v1815_v50, %v1132_v51 }
 0x120   : > { %v889_v16 = vsel %vm888_vm14, %v1813_v29, %v885_v55 }
 0x121   : > { %v894_v19 = vsel %vm891_vm15, %v893_v53, %v889_v16  ;;  %v2402_v40 = vsel %vm1134_vm0, %v1815_v50, %v1133_v58 }
 0x122   : > { %v967_v26 = vmul.f32 %v894_v19, %v2337_v10 }
 0x124   : > { %v977_v37 = vpack.c.bf16 %v967_v26, %v966_v20 }
 0x126   : > { %1081 = vmatmul.bf16.gmra.mxu2 %v977_v37 }
 0x159   : > { %v1057_v23 = vpop.f32.mrf.mxu2 }
 0x15a   : > { %v1058_v24 = vadd.f32 %v1747_v2, %v1057_v23 }
 0x15c   : > { %1097 = vadd.xlane.f32.xlu0 %v1058_v24 }
 0x161   : > { %v1059_v25 = vpop.f32.mrf.mxu2 }
 0x162   : > { %v1060_v8 = vadd.f32 %v1747_v2, %v1059_v25 }
 0x164   : > { %1099 = vadd.xlane.f32.xlu0 %v1060_v8 }
 0x169   : > { %v1062_v18 = vpop.f32.mrf.mxu2 }
 0x16a   : > { %v1063_v17 = vadd.f32 %v1747_v2, %v1062_v18 }
 0x16c   : > { %1101 = vadd.xlane.f32.xlu1 %v1063_v17 }
 0x171   : > { %v1064_v28 = vpop.f32.mrf.mxu2 }
 0x172   : > { %v2363_v14 = vadd.f32 %v1747_v2, %v1064_v28 }
 0x174   : > { %1103 = vadd.xlane.f32.xlu1 %v2363_v14 }
 0x179   : > { %v1067_v57 = vpop.f32.mrf.mxu2 }
 0x17a   : > { %v2366_v10 = vadd.f32 %v1747_v2, %v1067_v57 }
 0x17c   : > { %1105 = vadd.xlane.f32.xlu2 %v2366_v10 }
 0x17e   : > { %v1087_v30 = vpop.f32.mrf.mxu3 }
 0x17f   : > { %v2369_v32 = vadd.f32 %v1747_v2, %v1087_v30 }
 0x181   : > { %1121 = vadd.xlane.f32.xlu0 %v2369_v32  ;;  %v1069_v42 = vpop.f32.mrf.mxu2 }
 0x182   : > { %v2372_v34 = vadd.f32 %v1747_v2, %v1069_v42 }
 0x184   : > { %1107 = vadd.xlane.f32.xlu2 %v2372_v34 }
 0x186   : > { %v1089_v15 = vpop.f32.mrf.mxu3 }
 0x187   : > { %v2375_v35 = vadd.f32 %v1747_v2, %v1089_v15 }
 0x189   : > { %1123 = vadd.xlane.f32.xlu1 %v2375_v35  ;;  %v1072_v41 = vpop.f32.mrf.mxu2 }
 0x18a   : > { %v2378_v6 = vadd.f32 %v1747_v2, %v1072_v41 }
 0x18c   : > { %1109 = vadd.xlane.f32.xlu0 %v2378_v6 }
 0x18e   : > { %v1092_v45 = vpop.f32.mrf.mxu3 }
 0x18f   : > { %v2399_v56 = vadd.f32 %v1747_v2, %v1092_v45 }
 0x191   : > { %v1074_v38 = vpop.f32.mrf.mxu2 }
 0x192   : > { %v2381_v22 = vadd.f32 %v1747_v2, %v1074_v38 }
 0x194   : > { %1111 = vadd.xlane.f32.xlu1 %v2381_v22 }
 0x196   : > { %v1094_v62 = vpop.f32.mrf.mxu3 }
 0x197   : > { %v2390_v47 = vadd.f32 %v1747_v2, %v1094_v62 }
 0x199   : > { %v1077_v39 = vpop.f32.mrf.mxu2 }
 0x19a   : > { %v2384_v44 = vadd.f32 %v1747_v2, %v1077_v39 }
 0x19c   : > { %1113 = vadd.xlane.f32.xlu2 %v2384_v44 }
 0x1a1   : > { %v1079_v31 = vpop.f32.mrf.mxu2 }
 0x1a2   : > { %v2387_v46 = vadd.f32 %v1747_v2, %v1079_v31 }
 0x1a4   : > { %1115 = vadd.xlane.f32.xlu0 %v2387_v46 }
 0x1a9   : > { %v1082_v36 = vpop.f32.mrf.mxu2 }
 0x1aa   : > { %v2392_v43 = vadd.f32 %v1747_v2, %v1082_v36 }
 0x1ac   : > { %1117 = vadd.xlane.f32.xlu1 %v2392_v43  ;;  %1127 = vadd.xlane.f32.xlu0 %v2390_v47 }
 0x1b1   : > { %v1084_v48 = vpop.f32.mrf.mxu2 }
 0x1b2   : > { %v2396_v27 = vadd.f32 %v1747_v2, %v1084_v48 }
 0x1b4   : > { %1119 = vadd.xlane.f32.xlu2 %v2396_v27 }
 0x1bc   : > { %1125 = vadd.xlane.f32.xlu2 %v2399_v56 }
 0x1cf   : > { %v1098_v59 = vpop.xlane.xlu0 %1097 }
 0x1d0   : > { %v1136_v60 = vmul.f32 %v2402_v40, %v1098_v59 }
 0x1d2   : > { %v2405_v61 = vsub.f32 %v1058_v24, %v1136_v60 }
 0x1d4   : > { %v1168_v63 = vmul.f32 %v2405_v61, %v2405_v61 }
 0x1d6   : > { %1184 = vadd.xlane.f32.xlu1 %v1168_v63 }
 0x1d7   : > { %v1100_v0 = vpop.xlane.xlu0 %1099 }
 0x1d8   : > { %v1137_v29 = vmul.f32 %v2402_v40, %v1100_v0 }
 0x1da   : > { %v2410_v1 = vsub.f32 %v1060_v8, %v1137_v29 }
 0x1dc   : > { %v1169_v3 = vmul.f32 %v2410_v1, %v2410_v1 }
 0x1de   : > { %1186 = vadd.xlane.f32.xlu2 %v1169_v3 }
 0x1df   : > { %v1102_v4 = vpop.xlane.xlu1 %1101 }
 0x1e0   : > { %v1138_v5 = vmul.f32 %v2402_v40, %v1102_v4 }
 0x1e2   : > { %v2415_v7 = vsub.f32 %v1063_v17, %v1138_v5 }
 0x1e4   : > { %v1170_v9 = vmul.f32 %v2415_v7, %v2415_v7 }
 0x1e6   : > { %1188 = vadd.xlane.f32.xlu0 %v1170_v9 }
 0x1e7   : > { %v1104_v11 = vpop.xlane.xlu1 %1103 }
 0x1e8   : > { %v1139_v12 = vmul.f32 %v2402_v40, %v1104_v11 }
 0x1ea   : > { %v2421_v54 = vsub.f32 %v2363_v14, %v1139_v12 }
 0x1ec   : > { %v1171_v52 = vmul.f32 %v2421_v54, %v2421_v54 }
 0x1ee   : > { %1190 = vadd.xlane.f32.xlu1 %v1171_v52 }
 0x1ef   : > { %v1106_v55 = vpop.xlane.xlu2 %1105 }
 0x1f0   : > { %v1140_v13 = vmul.f32 %v2402_v40, %v1106_v55 }
 0x1f2   : > { %v2427_v53 = vsub.f32 %v2366_v10, %v1140_v13 }
 0x1f4   : > { %v1122_v16 = vpop.xlane.xlu0 %1121  ;;  %v1172_v20 = vmul.f32 %v2427_v53, %v2427_v53 }
 0x1f5   : > { %v1148_v19 = vmul.f32 %v2402_v40, %v1122_v16 }
 0x1f6   : > { %1192 = vadd.xlane.f32.xlu2 %v1172_v20 }
 0x1f7   : > { %v2433_v26 = vsub.f32 %v2369_v32, %v1148_v19  ;;  %v1108_v37 = vpop.xlane.xlu2 %1107 }
 0x1f8   : > { %v1141_v2 = vmul.f32 %v2402_v40, %v1108_v37 }
 0x1f9   : > { %v1180_v23 = vmul.f32 %v2433_v26, %v2433_v26 }
 0x1fa   : > { %v2439_v24 = vsub.f32 %v2372_v34, %v1141_v2  ;;  %v2503_v2 = vld [vmem:[%s2634_s7] ss:$0 sm:$0xff] }
 0x1fb   : > { %1208 = vadd.xlane.f32.xlu1 %v1180_v23 }
 0x1fc   : > { %v1173_v25 = vmul.f32 %v2439_v24, %v2439_v24  ;;  %v1124_v8 = vpop.xlane.xlu1 %1123 }
 0x1fd   : > { %v1149_v49 = vmul.f32 %v2402_v40, %v1124_v8  ;;  %v2508_v8 = vld [vmem:[%s2635_s8] ss:$0 sm:$0xff] }
 0x1fe   : > { %1194 = vadd.xlane.f32.xlu0 %v1173_v25 }
 0x1ff   : > { %v1110_v18 = vpop.xlane.xlu0 %1109  ;;  %v2481_v21 = vsub.f32 %v2375_v35, %v1149_v49 }
 0x200   : > { %v1142_v17 = vmul.f32 %v2402_v40, %v1110_v18 }
 0x201   : > { %v1181_v58 = vmul.f32 %v2481_v21, %v2481_v21 }
 0x202   : > { %v2445_v28 = vsub.f32 %v2378_v6, %v1142_v17 }
 0x204   : > { %v1174_v14 = vmul.f32 %v2445_v28, %v2445_v28 }
 0x206   : > { %1196 = vadd.xlane.f32.xlu1 %v1174_v14 }
 0x207   : > { %v1112_v57 = vpop.xlane.xlu1 %1111 }
 0x208   : > { %v1143_v10 = vmul.f32 %v2402_v40, %v1112_v57 }
 0x20a   : > { %v2451_v30 = vsub.f32 %v2381_v22, %v1143_v10 }
 0x20c   : > { %v1175_v32 = vmul.f32 %v2451_v30, %v2451_v30 }
 0x20e   : > { %1198 = vadd.xlane.f32.xlu2 %v1175_v32 }
 0x20f   : > { %v1114_v42 = vpop.xlane.xlu2 %1113 }
 0x210   : > { %v1144_v34 = vmul.f32 %v2402_v40, %v1114_v42 }
 0x212   : > { %v2457_v15 = vsub.f32 %v2384_v44, %v1144_v34 }
 0x214   : > { %v1176_v41 = vmul.f32 %v2457_v15, %v2457_v15 }
 0x216   : > { %1200 = vadd.xlane.f32.xlu0 %v1176_v41 }
 0x217   : > { %v1116_v6 = vpop.xlane.xlu0 %1115 }
 0x218   : > { %v1145_v38 = vmul.f32 %v2402_v40, %v1116_v6  ;;  %v1848_v6 = vld [vmem:[%s1976_s21] sm:$0xff] }
 0x21a   : > { %v2463_v22 = vsub.f32 %v2387_v46, %v1145_v38 }
 0x21c   : > { %v1177_v39 = vmul.f32 %v2463_v22, %v2463_v22 }
 0x21e   : > { %1202 = vadd.xlane.f32.xlu1 %v1177_v39 }
 0x21f   : > { %v1118_v45 = vpop.xlane.xlu1 %1117  ;;  %v1128_v31 = vpop.xlane.xlu0 %1127 }
 0x220   : > { %v1146_v62 = vmul.f32 %v2402_v40, %v1118_v45  ;;  %v1151_v44 = vmul.f32 %v2402_v40, %v1128_v31 }
 0x222   : > { %v2470_v36 = vsub.f32 %v2392_v43, %v1146_v62  ;;  %v2473_v48 = vsub.f32 %v2390_v47, %v1151_v44 }
 0x224   : > { %v1178_v46 = vmul.f32 %v2470_v36, %v2470_v36  ;;  %v1183_v50 = vmul.f32 %v2473_v48, %v2473_v48 }
 0x226   : > { %1204 = vadd.xlane.f32.xlu2 %v1178_v46  ;;  %1214 = vadd.xlane.f32.xlu1 %v1183_v50 }
 0x227   : > { %v1120_v33 = vpop.xlane.xlu2 %1119 }
 0x228   : > { %v1147_v43 = vmul.f32 %v2402_v40, %v1120_v33 }
 0x22a   : > { %v2485_v51 = vsub.f32 %v2396_v27, %v1147_v43 }
 0x22c   : > { %v1179_v47 = vmul.f32 %v2485_v51, %v2485_v51 }
 0x22e   : > { %1206 = vadd.xlane.f32.xlu0 %v1179_v47  ;;  %1210 = vadd.xlane.f32.xlu2 %v1181_v58 }
 0x22f   : > { %v1126_v59 = vpop.xlane.xlu2 %1125 }
 0x230   : > { %v1150_v60 = vmul.f32 %v2402_v40, %v1126_v59  ;;  %v1849_v59 = vld [vmem:[%s1976_s21 + $0x8] sm:$0xff] }
 0x232   : > { %v2493_v63 = vsub.f32 %v2399_v56, %v1150_v60 }
 0x234   : > { %v1182_v35 = vmul.f32 %v2493_v63, %v2493_v63 }
 0x236   : > { %1212 = vadd.xlane.f32.xlu0 %v1182_v35 }
 0x249   : > { %v1185_v27 = vpop.xlane.xlu1 %1184 }
 0x24a   : > { %v1216_v0 = vmul.f32 %v1185_v27, %v2402_v40 }
 0x24c   : > { %v1232_v29 = vadd.f32 1e-05, %v1216_v0 }
 0x24e   : > { %1816 = vrsqrt.f32 %v1232_v29  ;;  %vm1254_vm2 = vweird.f32 %v1232_v29 }
 0x251   : > { %v1187_v3 = vpop.xlane.xlu2 %1186 }
 0x252   : > { %v1217_v4 = vmul.f32 %v1187_v3, %v2402_v40 }
 0x254   : > { %v1817_v5 = vpop.eup %1816  ;;  %v1233_v9 = vadd.f32 1e-05, %v1217_v4 }
 0x255   : > { %v1249_v11 = vmul.f32 %v1817_v5, %v1232_v29  ;;  %vm1255_vm1 = vweird.f32 %v1817_v5 }
 0x256   : > { %1818 = vrsqrt.f32 %v1233_v9  ;;  %vm1256_vm3 = vmor %vm1254_vm2, %vm1255_vm1  ;;  %vm1264_vm5 = vweird.f32 %v1233_v9 }
 0x257   : > { %v1250_v12 = vmul.f32 %v1817_v5, %v1249_v11 }
 0x259   : > { %v1251_v52 = vmul.f32 0.5, %v1250_v12  ;;  %v1189_v56 = vpop.xlane.xlu0 %1188 }
 0x25a   : > { %v1218_v13 = vmul.f32 %v1189_v56, %v2402_v40 }
 0x25b   : > { %v1252_v55 = vsub.f32 1.5, %v1251_v52 }
 0x25c   : > { %v1819_v16 = vpop.eup %1818  ;;  %v1234_v37 = vadd.f32 1e-05, %v1218_v13 }
 0x25d   : > { %v1253_v19 = vmul.f32 %v1817_v5, %v1252_v55  ;;  %v1259_v20 = vmul.f32 %v1819_v16, %v1233_v9  ;;  %vm1265_vm4 = vweird.f32 %v1819_v16 }
 0x25e   : > { %1820 = vrsqrt.f32 %v1234_v37  ;;  %vm1266_vm6 = vmor %vm1264_vm5, %vm1265_vm4  ;;  %vm1274_vm8 = vweird.f32 %v1234_v37 }
 0x25f   : > { %v1257_v23 = vsel %vm1256_vm3, %v1817_v5, %v1253_v19  ;;  %v1260_v25 = vmul.f32 %v1819_v16, %v1259_v20 }
 0x260   : > { %v1408_v18 = vmul.f32 %v1257_v23, %v2405_v61 }
 0x261   : > { %v1261_v17 = vmul.f32 0.5, %v1260_v25  ;;  %v1191_v57 = vpop.xlane.xlu1 %1190 }
 0x262   : > { %v1428_v14 = vmul.f32 %v2503_v2, %v1408_v18  ;;  %v1219_v32 = vmul.f32 %v1191_v57, %v2402_v40 }
 0x263   : > { %v1262_v10 = vsub.f32 1.5, %v1261_v17 }
 0x264   : > { %v1448_v42 = vadd.f32 %v2508_v8, %v1428_v14  ;;  %v1821_v34 = vpop.eup %1820  ;;  %v1235_v61 = vadd.f32 1e-05, %v1219_v32 }
 0x265   : > { %v1263_v41 = vmul.f32 %v1819_v16, %v1262_v10  ;;  %v1269_v39 = vmul.f32 %v1821_v34, %v1234_v37  ;;  %vm1275_vm7 = vweird.f32 %v1821_v34  ;;  %v1850_v37 = vld [vmem:[%s1976_s21 + $0x10] sm:$0xff] }
 0x266   : > { %v1464_v38 = vadd.f32 %v1848_v6, %v1448_v42  ;;  %1822 = vrsqrt.f32 %v1235_v61  ;;  %vm1276_vm9 = vmor %vm1274_vm8, %vm1275_vm7  ;;  %vm1284_vm11 = vweird.f32 %v1235_v61 }
 0x267   : > { %v1267_v45 = vsel %vm1266_vm6, %v1819_v16, %v1263_v41  ;;  %v1270_v62 = vmul.f32 %v1821_v34, %v1269_v39 }
 0x268   : > { %1480 = vst [vmem:[%s2518_s20] sm:$0xff] %v1464_v38  ;;  %v1409_v31 = vmul.f32 %v1267_v45, %v2410_v1 }
 0x269   : > { %v1271_v49 = vmul.f32 0.5, %v1270_v62  ;;  %v1193_v46 = vpop.xlane.xlu2 %1192 }
 0x26a   : > { %v1429_v44 = vmul.f32 %v2503_v2, %v1409_v31  ;;  %v1220_v50 = vmul.f32 %v1193_v46, %v2402_v40  ;;  %v1851_v31 = vld [vmem:[%s1976_s21 + $0x18] sm:$0xff] }
 0x26b   : > { %v1272_v43 = vsub.f32 1.5, %v1271_v49 }
 0x26c   : > { %v1449_v33 = vadd.f32 %v2508_v8, %v1429_v44  ;;  %v1823_v47 = vpop.eup %1822  ;;  %v1236_v58 = vadd.f32 1e-05, %v1220_v50 }
 0x26d   : > { %v1273_v35 = vmul.f32 %v1821_v34, %v1272_v43  ;;  %v1279_v27 = vmul.f32 %v1823_v47, %v1235_v61  ;;  %vm1285_vm10 = vweird.f32 %v1823_v47 }
 0x26e   : > { %v1465_v60 = vadd.f32 %v1849_v59, %v1449_v33  ;;  %v1209_v1 = vpop.xlane.xlu1 %1208  ;;  %1824 = vrsqrt.f32 %v1236_v58  ;;  %vm1286_vm12 = vmor %vm1284_vm11, %vm1285_vm10  ;;  %vm1294_vm14 = vweird.f32 %v1236_v58 }
 0x26f   : > { %v1228_v0 = vmul.f32 %v1209_v1, %v2402_v40  ;;  %v1277_v29 = vsel %vm1276_vm9, %v1821_v34, %v1273_v35  ;;  %v1280_v3 = vmul.f32 %v1823_v47, %v1279_v27 }
 0x270   : > { %1481 = vst [vmem:[%s2518_s20 + $0x8] sm:$0xff] %v1465_v60  ;;  %v1410_v4 = vmul.f32 %v1277_v29, %v2415_v7 }
 0x271   : > { %v1244_v5 = vadd.f32 1e-05, %v1228_v0  ;;  %v1281_v9 = vmul.f32 0.5, %v1280_v3  ;;  %v1195_v11 = vpop.xlane.xlu0 %1194 }
 0x272   : > { %v1430_v12 = vmul.f32 %v2503_v2, %v1410_v4  ;;  %v1221_v52 = vmul.f32 %v1195_v11, %v2402_v40  ;;  %v1852_v4 = vld [vmem:[%s1976_s21 + $0x20] sm:$0xff] }
 0x273   : > { %1826 = vrsqrt.f32 %v1244_v5  ;;  %v1282_v56 = vsub.f32 1.5, %v1281_v9  ;;  %vm1374_vm1 = vweird.f32 %v1244_v5 }
 0x274   : > { %v1825_v55 = vpop.eup %1824  ;;  %v1450_v13 = vadd.f32 %v2508_v8, %v1430_v12  ;;  %v1237_v16 = vadd.f32 1e-05, %v1221_v52 }
 0x275   : > { %v1283_v19 = vmul.f32 %v1823_v47, %v1282_v56  ;;  %v1289_v20 = vmul.f32 %v1825_v55, %v1236_v58  ;;  %vm1295_vm13 = vweird.f32 %v1825_v55 }
 0x276   : > { %v1466_v7 = vadd.f32 %v1850_v37, %v1450_v13  ;;  %1828 = vrsqrt.f32 %v1237_v16  ;;  %vm1296_vm15 = vmor %vm1294_vm14, %vm1295_vm13  ;;  %vm1304_vm4 = vweird.f32 %v1237_v16  ;;  %v1853_v13 = vld [vmem:[%s1976_s21 + $0x60] sm:$0xff] }
 0x277   : > { %v1287_v23 = vsel %vm1286_vm12, %v1823_v47, %v1283_v19  ;;  %v1290_v25 = vmul.f32 %v1825_v55, %v1289_v20 }
 0x278   : > { %1482 = vst [vmem:[%s2518_s20 + $0x10] sm:$0xff] %v1466_v7  ;;  %v1411_v17 = vmul.f32 %v1287_v23, %v2421_v54 }
 0x279   : > { %v1827_v18 = vpop.eup %1826  ;;  %v1291_v14 = vmul.f32 0.5, %v1290_v25  ;;  %v1197_v10 = vpop.xlane.xlu1 %1196 }
 0x27a   : > { %v1369_v57 = vmul.f32 %v1827_v18, %v1244_v5  ;;  %v1431_v32 = vmul.f32 %v2503_v2, %v1411_v17  ;;  %v1222_v42 = vmul.f32 %v1197_v10, %v2402_v40  ;;  %vm1375_vm0 = vweird.f32 %v1827_v18  ;;  %v1854_v17 = vld [vmem:[%s1976_s21 + $0x28] sm:$0xff] }
 0x27b   : > { %v1292_v34 = vsub.f32 1.5, %v1291_v14  ;;  %vm1376_vm2 = vmor %vm1374_vm1, %vm1375_vm0 }
 0x27c   : > { %v1370_v41 = vmul.f32 %v1827_v18, %v1369_v57  ;;  %v1829_v61 = vpop.eup %1828  ;;  %v1451_v6 = vadd.f32 %v2508_v8, %v1431_v32  ;;  %v1238_v38 = vadd.f32 1e-05, %v1222_v42 }
 0x27d   : > { %v1293_v39 = vmul.f32 %v1825_v55, %v1292_v34  ;;  %v1299_v54 = vmul.f32 %v1829_v61, %v1237_v16  ;;  %vm1305_vm3 = vweird.f32 %v1829_v61 }
 0x27e   : > { %v1371_v45 = vmul.f32 0.5, %v1370_v41  ;;  %v1467_v62 = vadd.f32 %v1851_v31, %v1451_v6  ;;  %1830 = vrsqrt.f32 %v1238_v38  ;;  %vm1306_vm5 = vmor %vm1304_vm4, %vm1305_vm3  ;;  %vm1314_vm7 = vweird.f32 %v1238_v38 }
 0x27f   : > { %v1297_v44 = vsel %vm1296_vm15, %v1825_v55, %v1293_v39  ;;  %v1300_v46 = vmul.f32 %v1829_v61, %v1299_v54 }
 0x280   : > { %v1372_v49 = vsub.f32 1.5, %v1371_v45  ;;  %1483 = vst [vmem:[%s2518_s20 + $0x18] sm:$0xff] %v1467_v62  ;;  %v1412_v50 = vmul.f32 %v1297_v44, %v2427_v53  ;;  %v1855_v62 = vld [vmem:[%s1976_s21 + $0x30] sm:$0xff] }
 0x281   : > { %v1301_v43 = vmul.f32 0.5, %v1300_v46  ;;  %v1199_v47 = vpop.xlane.xlu2 %1198 }
 0x282   : > { %v1373_v33 = vmul.f32 %v1827_v18, %v1372_v49  ;;  %v1432_v58 = vmul.f32 %v2503_v2, %v1412_v50  ;;  %v1223_v59 = vmul.f32 %v1199_v47, %v2402_v40 }
 0x283   : > { %v1302_v35 = vsub.f32 1.5, %v1301_v43 }
 0x284   : > { %v1377_v60 = vsel %vm1376_vm2, %v1827_v18, %v1373_v33  ;;  %v1831_v27 = vpop.eup %1830  ;;  %v1452_v1 = vadd.f32 %v2508_v8, %v1432_v58  ;;  %v1239_v53 = vadd.f32 1e-05, %v1223_v59 }
 0x285   : > { %v1420_v0 = vmul.f32 %v1377_v60, %v2433_v26  ;;  %v1303_v29 = vmul.f32 %v1829_v61, %v1302_v35  ;;  %v1309_v3 = vmul.f32 %v1831_v27, %v1238_v38  ;;  %vm1315_vm6 = vweird.f32 %v1831_v27 }
 0x286   : > { %v1468_v5 = vadd.f32 %v1852_v4, %v1452_v1  ;;  %1832 = vrsqrt.f32 %v1239_v53  ;;  %vm1316_vm8 = vmor %vm1314_vm7, %vm1315_vm6  ;;  %vm1324_vm10 = vweird.f32 %v1239_v53 }
 0x287   : > { %v1440_v9 = vmul.f32 %v2503_v2, %v1420_v0  ;;  %v1307_v11 = vsel %vm1306_vm5, %v1829_v61, %v1303_v29  ;;  %v1310_v12 = vmul.f32 %v1831_v27, %v1309_v3  ;;  %v1856_v29 = vld [vmem:[%s1976_s21 + $0x38] sm:$0xff] }
 0x288   : > { %1484 = vst [vmem:[%s2518_s20 + $0x20] sm:$0xff] %v1468_v5  ;;  %v1413_v56 = vmul.f32 %v1307_v11, %v2439_v24 }
 0x289   : > { %v1460_v52 = vadd.f32 %v2508_v8, %v1440_v9  ;;  %v1311_v26 = vmul.f32 0.5, %v1310_v12  ;;  %v1201_v55 = vpop.xlane.xlu0 %1200 }
 0x28a   : > { %v1433_v19 = vmul.f32 %v2503_v2, %v1413_v56  ;;  %v1224_v20 = vmul.f32 %v1201_v55, %v2402_v40 }
 0x28b   : > { %v1476_v16 = vadd.f32 %v1853_v13, %v1460_v52  ;;  %v1312_v37 = vsub.f32 1.5, %v1311_v26 }
 0x28c   : > { %v1833_v7 = vpop.eup %1832  ;;  %v1453_v23 = vadd.f32 %v2508_v8, %v1433_v19  ;;  %v1240_v25 = vadd.f32 1e-05, %v1224_v20 }
 0x28d   : > { %1492 = vst [vmem:[%s2518_s20 + $0x60] sm:$0xff] %v1476_v16  ;;  %v1313_v18 = vmul.f32 %v1831_v27, %v1312_v37  ;;  %v1319_v24 = vmul.f32 %v1833_v7, %v1239_v53  ;;  %vm1325_vm9 = vweird.f32 %v1833_v7 }
 0x28e   : > { %v1469_v14 = vadd.f32 %v1854_v17, %v1453_v23  ;;  %1834 = vrsqrt.f32 %v1240_v25  ;;  %vm1326_vm11 = vmor %vm1324_vm10, %vm1325_vm9  ;;  %vm1334_vm13 = vweird.f32 %v1240_v25 }
 0x28f   : > { %v1317_v57 = vsel %vm1316_vm8, %v1831_v27, %v1313_v18  ;;  %v1320_v10 = vmul.f32 %v1833_v7, %v1319_v24 }
 0x290   : > { %1485 = vst [vmem:[%s2518_s20 + $0x28] sm:$0xff] %v1469_v14  ;;  %v1414_v32 = vmul.f32 %v1317_v57, %v2445_v28 }
 0x291   : > { %v1321_v42 = vmul.f32 0.5, %v1320_v10  ;;  %v1203_v34 = vpop.xlane.xlu1 %1202 }
 0x292   : > { %v1434_v41 = vmul.f32 %v2503_v2, %v1414_v32  ;;  %v1225_v61 = vmul.f32 %v1203_v34, %v2402_v40 }
 0x293   : > { %v1322_v6 = vsub.f32 1.5, %v1321_v42 }
 0x294   : > { %v1835_v38 = vpop.eup %1834  ;;  %v1454_v39 = vadd.f32 %v2508_v8, %v1434_v41  ;;  %v1241_v45 = vadd.f32 1e-05, %v1225_v61 }
 0x295   : > { %v1323_v54 = vmul.f32 %v1833_v7, %v1322_v6  ;;  %v1329_v31 = vmul.f32 %v1835_v38, %v1240_v25  ;;  %vm1335_vm12 = vweird.f32 %v1835_v38  ;;  %v1857_v25 = vld [vmem:[%s1976_s21 + $0x40] sm:$0xff] }
 0x296   : > { %v1470_v44 = vadd.f32 %v1855_v62, %v1454_v39  ;;  %1836 = vrsqrt.f32 %v1241_v45  ;;  %vm1336_vm14 = vmor %vm1334_vm13, %vm1335_vm12  ;;  %vm1344_vm0 = vweird.f32 %v1241_v45 }
 0x297   : > { %v1327_v28 = vsel %vm1326_vm11, %v1833_v7, %v1323_v54  ;;  %v1330_v49 = vmul.f32 %v1835_v38, %v1329_v31 }
 0x298   : > { %1486 = vst [vmem:[%s2518_s20 + $0x30] sm:$0xff] %v1470_v44  ;;  %v1415_v46 = vmul.f32 %v1327_v28, %v2451_v30  ;;  %v1858_v44 = vld [vmem:[%s1976_s21 + $0x48] sm:$0xff] }
 0x299   : > { %v1331_v50 = vmul.f32 0.5, %v1330_v49  ;;  %v1205_v33 = vpop.xlane.xlu2 %1204  ;;  %v1215_v43 = vpop.xlane.xlu1 %1214 }
 0x29a   : > { %v1435_v47 = vmul.f32 %v2503_v2, %v1415_v46  ;;  %v1226_v58 = vmul.f32 %v1205_v33, %v2402_v40  ;;  %v1231_v59 = vmul.f32 %v1215_v43, %v2402_v40 }
 0x29b   : > { %v1332_v60 = vsub.f32 1.5, %v1331_v50 }
 0x29c   : > { %v1837_v35 = vpop.eup %1836  ;;  %v1455_v27 = vadd.f32 %v2508_v8, %v1435_v47  ;;  %v1242_v1 = vadd.f32 1e-05, %v1226_v58  ;;  %v2569_v0 = vadd.f32 1e-05, %v1231_v59 }
 0x29d   : > { %v1333_v30 = vmul.f32 %v1835_v38, %v1332_v60  ;;  %v1339_v53 = vmul.f32 %v1837_v35, %v1241_v45  ;;  %vm1345_vm15 = vweird.f32 %v1837_v35 }
 0x29e   : > { %v1471_v3 = vadd.f32 %v1856_v29, %v1455_v27  ;;  %1838 = vrsqrt.f32 %v1242_v1  ;;  %vm1346_vm1 = vmor %vm1344_vm0, %vm1345_vm15  ;;  %vm1354_vm4 = vweird.f32 %v1242_v1  ;;  %vm1404_vm6 = vweird.f32 %v2569_v0 }
 0x29f   : > { %v1337_v4 = vsel %vm1336_vm14, %v1835_v38, %v1333_v30  ;;  %v1340_v5 = vmul.f32 %v1837_v35, %v1339_v53  ;;  %1840 = vrsqrt.f32 %v2569_v0 }
 0x2a0   : > { %1487 = vst [vmem:[%s2518_s20 + $0x38] sm:$0xff] %v1471_v3  ;;  %v1416_v9 = vmul.f32 %v1337_v4, %v2457_v15 }
 0x2a1   : > { %v1341_v11 = vmul.f32 0.5, %v1340_v5  ;;  %v1211_v12 = vpop.xlane.xlu2 %1210  ;;  %v1207_v52 = vpop.xlane.xlu0 %1206 }
 0x2a2   : > { %v1436_v56 = vmul.f32 %v2503_v2, %v1416_v9  ;;  %v1229_v26 = vmul.f32 %v1211_v12, %v2402_v40  ;;  %v1227_v55 = vmul.f32 %v1207_v52, %v2402_v40  ;;  %v1860_v9 = vld [vmem:[%s1976_s21 + $0x78] sm:$0xff] }
 0x2a3   : > { %v1342_v13 = vsub.f32 1.5, %v1341_v11 }
 0x2a4   : > { %v1839_v16 = vpop.eup %1838  ;;  %v1456_v19 = vadd.f32 %v2508_v8, %v1436_v56  ;;  %v2579_v20 = vadd.f32 1e-05, %v1229_v26  ;;  %v2581_v37 = vadd.f32 1e-05, %v1227_v55 }
 0x2a5   : > { %v1841_v15 = vpop.eup %1840  ;;  %v1343_v7 = vmul.f32 %v1837_v35, %v1342_v13  ;;  %v1349_v23 = vmul.f32 %v1839_v16, %v1242_v1  ;;  %vm1355_vm2 = vweird.f32 %v1839_v16 }
 0x2a6   : > { %v1472_v18 = vadd.f32 %v1857_v25, %v1456_v19  ;;  %v1399_v24 = vmul.f32 %v1841_v15, %v2569_v0  ;;  %1842 = vrsqrt.f32 %v2579_v20  ;;  %vm1405_vm3 = vweird.f32 %v1841_v15  ;;  %vm1356_vm5 = vmor %vm1354_vm4, %vm1355_vm2  ;;  %v1862_v25 = vld [vmem:[%s1976_s21 + $0x58] sm:$0xff] }
 0x2a7   : > { %v1347_v17 = vsel %vm1346_vm1, %v1837_v35, %v1343_v7  ;;  %v1350_v14 = vmul.f32 %v1839_v16, %v1349_v23  ;;  %1844 = vrsqrt.f32 %v2581_v37  ;;  %vm1406_vm7 = vmor %vm1404_vm6, %vm1405_vm3  ;;  %vm1384_vm10 = vweird.f32 %v2579_v20 }
 0x2a8   : > { %1488 = vst [vmem:[%s2518_s20 + $0x40] sm:$0xff] %v1472_v18  ;;  %v1417_v57 = vmul.f32 %v1347_v17, %v2463_v22  ;;  %v1400_v10 = vmul.f32 %v1841_v15, %v1399_v24  ;;  %vm1364_vm12 = vweird.f32 %v2581_v37 }
 0x2a9   : > { %v1351_v32 = vmul.f32 0.5, %v1350_v14  ;;  %v1213_v42 = vpop.xlane.xlu0 %1212 }
 0x2aa   : > { %v1437_v34 = vmul.f32 %v2503_v2, %v1417_v57  ;;  %v1401_v41 = vmul.f32 0.5, %v1400_v10  ;;  %v1230_v61 = vmul.f32 %v1213_v42, %v2402_v40  ;;  %v1863_v57 = vld [vmem:[%s1976_s21 + $0x70] sm:$0xff] }
 0x2ab   : > { %v1352_v6 = vsub.f32 1.5, %v1351_v32 }
 0x2ac   : > { %v1843_v38 = vpop.eup %1842  ;;  %v1457_v39 = vadd.f32 %v2508_v8, %v1437_v34  ;;  %v1402_v45 = vsub.f32 1.5, %v1401_v41  ;;  %v1246_v54 = vadd.f32 1e-05, %v1230_v61 }
 0x2ad   : > { %v1845_v31 = vpop.eup %1844  ;;  %v1353_v22 = vmul.f32 %v1839_v16, %v1352_v6  ;;  %v1379_v62 = vmul.f32 %v1843_v38, %v2579_v20  ;;  %vm1385_vm8 = vweird.f32 %v1843_v38 }
 0x2ae   : > { %v1473_v28 = vadd.f32 %v1858_v44, %v1457_v39  ;;  %v1403_v49 = vmul.f32 %v1841_v15, %v1402_v45  ;;  %v1359_v40 = vmul.f32 %v1845_v31, %v2581_v37  ;;  %1846 = vrsqrt.f32 %v1246_v54  ;;  %vm1386_vm11 = vmor %vm1384_vm10, %vm1385_vm8 }
 0x2af   : > { %v1357_v46 = vsel %vm1356_vm5, %v1839_v16, %v1353_v22  ;;  %v1380_v50 = vmul.f32 %v1843_v38, %v1379_v62  ;;  %vm1365_vm9 = vweird.f32 %v1845_v31  ;;  %vm1394_vm15 = vweird.f32 %v1246_v54 }
 0x2b0   : > { %1489 = vst [vmem:[%s2518_s20 + $0x48] sm:$0xff] %v1473_v28  ;;  %v1418_v33 = vmul.f32 %v1357_v46, %v2470_v36  ;;  %v1407_v43 = vsel %vm1406_vm7, %v1841_v15, %v1403_v49  ;;  %v1360_v47 = vmul.f32 %v1845_v31, %v1359_v40  ;;  %vm1366_vm13 = vmor %vm1364_vm12, %vm1365_vm9  ;;  %v1861_v15 = vld [vmem:[%s1976_s21 + $0x68] sm:$0xff] }
 0x2b1   : > { %v1423_v58 = vmul.f32 %v1407_v43, %v2473_v48  ;;  %v1381_v59 = vmul.f32 0.5, %v1380_v50  ;;  %v1859_v48 = vld [vmem:[%s1976_s21 + $0x50] sm:$0xff] }
 0x2b2   : > { %v1438_v60 = vmul.f32 %v2503_v2, %v1418_v33  ;;  %v1361_v35 = vmul.f32 0.5, %v1360_v47 }
 0x2b3   : > { %v1443_v27 = vmul.f32 %v2503_v2, %v1423_v58  ;;  %v1382_v1 = vsub.f32 1.5, %v1381_v59 }
 0x2b4   : > { %v1458_v0 = vadd.f32 %v2508_v8, %v1438_v60  ;;  %v1362_v30 = vsub.f32 1.5, %v1361_v35  ;;  %v1847_v36 = vpop.eup %1846 }
 0x2b5   : > { %v1463_v53 = vadd.f32 %v2508_v8, %v1443_v27  ;;  %v1383_v29 = vmul.f32 %v1843_v38, %v1382_v1  ;;  %v1389_v5 = vmul.f32 %v1847_v36, %v1246_v54  ;;  %vm1395_vm14 = vweird.f32 %v1847_v36 }
 0x2b6   : > { %v1474_v3 = vadd.f32 %v1859_v48, %v1458_v0  ;;  %v1363_v4 = vmul.f32 %v1845_v31, %v1362_v30  ;;  %vm1396_vm0 = vmor %vm1394_vm15, %vm1395_vm14 }
 0x2b7   : > { %v1479_v11 = vadd.f32 %v1860_v9, %v1463_v53  ;;  %v1387_v12 = vsel %vm1386_vm11, %v1843_v38, %v1383_v29  ;;  %v1390_v26 = vmul.f32 %v1847_v36, %v1389_v5 }
 0x2b8   : > { %1490 = vst [vmem:[%s2518_s20 + $0x50] sm:$0xff] %v1474_v3  ;;  %v1421_v52 = vmul.f32 %v1387_v12, %v2481_v21  ;;  %v1367_v56 = vsel %vm1366_vm13, %v1845_v31, %v1363_v4 }
 0x2b9   : > { %1495 = vst [vmem:[%s2518_s20 + $0x78] sm:$0xff] %v1479_v11  ;;  %v1419_v55 = vmul.f32 %v1367_v56, %v2485_v51  ;;  %v1391_v16 = vmul.f32 0.5, %v1390_v26 }
 0x2ba   : > { %v1441_v13 = vmul.f32 %v2503_v2, %v1421_v52 }
 0x2bb   : > { %v1439_v19 = vmul.f32 %v2503_v2, %v1419_v55  ;;  %v1392_v37 = vsub.f32 1.5, %v1391_v16 }
 0x2bc   : > { %v1461_v20 = vadd.f32 %v2508_v8, %v1441_v13 }
 0x2bd   : > { %v1459_v21 = vadd.f32 %v2508_v8, %v1439_v19  ;;  %v1393_v23 = vmul.f32 %v1847_v36, %v1392_v37 }
 0x2be   : > { %v1477_v7 = vadd.f32 %v1861_v15, %v1461_v20 }
 0x2bf   : > { %v1475_v51 = vadd.f32 %v1862_v25, %v1459_v21  ;;  %v1397_v18 = vsel %vm1396_vm0, %v1847_v36, %v1393_v23 }
 0x2c0   : > { %1493 = vst [vmem:[%s2518_s20 + $0x68] sm:$0xff] %v1477_v7  ;;  %v1422_v24 = vmul.f32 %v1397_v18, %v2493_v63 }
 0x2c1   : > { %1491 = vst [vmem:[%s2518_s20 + $0x58] sm:$0xff] %v1475_v51 }
 0x2c2   : > { %v1442_v17 = vmul.f32 %v2503_v2, %v1422_v24 }
 0x2c4   : > { %v1462_v14 = vadd.f32 %v2508_v8, %v1442_v17 }
 0x2c6   : > { %v1478_v10 = vadd.f32 %v1863_v57, %v1462_v14 }
 0x2c8   : > { %1494 = vst [vmem:[%s2518_s20 + $0x70] sm:$0xff] %v1478_v10 }
 0x2c9 PF: > { %s19_s30 = sadd.s32 1, %s1870_s30  }
 0x2ca   : > { %p16_p4 = scmp.ge.s32.totalorder %s19_s30, 4  }
 0x2cc   :  { %18 = sbr.rel (!%p16_p4) target bundleno = 1 (0x1), region = 89 }

</bundles_post_ra>
